<compile_context>
chip_gen: v7x
topology: tpu7x:2x2x1
jax: 0.10.0
libtpu: 0.0.40
codegen_flags: <defaults>
</compile_context>

<pallas_src>
import jax
import jax.numpy as jnp
from jax.experimental import pallas as pl
from jax.experimental.pallas import tpu as pltpu

# ---------------------------------------------------------------------------
# Module hyper-parameters (PyTorch defaults of H_theta_AdaIN).
# ---------------------------------------------------------------------------
NUM_LAYERS = 10            # base network depth (must be even)
NUM_LAYERS_INJECT = 4      # injection network depth
NUM_NEURON_INJECT = 500    # injection hidden width
NUM_NEURONS = 50           # base network hidden width
BASE_IN = 5                # the base network is fed torch.ones(..., 5)
LN_EPS = 1e-5              # nn.LayerNorm default eps
HALF = NUM_LAYERS // 2     # 5 linears before inject, 5 (+output) after

LANE = 128
NI_PAD = ((NUM_NEURON_INJECT + LANE - 1) // LANE) * LANE   # 500 -> 512


def _round_up(x, m):
    return (x + m - 1) // m * m


# ---------------------------------------------------------------------------
# Fused kernel: one row-tile of the whole forward pass.
# ---------------------------------------------------------------------------
def _adain_kernel(
    x_ref,                      # (tm, IN_PAD)   conditioning input rows
    wi0_ref, bi0_ref,           # (IN_PAD, NI_PAD), (1, NI_PAD)
    wih_ref, bih_ref,           # (3, NI_PAD, NI_PAD), (3, 1, NI_PAD)
    wisc_ref, bisc_ref,         # (NI_PAD, 128), (1, 128)  cols 0,1 are real
    wb0_ref, bb0_ref,           # (5, 50), (1, 50)
    wbh_ref, bbh_ref,           # (4, 50, 50), (4, 1, 50)
    ln_g_ref, ln_b_ref,         # (1, 50), (1, 50)
    wah_ref, bah_ref,           # (5, 50, 50), (5, 1, 50)
    wao_ref, bao_ref,           # (50, OUT_PAD), (1, OUT_PAD)
    out_ref,                    # (tm, OUT_PAD)
):
    f32 = jnp.float32

    # ---- injection network: x -> sc (scale / shift logits) ---------------
    h = jnp.dot(x_ref[...], wi0_ref[...], preferred_element_type=f32)
    h = jnp.maximum(h + bi0_ref[...], 0.0)
    for k in range(NUM_LAYERS_INJECT - 1):
        h = jnp.dot(h, wih_ref[k], preferred_element_type=f32)
        h = jnp.maximum(h + bih_ref[k], 0.0)
    sc = jnp.dot(h, wisc_ref[...], preferred_element_type=f32) + bisc_ref[...]
    s = jnp.maximum(0.0, 1.0 + sc[:, 0:1])          # (tm, 1)
    c = sc[:, 1:2]                                  # (tm, 1)

    # ---- base network on the constant all-ones input ----------------------
    ones_in = jnp.ones((8, BASE_IN), dtype=f32)     # all rows identical
    z = jnp.dot(ones_in, wb0_ref[...], preferred_element_type=f32)
    z = jnp.maximum(z + bb0_ref[...], 0.0)
    for k in range(HALF - 1):
        z = jnp.dot(z, wbh_ref[k], preferred_element_type=f32)
        z = jnp.maximum(z + bbh_ref[k], 0.0)
    # LayerNorm over the NUM_NEURONS real features (natural width, no pad).
    mu = jnp.mean(z, axis=-1, keepdims=True)
    var = jnp.mean(jnp.square(z - mu), axis=-1, keepdims=True)
    y = (z - mu) * jax.lax.rsqrt(var + LN_EPS)
    y = y * ln_g_ref[...] + ln_b_ref[...]
    y = y[0:1, :]                                   # (1, NUM_NEURONS)

    # ---- AdaIN modulation + after-inject network --------------------------
    a = s * y + c                                   # (tm, NUM_NEURONS)
    for k in range(HALF):
        a = jnp.dot(a, wah_ref[k], preferred_element_type=f32)
        a = jnp.maximum(a + bah_ref[k], 0.0)
    out = jnp.dot(a, wao_ref[...], preferred_element_type=f32) + bao_ref[...]
    out_ref[...] = out.astype(out_ref.dtype)


# ---------------------------------------------------------------------------
# Parameter init (mirrors nn.Linear / nn.LayerNorm defaults) and zero-padding.
# ---------------------------------------------------------------------------
def init_params(key, input_dim, output_dim):
    def linear(k, fan_in, fan_out):
        kw, kb = jax.random.split(k)
        bound = 1.0 / (fan_in ** 0.5)
        w = jax.random.uniform(kw, (fan_in, fan_out), jnp.float32, -bound, bound)
        b = jax.random.uniform(kb, (1, fan_out), jnp.float32, -bound, bound)
        return w, b

    keys = iter(jax.random.split(key, 32))
    p = {}
    # base network before injection: 5 -> 50 (-> 50)*4, each + ReLU
    p["wb0"], p["bb0"] = linear(next(keys), BASE_IN, NUM_NEURONS)
    wbh, bbh = zip(*[linear(next(keys), NUM_NEURONS, NUM_NEURONS)
                     for _ in range(HALF - 1)])
    p["wbh"], p["bbh"] = jnp.stack(wbh), jnp.stack(bbh)
    # injection network: input_dim -> 500 (-> 500)*3 (+ReLU), then 500 -> 2
    p["wi0"], p["bi0"] = linear(next(keys), input_dim, NUM_NEURON_INJECT)
    wih, bih = zip(*[linear(next(keys), NUM_NEURON_INJECT, NUM_NEURON_INJECT)
                     for _ in range(NUM_LAYERS_INJECT - 1)])
    p["wih"], p["bih"] = jnp.stack(wih), jnp.stack(bih)
    p["wisc"], p["bisc"] = linear(next(keys), NUM_NEURON_INJECT, 2)
    # after injection: (50 -> 50 + ReLU)*5, then 50 -> output_dim
    wah, bah = zip(*[linear(next(keys), NUM_NEURONS, NUM_NEURONS)
                     for _ in range(HALF)])
    p["wah"], p["bah"] = jnp.stack(wah), jnp.stack(bah)
    p["wao"], p["bao"] = linear(next(keys), NUM_NEURONS, output_dim)
    # LayerNorm affine params (defaults: gamma=1, beta=0)
    p["ln_g"] = jnp.ones((1, NUM_NEURONS), jnp.float32)
    p["ln_b"] = jnp.zeros((1, NUM_NEURONS), jnp.float32)
    return p


def pad_params(params, input_dim, output_dim):
    """Zero-pad the lane-heavy (injection / I-O) tensors to 128-multiples."""
    in_pad = _round_up(max(input_dim, 1), LANE)
    out_pad = _round_up(max(output_dim, 1), LANE)

    def pad2(a, rows, cols):
        return jnp.pad(a, ((0, rows - a.shape[0]), (0, cols - a.shape[1])))

    def pad3(a, rows, cols):
        return jnp.pad(a, ((0, 0), (0, rows - a.shape[1]), (0, cols - a.shape[2])))

    pp = dict(params)
    pp["wi0"] = pad2(params["wi0"], in_pad, NI_PAD)
    pp["bi0"] = pad2(params["bi0"], 1, NI_PAD)
    pp["wih"] = pad3(params["wih"], NI_PAD, NI_PAD)
    pp["bih"] = pad3(params["bih"], 1, NI_PAD)
    pp["wisc"] = pad2(params["wisc"], NI_PAD, LANE)
    pp["bisc"] = pad2(params["bisc"], 1, LANE)
    pp["wao"] = pad2(params["wao"], NUM_NEURONS, out_pad)
    pp["bao"] = pad2(params["bao"], 1, out_pad)
    # 50-wide base / after-inject / LayerNorm tensors stay at natural width.
    return pp


_PARAM_ORDER = ("wi0", "bi0", "wih", "bih", "wisc", "bisc",
                "wb0", "bb0", "wbh", "bbh", "ln_g", "ln_b",
                "wah", "bah", "wao", "bao")


# ---------------------------------------------------------------------------
# Forward wrapper.
# ---------------------------------------------------------------------------
def h_theta_adain_forward(padded_params, x, *, output_dim, tm=256):
    """Pallas implementation of H_theta_AdaIN.forward.  x: [B, S, input_dim]."""
    B, S, F = x.shape
    p = padded_params
    in_pad = p["wi0"].shape[0]
    out_pad = p["wao"].shape[1]

    M = B * S
    tm = _round_up(min(tm, _round_up(M, 8)), 8)     # shrink tile for tiny inputs
    m_pad = _round_up(M, tm)

    x2 = x.reshape(M, F).astype(jnp.float32)
    x2 = jnp.pad(x2, ((0, m_pad - M), (0, in_pad - F)))

    param_args = [p[name] for name in _PARAM_ORDER]

    def full_spec(a):
        zeros = (0,) * a.ndim
        return pl.BlockSpec(a.shape, lambda i, _z=zeros: _z)   # grid-invariant block

    out = pl.pallas_call(
        _adain_kernel,
        out_shape=jax.ShapeDtypeStruct((m_pad, out_pad), jnp.float32),
        grid_spec=pltpu.PrefetchScalarGridSpec(
            num_scalar_prefetch=0,
            grid=(m_pad // tm,),
            in_specs=[pl.BlockSpec((tm, in_pad), lambda i: (i, 0))]
                     + [full_spec(a) for a in param_args],
            out_specs=pl.BlockSpec((tm, out_pad), lambda i: (i, 0)),
        ),
        compiler_params=pltpu.CompilerParams(
            dimension_semantics=("parallel",),   # shards row tiles over v7x's 2 TCs
            vmem_limit_bytes=32 << 20,           # ~10 MiB actually used; safe on v7x
        ),
    )(x2, *param_args)

    return out[:M, :output_dim].reshape(B, S, output_dim)


# ---------------------------------------------------------------------------
# Pure-JAX reference (unpadded params) for validation.
# ---------------------------------------------------------------------------
def h_theta_adain_reference(params, x):
    B, S, _ = x.shape
    # base network on the constant all-ones input
    y = jnp.ones((B, S, BASE_IN), jnp.float32)
    y = jnp.maximum(y @ params["wb0"] + params["bb0"], 0.0)
    for k in range(HALF - 1):
        y = jnp.maximum(y @ params["wbh"][k] + params["bbh"][k], 0.0)
    # injection network
    h = jnp.maximum(x @ params["wi0"] + params["bi0"], 0.0)
    for k in range(NUM_LAYERS_INJECT - 1):
        h = jnp.maximum(h @ params["wih"][k] + params["bih"][k], 0.0)
    sc = h @ params["wisc"] + params["bisc"]
    s = jnp.maximum(0.0, 1.0 + sc[..., 0:1])
    c = sc[..., 1:2]
    # LayerNorm (biased variance, eps=1e-5, affine)
    mu = jnp.mean(y, axis=-1, keepdims=True)
    var = jnp.mean(jnp.square(y - mu), axis=-1, keepdims=True)
    y = (y - mu) * jax.lax.rsqrt(var + LN_EPS)
    y = y * params["ln_g"] + params["ln_b"]
    # AdaIN modulation + after-inject network
    a = s * y + c
    for k in range(HALF):
        a = jnp.maximum(a @ params["wah"][k] + params["bah"][k], 0.0)
    return a @ params["wao"] + params["bao"]


if __name__ == "__main__":
    input_dim, output_dim = 3, 3     # e.g. 3-D conditioning -> 3-D output
    batch, seq = 2, 8

    key = jax.random.PRNGKey(0)
    k_params, k_x = jax.random.split(key)
    params = init_params(k_params, input_dim, output_dim)
    padded = pad_params(params, input_dim, output_dim)
    x = jax.random.normal(k_x, (batch, seq, input_dim), dtype=jnp.float32)

    out = h_theta_adain_forward(padded, x, output_dim=output_dim)
    out = jax.block_until_ready(out)

    ref = jax.block_until_ready(h_theta_adain_reference(params, x))
    assert out.shape == (batch, seq, output_dim)
    assert jnp.allclose(out, ref, atol=1e-3, rtol=1e-3), float(
        jnp.max(jnp.abs(out - ref)))

    print("KERNEL_OK")
</pallas_src>

<mosaic_0001>
module attributes {stable_mosaic.version = 11 : i64} {
  func.func @_adain_kernel(%arg0: i32, %arg1: memref<16x128xf32, #tpu.memory_space<vmem>>, %arg2: memref<128x512xf32, #tpu.memory_space<vmem>>, %arg3: memref<1x512xf32, #tpu.memory_space<vmem>>, %arg4: memref<3x512x512xf32, #tpu.memory_space<vmem>>, %arg5: memref<3x1x512xf32, #tpu.memory_space<vmem>>, %arg6: memref<512x128xf32, #tpu.memory_space<vmem>>, %arg7: memref<1x128xf32, #tpu.memory_space<vmem>>, %arg8: memref<5x50xf32, #tpu.memory_space<vmem>>, %arg9: memref<1x50xf32, #tpu.memory_space<vmem>>, %arg10: memref<4x50x50xf32, #tpu.memory_space<vmem>>, %arg11: memref<4x1x50xf32, #tpu.memory_space<vmem>>, %arg12: memref<1x50xf32, #tpu.memory_space<vmem>>, %arg13: memref<1x50xf32, #tpu.memory_space<vmem>>, %arg14: memref<5x50x50xf32, #tpu.memory_space<vmem>>, %arg15: memref<5x1x50xf32, #tpu.memory_space<vmem>>, %arg16: memref<50x128xf32, #tpu.memory_space<vmem>>, %arg17: memref<1x128xf32, #tpu.memory_space<vmem>>, %arg18: memref<16x128xf32, #tpu.memory_space<vmem>>) attributes {dimension_semantics = [#tpu.dimension_semantics<parallel>], iteration_bounds = array<i64: 1>, scalar_prefetch = 0 : i64, scratch_operands = 0 : i64, tpu.core_type = #tpu.core_type<tc>, window_params = [{transform_indices = @transform_0, window_bounds = array<i64: 16, 128>}, {pipeline_mode = #tpu.pipeline_mode<synchronous>, transform_indices = @transform_1, window_bounds = array<i64: 128, 512>}, {pipeline_mode = #tpu.pipeline_mode<synchronous>, transform_indices = @transform_2, window_bounds = array<i64: 1, 512>}, {pipeline_mode = #tpu.pipeline_mode<synchronous>, transform_indices = @transform_3, window_bounds = array<i64: 3, 512, 512>}, {pipeline_mode = #tpu.pipeline_mode<synchronous>, transform_indices = @transform_4, window_bounds = array<i64: 3, 1, 512>}, {pipeline_mode = #tpu.pipeline_mode<synchronous>, transform_indices = @transform_5, window_bounds = array<i64: 512, 128>}, {pipeline_mode = #tpu.pipeline_mode<synchronous>, transform_indices = @transform_6, window_bounds = array<i64: 1, 128>}, {pipeline_mode = #tpu.pipeline_mode<synchronous>, transform_indices = @transform_7, window_bounds = array<i64: 5, 50>}, {pipeline_mode = #tpu.pipeline_mode<synchronous>, transform_indices = @transform_8, window_bounds = array<i64: 1, 50>}, {pipeline_mode = #tpu.pipeline_mode<synchronous>, transform_indices = @transform_9, window_bounds = array<i64: 4, 50, 50>}, {pipeline_mode = #tpu.pipeline_mode<synchronous>, transform_indices = @transform_10, window_bounds = array<i64: 4, 1, 50>}, {pipeline_mode = #tpu.pipeline_mode<synchronous>, transform_indices = @transform_11, window_bounds = array<i64: 1, 50>}, {pipeline_mode = #tpu.pipeline_mode<synchronous>, transform_indices = @transform_12, window_bounds = array<i64: 1, 50>}, {pipeline_mode = #tpu.pipeline_mode<synchronous>, transform_indices = @transform_13, window_bounds = array<i64: 5, 50, 50>}, {pipeline_mode = #tpu.pipeline_mode<synchronous>, transform_indices = @transform_14, window_bounds = array<i64: 5, 1, 50>}, {pipeline_mode = #tpu.pipeline_mode<synchronous>, transform_indices = @transform_15, window_bounds = array<i64: 50, 128>}, {pipeline_mode = #tpu.pipeline_mode<synchronous>, transform_indices = @transform_16, window_bounds = array<i64: 1, 128>}, {transform_indices = @transform_17, window_bounds = array<i64: 16, 128>}]} {
    %c0 = arith.constant 0 : index
    %c0_0 = arith.constant 0 : index
    %0 = vector.load %arg1[%c0, %c0_0] : memref<16x128xf32, #tpu.memory_space<vmem>>, vector<16x128xf32>
    %c0_1 = arith.constant 0 : index
    %c0_2 = arith.constant 0 : index
    %1 = vector.load %arg2[%c0_1, %c0_2] : memref<128x512xf32, #tpu.memory_space<vmem>>, vector<128x512xf32>
    %cst = arith.constant dense<0.000000e+00> : vector<16x512xf32>
    %2 = tpu.matmul %0, %1, %cst {dimension_numbers = #tpu.dot_dimension_numbers<[1], [0], [0], [1], [0, 0, 1, 1], [], []>} : vector<16x128xf32>, vector<128x512xf32>, vector<16x512xf32> -> vector<16x512xf32>
    %c0_3 = arith.constant 0 : index
    %c0_4 = arith.constant 0 : index
    %3 = vector.load %arg3[%c0_3, %c0_4] : memref<1x512xf32, #tpu.memory_space<vmem>>, vector<1x512xf32>
    %4 = vector.broadcast %3 : vector<1x512xf32> to vector<16x512xf32>
    %5 = arith.addf %2, %4 : vector<16x512xf32>
    %cst_5 = arith.constant 0.000000e+00 : f32
    %6 = vector.broadcast %cst_5 : f32 to vector<16x512xf32>
    %7 = arith.maximumf %5, %6 : vector<16x512xf32>
    %c0_6 = arith.constant 0 : index
    %c0_7 = arith.constant 0 : index
    %c0_8 = arith.constant 0 : index
    %8 = vector.load %arg4[%c0_6, %c0_7, %c0_8] : memref<3x512x512xf32, #tpu.memory_space<vmem>>, vector<1x512x512xf32>
    %9 = vector.shape_cast %8 : vector<1x512x512xf32> to vector<512x512xf32>
    %cst_9 = arith.constant dense<0.000000e+00> : vector<16x512xf32>
    %10 = tpu.matmul %7, %9, %cst_9 {dimension_numbers = #tpu.dot_dimension_numbers<[1], [0], [0], [1], [0, 0, 1, 1], [], []>} : vector<16x512xf32>, vector<512x512xf32>, vector<16x512xf32> -> vector<16x512xf32>
    %c0_10 = arith.constant 0 : index
    %c0_11 = arith.constant 0 : index
    %c0_12 = arith.constant 0 : index
    %11 = vector.load %arg5[%c0_10, %c0_11, %c0_12] : memref<3x1x512xf32, #tpu.memory_space<vmem>>, vector<1x1x512xf32>
    %12 = vector.shape_cast %11 : vector<1x1x512xf32> to vector<1x512xf32>
    %13 = vector.broadcast %12 : vector<1x512xf32> to vector<16x512xf32>
    %14 = arith.addf %10, %13 : vector<16x512xf32>
    %cst_13 = arith.constant 0.000000e+00 : f32
    %15 = vector.broadcast %cst_13 : f32 to vector<16x512xf32>
    %16 = arith.maximumf %14, %15 : vector<16x512xf32>
    %c1 = arith.constant 1 : index
    %c0_14 = arith.constant 0 : index
    %c0_15 = arith.constant 0 : index
    %17 = vector.load %arg4[%c1, %c0_14, %c0_15] : memref<3x512x512xf32, #tpu.memory_space<vmem>>, vector<1x512x512xf32>
    %18 = vector.shape_cast %17 : vector<1x512x512xf32> to vector<512x512xf32>
    %cst_16 = arith.constant dense<0.000000e+00> : vector<16x512xf32>
    %19 = tpu.matmul %16, %18, %cst_16 {dimension_numbers = #tpu.dot_dimension_numbers<[1], [0], [0], [1], [0, 0, 1, 1], [], []>} : vector<16x512xf32>, vector<512x512xf32>, vector<16x512xf32> -> vector<16x512xf32>
    %c1_17 = arith.constant 1 : index
    %c0_18 = arith.constant 0 : index
    %c0_19 = arith.constant 0 : index
    %20 = vector.load %arg5[%c1_17, %c0_18, %c0_19] : memref<3x1x512xf32, #tpu.memory_space<vmem>>, vector<1x1x512xf32>
    %21 = vector.shape_cast %20 : vector<1x1x512xf32> to vector<1x512xf32>
    %22 = vector.broadcast %21 : vector<1x512xf32> to vector<16x512xf32>
    %23 = arith.addf %19, %22 : vector<16x512xf32>
    %cst_20 = arith.constant 0.000000e+00 : f32
    %24 = vector.broadcast %cst_20 : f32 to vector<16x512xf32>
    %25 = arith.maximumf %23, %24 : vector<16x512xf32>
    %c2 = arith.constant 2 : index
    %c0_21 = arith.constant 0 : index
    %c0_22 = arith.constant 0 : index
    %26 = vector.load %arg4[%c2, %c0_21, %c0_22] : memref<3x512x512xf32, #tpu.memory_space<vmem>>, vector<1x512x512xf32>
    %27 = vector.shape_cast %26 : vector<1x512x512xf32> to vector<512x512xf32>
    %cst_23 = arith.constant dense<0.000000e+00> : vector<16x512xf32>
    %28 = tpu.matmul %25, %27, %cst_23 {dimension_numbers = #tpu.dot_dimension_numbers<[1], [0], [0], [1], [0, 0, 1, 1], [], []>} : vector<16x512xf32>, vector<512x512xf32>, vector<16x512xf32> -> vector<16x512xf32>
    %c2_24 = arith.constant 2 : index
    %c0_25 = arith.constant 0 : index
    %c0_26 = arith.constant 0 : index
    %29 = vector.load %arg5[%c2_24, %c0_25, %c0_26] : memref<3x1x512xf32, #tpu.memory_space<vmem>>, vector<1x1x512xf32>
    %30 = vector.shape_cast %29 : vector<1x1x512xf32> to vector<1x512xf32>
    %31 = vector.broadcast %30 : vector<1x512xf32> to vector<16x512xf32>
    %32 = arith.addf %28, %31 : vector<16x512xf32>
    %cst_27 = arith.constant 0.000000e+00 : f32
    %33 = vector.broadcast %cst_27 : f32 to vector<16x512xf32>
    %34 = arith.maximumf %32, %33 : vector<16x512xf32>
    %c0_28 = arith.constant 0 : index
    %c0_29 = arith.constant 0 : index
    %35 = vector.load %arg6[%c0_28, %c0_29] : memref<512x128xf32, #tpu.memory_space<vmem>>, vector<512x128xf32>
    %cst_30 = arith.constant dense<0.000000e+00> : vector<16x128xf32>
    %36 = tpu.matmul %34, %35, %cst_30 {dimension_numbers = #tpu.dot_dimension_numbers<[1], [0], [0], [1], [0, 0, 1, 1], [], []>} : vector<16x512xf32>, vector<512x128xf32>, vector<16x128xf32> -> vector<16x128xf32>
    %c0_31 = arith.constant 0 : index
    %c0_32 = arith.constant 0 : index
    %37 = vector.load %arg7[%c0_31, %c0_32] : memref<1x128xf32, #tpu.memory_space<vmem>>, vector<1x128xf32>
    %38 = vector.broadcast %37 : vector<1x128xf32> to vector<16x128xf32>
    %39 = arith.addf %36, %38 : vector<16x128xf32>
    %40 = vector.extract_strided_slice %39 {offsets = [0, 0], sizes = [16, 1], strides = [1, 1]} : vector<16x128xf32> to vector<16x1xf32>
    %cst_33 = arith.constant 1.000000e+00 : f32
    %41 = vector.broadcast %cst_33 : f32 to vector<16x1xf32>
    %42 = arith.addf %41, %40 : vector<16x1xf32>
    %cst_34 = arith.constant 0.000000e+00 : f32
    %43 = vector.broadcast %cst_34 : f32 to vector<16x1xf32>
    %44 = arith.maximumf %43, %42 : vector<16x1xf32>
    %45 = vector.extract_strided_slice %39 {offsets = [0, 1], sizes = [16, 1], strides = [1, 1]} : vector<16x128xf32> to vector<16x1xf32>
    %cst_35 = arith.constant 1.000000e+00 : f32
    %46 = vector.broadcast %cst_35 : f32 to vector<8x5xf32>
    %c0_36 = arith.constant 0 : index
    %c0_37 = arith.constant 0 : index
    %47 = vector.load %arg8[%c0_36, %c0_37] : memref<5x50xf32, #tpu.memory_space<vmem>>, vector<5x50xf32>
    %cst_38 = arith.constant dense<0.000000e+00> : vector<8x50xf32>
    %48 = tpu.matmul %46, %47, %cst_38 {dimension_numbers = #tpu.dot_dimension_numbers<[1], [0], [0], [1], [0, 0, 1, 1], [], []>} : vector<8x5xf32>, vector<5x50xf32>, vector<8x50xf32> -> vector<8x50xf32>
    %c0_39 = arith.constant 0 : index
    %c0_40 = arith.constant 0 : index
    %49 = vector.load %arg9[%c0_39, %c0_40] : memref<1x50xf32, #tpu.memory_space<vmem>>, vector<1x50xf32>
    %50 = vector.broadcast %49 : vector<1x50xf32> to vector<8x50xf32>
    %51 = arith.addf %48, %50 : vector<8x50xf32>
    %cst_41 = arith.constant 0.000000e+00 : f32
    %52 = vector.broadcast %cst_41 : f32 to vector<8x50xf32>
    %53 = arith.maximumf %51, %52 : vector<8x50xf32>
    %c0_42 = arith.constant 0 : index
    %c0_43 = arith.constant 0 : index
    %c0_44 = arith.constant 0 : index
    %54 = vector.load %arg10[%c0_42, %c0_43, %c0_44] : memref<4x50x50xf32, #tpu.memory_space<vmem>>, vector<1x50x50xf32>
    %55 = vector.shape_cast %54 : vector<1x50x50xf32> to vector<50x50xf32>
    %cst_45 = arith.constant dense<0.000000e+00> : vector<8x50xf32>
    %56 = tpu.matmul %53, %55, %cst_45 {dimension_numbers = #tpu.dot_dimension_numbers<[1], [0], [0], [1], [0, 0, 1, 1], [], []>} : vector<8x50xf32>, vector<50x50xf32>, vector<8x50xf32> -> vector<8x50xf32>
    %c0_46 = arith.constant 0 : index
    %c0_47 = arith.constant 0 : index
    %c0_48 = arith.constant 0 : index
    %57 = vector.load %arg11[%c0_46, %c0_47, %c0_48] : memref<4x1x50xf32, #tpu.memory_space<vmem>>, vector<1x1x50xf32>
    %58 = vector.shape_cast %57 : vector<1x1x50xf32> to vector<1x50xf32>
    %59 = vector.broadcast %58 : vector<1x50xf32> to vector<8x50xf32>
    %60 = arith.addf %56, %59 : vector<8x50xf32>
    %cst_49 = arith.constant 0.000000e+00 : f32
    %61 = vector.broadcast %cst_49 : f32 to vector<8x50xf32>
    %62 = arith.maximumf %60, %61 : vector<8x50xf32>
    %c1_50 = arith.constant 1 : index
    %c0_51 = arith.constant 0 : index
    %c0_52 = arith.constant 0 : index
    %63 = vector.load %arg10[%c1_50, %c0_51, %c0_52] : memref<4x50x50xf32, #tpu.memory_space<vmem>>, vector<1x50x50xf32>
    %64 = vector.shape_cast %63 : vector<1x50x50xf32> to vector<50x50xf32>
    %cst_53 = arith.constant dense<0.000000e+00> : vector<8x50xf32>
    %65 = tpu.matmul %62, %64, %cst_53 {dimension_numbers = #tpu.dot_dimension_numbers<[1], [0], [0], [1], [0, 0, 1, 1], [], []>} : vector<8x50xf32>, vector<50x50xf32>, vector<8x50xf32> -> vector<8x50xf32>
    %c1_54 = arith.constant 1 : index
    %c0_55 = arith.constant 0 : index
    %c0_56 = arith.constant 0 : index
    %66 = vector.load %arg11[%c1_54, %c0_55, %c0_56] : memref<4x1x50xf32, #tpu.memory_space<vmem>>, vector<1x1x50xf32>
    %67 = vector.shape_cast %66 : vector<1x1x50xf32> to vector<1x50xf32>
    %68 = vector.broadcast %67 : vector<1x50xf32> to vector<8x50xf32>
    %69 = arith.addf %65, %68 : vector<8x50xf32>
    %cst_57 = arith.constant 0.000000e+00 : f32
    %70 = vector.broadcast %cst_57 : f32 to vector<8x50xf32>
    %71 = arith.maximumf %69, %70 : vector<8x50xf32>
    %c2_58 = arith.constant 2 : index
    %c0_59 = arith.constant 0 : index
    %c0_60 = arith.constant 0 : index
    %72 = vector.load %arg10[%c2_58, %c0_59, %c0_60] : memref<4x50x50xf32, #tpu.memory_space<vmem>>, vector<1x50x50xf32>
    %73 = vector.shape_cast %72 : vector<1x50x50xf32> to vector<50x50xf32>
    %cst_61 = arith.constant dense<0.000000e+00> : vector<8x50xf32>
    %74 = tpu.matmul %71, %73, %cst_61 {dimension_numbers = #tpu.dot_dimension_numbers<[1], [0], [0], [1], [0, 0, 1, 1], [], []>} : vector<8x50xf32>, vector<50x50xf32>, vector<8x50xf32> -> vector<8x50xf32>
    %c2_62 = arith.constant 2 : index
    %c0_63 = arith.constant 0 : index
    %c0_64 = arith.constant 0 : index
    %75 = vector.load %arg11[%c2_62, %c0_63, %c0_64] : memref<4x1x50xf32, #tpu.memory_space<vmem>>, vector<1x1x50xf32>
    %76 = vector.shape_cast %75 : vector<1x1x50xf32> to vector<1x50xf32>
    %77 = vector.broadcast %76 : vector<1x50xf32> to vector<8x50xf32>
    %78 = arith.addf %74, %77 : vector<8x50xf32>
    %cst_65 = arith.constant 0.000000e+00 : f32
    %79 = vector.broadcast %cst_65 : f32 to vector<8x50xf32>
    %80 = arith.maximumf %78, %79 : vector<8x50xf32>
    %c3 = arith.constant 3 : index
    %c0_66 = arith.constant 0 : index
    %c0_67 = arith.constant 0 : index
    %81 = vector.load %arg10[%c3, %c0_66, %c0_67] : memref<4x50x50xf32, #tpu.memory_space<vmem>>, vector<1x50x50xf32>
    %82 = vector.shape_cast %81 : vector<1x50x50xf32> to vector<50x50xf32>
    %cst_68 = arith.constant dense<0.000000e+00> : vector<8x50xf32>
    %83 = tpu.matmul %80, %82, %cst_68 {dimension_numbers = #tpu.dot_dimension_numbers<[1], [0], [0], [1], [0, 0, 1, 1], [], []>} : vector<8x50xf32>, vector<50x50xf32>, vector<8x50xf32> -> vector<8x50xf32>
    %c3_69 = arith.constant 3 : index
    %c0_70 = arith.constant 0 : index
    %c0_71 = arith.constant 0 : index
    %84 = vector.load %arg11[%c3_69, %c0_70, %c0_71] : memref<4x1x50xf32, #tpu.memory_space<vmem>>, vector<1x1x50xf32>
    %85 = vector.shape_cast %84 : vector<1x1x50xf32> to vector<1x50xf32>
    %86 = vector.broadcast %85 : vector<1x50xf32> to vector<8x50xf32>
    %87 = arith.addf %83, %86 : vector<8x50xf32>
    %cst_72 = arith.constant 0.000000e+00 : f32
    %88 = vector.broadcast %cst_72 : f32 to vector<8x50xf32>
    %89 = arith.maximumf %87, %88 : vector<8x50xf32>
    %cst_73 = arith.constant dense<0.000000e+00> : vector<8xf32>
    %90 = vector.multi_reduction <add>, %89, %cst_73 [1] : vector<8x50xf32> to vector<8xf32>
    %91 = vector.shape_cast %90 : vector<8xf32> to vector<8x1xf32>
    %cst_74 = arith.constant 5.000000e+01 : f32
    %92 = vector.broadcast %cst_74 : f32 to vector<8x1xf32>
    %93 = arith.divf %91, %92 : vector<8x1xf32>
    %94 = vector.broadcast %93 : vector<8x1xf32> to vector<8x50xf32>
    %95 = arith.subf %89, %94 : vector<8x50xf32>
    %96 = arith.mulf %95, %95 : vector<8x50xf32>
    %cst_75 = arith.constant dense<0.000000e+00> : vector<8xf32>
    %97 = vector.multi_reduction <add>, %96, %cst_75 [1] : vector<8x50xf32> to vector<8xf32>
    %98 = vector.shape_cast %97 : vector<8xf32> to vector<8x1xf32>
    %cst_76 = arith.constant 5.000000e+01 : f32
    %99 = vector.broadcast %cst_76 : f32 to vector<8x1xf32>
    %100 = arith.divf %98, %99 : vector<8x1xf32>
    %101 = vector.broadcast %93 : vector<8x1xf32> to vector<8x50xf32>
    %102 = arith.subf %89, %101 : vector<8x50xf32>
    %cst_77 = arith.constant 9.99999974E-6 : f32
    %103 = vector.broadcast %cst_77 : f32 to vector<8x1xf32>
    %104 = arith.addf %100, %103 : vector<8x1xf32>
    %105 = math.rsqrt %104 : vector<8x1xf32>
    %106 = vector.broadcast %105 : vector<8x1xf32> to vector<8x50xf32>
    %107 = arith.mulf %102, %106 : vector<8x50xf32>
    %c0_78 = arith.constant 0 : index
    %c0_79 = arith.constant 0 : index
    %108 = vector.load %arg12[%c0_78, %c0_79] : memref<1x50xf32, #tpu.memory_space<vmem>>, vector<1x50xf32>
    %109 = vector.broadcast %108 : vector<1x50xf32> to vector<8x50xf32>
    %110 = arith.mulf %107, %109 : vector<8x50xf32>
    %c0_80 = arith.constant 0 : index
    %c0_81 = arith.constant 0 : index
    %111 = vector.load %arg13[%c0_80, %c0_81] : memref<1x50xf32, #tpu.memory_space<vmem>>, vector<1x50xf32>
    %112 = vector.broadcast %111 : vector<1x50xf32> to vector<8x50xf32>
    %113 = arith.addf %110, %112 : vector<8x50xf32>
    %114 = vector.extract_strided_slice %113 {offsets = [0, 0], sizes = [1, 50], strides = [1, 1]} : vector<8x50xf32> to vector<1x50xf32>
    %115 = vector.broadcast %44 : vector<16x1xf32> to vector<16x50xf32>
    %116 = vector.broadcast %114 : vector<1x50xf32> to vector<16x50xf32>
    %117 = arith.mulf %115, %116 : vector<16x50xf32>
    %118 = vector.broadcast %45 : vector<16x1xf32> to vector<16x50xf32>
    %119 = arith.addf %117, %118 : vector<16x50xf32>
    %c0_82 = arith.constant 0 : index
    %c0_83 = arith.constant 0 : index
    %c0_84 = arith.constant 0 : index
    %120 = vector.load %arg14[%c0_82, %c0_83, %c0_84] : memref<5x50x50xf32, #tpu.memory_space<vmem>>, vector<1x50x50xf32>
    %121 = vector.shape_cast %120 : vector<1x50x50xf32> to vector<50x50xf32>
    %cst_85 = arith.constant dense<0.000000e+00> : vector<16x50xf32>
    %122 = tpu.matmul %119, %121, %cst_85 {dimension_numbers = #tpu.dot_dimension_numbers<[1], [0], [0], [1], [0, 0, 1, 1], [], []>} : vector<16x50xf32>, vector<50x50xf32>, vector<16x50xf32> -> vector<16x50xf32>
    %c0_86 = arith.constant 0 : index
    %c0_87 = arith.constant 0 : index
    %c0_88 = arith.constant 0 : index
    %123 = vector.load %arg15[%c0_86, %c0_87, %c0_88] : memref<5x1x50xf32, #tpu.memory_space<vmem>>, vector<1x1x50xf32>
    %124 = vector.shape_cast %123 : vector<1x1x50xf32> to vector<1x50xf32>
    %125 = vector.broadcast %124 : vector<1x50xf32> to vector<16x50xf32>
    %126 = arith.addf %122, %125 : vector<16x50xf32>
    %cst_89 = arith.constant 0.000000e+00 : f32
    %127 = vector.broadcast %cst_89 : f32 to vector<16x50xf32>
    %128 = arith.maximumf %126, %127 : vector<16x50xf32>
    %c1_90 = arith.constant 1 : index
    %c0_91 = arith.constant 0 : index
    %c0_92 = arith.constant 0 : index
    %129 = vector.load %arg14[%c1_90, %c0_91, %c0_92] : memref<5x50x50xf32, #tpu.memory_space<vmem>>, vector<1x50x50xf32>
    %130 = vector.shape_cast %129 : vector<1x50x50xf32> to vector<50x50xf32>
    %cst_93 = arith.constant dense<0.000000e+00> : vector<16x50xf32>
    %131 = tpu.matmul %128, %130, %cst_93 {dimension_numbers = #tpu.dot_dimension_numbers<[1], [0], [0], [1], [0, 0, 1, 1], [], []>} : vector<16x50xf32>, vector<50x50xf32>, vector<16x50xf32> -> vector<16x50xf32>
    %c1_94 = arith.constant 1 : index
    %c0_95 = arith.constant 0 : index
    %c0_96 = arith.constant 0 : index
    %132 = vector.load %arg15[%c1_94, %c0_95, %c0_96] : memref<5x1x50xf32, #tpu.memory_space<vmem>>, vector<1x1x50xf32>
    %133 = vector.shape_cast %132 : vector<1x1x50xf32> to vector<1x50xf32>
    %134 = vector.broadcast %133 : vector<1x50xf32> to vector<16x50xf32>
    %135 = arith.addf %131, %134 : vector<16x50xf32>
    %cst_97 = arith.constant 0.000000e+00 : f32
    %136 = vector.broadcast %cst_97 : f32 to vector<16x50xf32>
    %137 = arith.maximumf %135, %136 : vector<16x50xf32>
    %c2_98 = arith.constant 2 : index
    %c0_99 = arith.constant 0 : index
    %c0_100 = arith.constant 0 : index
    %138 = vector.load %arg14[%c2_98, %c0_99, %c0_100] : memref<5x50x50xf32, #tpu.memory_space<vmem>>, vector<1x50x50xf32>
    %139 = vector.shape_cast %138 : vector<1x50x50xf32> to vector<50x50xf32>
    %cst_101 = arith.constant dense<0.000000e+00> : vector<16x50xf32>
    %140 = tpu.matmul %137, %139, %cst_101 {dimension_numbers = #tpu.dot_dimension_numbers<[1], [0], [0], [1], [0, 0, 1, 1], [], []>} : vector<16x50xf32>, vector<50x50xf32>, vector<16x50xf32> -> vector<16x50xf32>
    %c2_102 = arith.constant 2 : index
    %c0_103 = arith.constant 0 : index
    %c0_104 = arith.constant 0 : index
    %141 = vector.load %arg15[%c2_102, %c0_103, %c0_104] : memref<5x1x50xf32, #tpu.memory_space<vmem>>, vector<1x1x50xf32>
    %142 = vector.shape_cast %141 : vector<1x1x50xf32> to vector<1x50xf32>
    %143 = vector.broadcast %142 : vector<1x50xf32> to vector<16x50xf32>
    %144 = arith.addf %140, %143 : vector<16x50xf32>
    %cst_105 = arith.constant 0.000000e+00 : f32
    %145 = vector.broadcast %cst_105 : f32 to vector<16x50xf32>
    %146 = arith.maximumf %144, %145 : vector<16x50xf32>
    %c3_106 = arith.constant 3 : index
    %c0_107 = arith.constant 0 : index
    %c0_108 = arith.constant 0 : index
    %147 = vector.load %arg14[%c3_106, %c0_107, %c0_108] : memref<5x50x50xf32, #tpu.memory_space<vmem>>, vector<1x50x50xf32>
    %148 = vector.shape_cast %147 : vector<1x50x50xf32> to vector<50x50xf32>
    %cst_109 = arith.constant dense<0.000000e+00> : vector<16x50xf32>
    %149 = tpu.matmul %146, %148, %cst_109 {dimension_numbers = #tpu.dot_dimension_numbers<[1], [0], [0], [1], [0, 0, 1, 1], [], []>} : vector<16x50xf32>, vector<50x50xf32>, vector<16x50xf32> -> vector<16x50xf32>
    %c3_110 = arith.constant 3 : index
    %c0_111 = arith.constant 0 : index
    %c0_112 = arith.constant 0 : index
    %150 = vector.load %arg15[%c3_110, %c0_111, %c0_112] : memref<5x1x50xf32, #tpu.memory_space<vmem>>, vector<1x1x50xf32>
    %151 = vector.shape_cast %150 : vector<1x1x50xf32> to vector<1x50xf32>
    %152 = vector.broadcast %151 : vector<1x50xf32> to vector<16x50xf32>
    %153 = arith.addf %149, %152 : vector<16x50xf32>
    %cst_113 = arith.constant 0.000000e+00 : f32
    %154 = vector.broadcast %cst_113 : f32 to vector<16x50xf32>
    %155 = arith.maximumf %153, %154 : vector<16x50xf32>
    %c4 = arith.constant 4 : index
    %c0_114 = arith.constant 0 : index
    %c0_115 = arith.constant 0 : index
    %156 = vector.load %arg14[%c4, %c0_114, %c0_115] : memref<5x50x50xf32, #tpu.memory_space<vmem>>, vector<1x50x50xf32>
    %157 = vector.shape_cast %156 : vector<1x50x50xf32> to vector<50x50xf32>
    %cst_116 = arith.constant dense<0.000000e+00> : vector<16x50xf32>
    %158 = tpu.matmul %155, %157, %cst_116 {dimension_numbers = #tpu.dot_dimension_numbers<[1], [0], [0], [1], [0, 0, 1, 1], [], []>} : vector<16x50xf32>, vector<50x50xf32>, vector<16x50xf32> -> vector<16x50xf32>
    %c4_117 = arith.constant 4 : index
    %c0_118 = arith.constant 0 : index
    %c0_119 = arith.constant 0 : index
    %159 = vector.load %arg15[%c4_117, %c0_118, %c0_119] : memref<5x1x50xf32, #tpu.memory_space<vmem>>, vector<1x1x50xf32>
    %160 = vector.shape_cast %159 : vector<1x1x50xf32> to vector<1x50xf32>
    %161 = vector.broadcast %160 : vector<1x50xf32> to vector<16x50xf32>
    %162 = arith.addf %158, %161 : vector<16x50xf32>
    %cst_120 = arith.constant 0.000000e+00 : f32
    %163 = vector.broadcast %cst_120 : f32 to vector<16x50xf32>
    %164 = arith.maximumf %162, %163 : vector<16x50xf32>
    %c0_121 = arith.constant 0 : index
    %c0_122 = arith.constant 0 : index
    %165 = vector.load %arg16[%c0_121, %c0_122] : memref<50x128xf32, #tpu.memory_space<vmem>>, vector<50x128xf32>
    %cst_123 = arith.constant dense<0.000000e+00> : vector<16x128xf32>
    %166 = tpu.matmul %164, %165, %cst_123 {dimension_numbers = #tpu.dot_dimension_numbers<[1], [0], [0], [1], [0, 0, 1, 1], [], []>} : vector<16x50xf32>, vector<50x128xf32>, vector<16x128xf32> -> vector<16x128xf32>
    %c0_124 = arith.constant 0 : index
    %c0_125 = arith.constant 0 : index
    %167 = vector.load %arg17[%c0_124, %c0_125] : memref<1x128xf32, #tpu.memory_space<vmem>>, vector<1x128xf32>
    %168 = vector.broadcast %167 : vector<1x128xf32> to vector<16x128xf32>
    %169 = arith.addf %166, %168 : vector<16x128xf32>
    %c0_126 = arith.constant 0 : index
    %c0_127 = arith.constant 0 : index
    %170 = vector.load %arg18[%c0_126, %c0_127] : memref<16x128xf32, #tpu.memory_space<vmem>>, vector<16x128xf32>
    tpu.vector_store %arg18[%c0_126, %c0_127], %169 {strides = array<i32>} : memref<16x128xf32, #tpu.memory_space<vmem>>, vector<16x128xf32>,
    return
  }
  func.func @transform_0(%arg0: i32) -> (i32, i32) {
    %c0_i32 = arith.constant 0 : i32
    %c0_i32_0 = arith.constant 0 : i32
    return %arg0, %c0_i32 : i32, i32
  }
  func.func @transform_1(%arg0: i32) -> (i32, i32) {
    %c0_i32 = arith.constant 0 : i32
    %c0_i32_0 = arith.constant 0 : i32
    %c0_i32_1 = arith.constant 0 : i32
    return %c0_i32, %c0_i32_0 : i32, i32
  }
  func.func @transform_2(%arg0: i32) -> (i32, i32) {
    %c0_i32 = arith.constant 0 : i32
    %c0_i32_0 = arith.constant 0 : i32
    %c0_i32_1 = arith.constant 0 : i32
    return %c0_i32, %c0_i32_0 : i32, i32
  }
  func.func @transform_3(%arg0: i32) -> (i32, i32, i32) {
    %c0_i32 = arith.constant 0 : i32
    %c0_i32_0 = arith.constant 0 : i32
    %c0_i32_1 = arith.constant 0 : i32
    %c0_i32_2 = arith.constant 0 : i32
    return %c0_i32, %c0_i32_0, %c0_i32_1 : i32, i32, i32
  }
  func.func @transform_4(%arg0: i32) -> (i32, i32, i32) {
    %c0_i32 = arith.constant 0 : i32
    %c0_i32_0 = arith.constant 0 : i32
    %c0_i32_1 = arith.constant 0 : i32
    %c0_i32_2 = arith.constant 0 : i32
    return %c0_i32, %c0_i32_0, %c0_i32_1 : i32, i32, i32
  }
  func.func @transform_5(%arg0: i32) -> (i32, i32) {
    %c0_i32 = arith.constant 0 : i32
    %c0_i32_0 = arith.constant 0 : i32
    %c0_i32_1 = arith.constant 0 : i32
    return %c0_i32, %c0_i32_0 : i32, i32
  }
  func.func @transform_6(%arg0: i32) -> (i32, i32) {
    %c0_i32 = arith.constant 0 : i32
    %c0_i32_0 = arith.constant 0 : i32
    %c0_i32_1 = arith.constant 0 : i32
    return %c0_i32, %c0_i32_0 : i32, i32
  }
  func.func @transform_7(%arg0: i32) -> (i32, i32) {
    %c0_i32 = arith.constant 0 : i32
    %c0_i32_0 = arith.constant 0 : i32
    %c0_i32_1 = arith.constant 0 : i32
    return %c0_i32, %c0_i32_0 : i32, i32
  }
  func.func @transform_8(%arg0: i32) -> (i32, i32) {
    %c0_i32 = arith.constant 0 : i32
    %c0_i32_0 = arith.constant 0 : i32
    %c0_i32_1 = arith.constant 0 : i32
    return %c0_i32, %c0_i32_0 : i32, i32
  }
  func.func @transform_9(%arg0: i32) -> (i32, i32, i32) {
    %c0_i32 = arith.constant 0 : i32
    %c0_i32_0 = arith.constant 0 : i32
    %c0_i32_1 = arith.constant 0 : i32
    %c0_i32_2 = arith.constant 0 : i32
    return %c0_i32, %c0_i32_0, %c0_i32_1 : i32, i32, i32
  }
  func.func @transform_10(%arg0: i32) -> (i32, i32, i32) {
    %c0_i32 = arith.constant 0 : i32
    %c0_i32_0 = arith.constant 0 : i32
    %c0_i32_1 = arith.constant 0 : i32
    %c0_i32_2 = arith.constant 0 : i32
    return %c0_i32, %c0_i32_0, %c0_i32_1 : i32, i32, i32
  }
  func.func @transform_11(%arg0: i32) -> (i32, i32) {
    %c0_i32 = arith.constant 0 : i32
    %c0_i32_0 = arith.constant 0 : i32
    %c0_i32_1 = arith.constant 0 : i32
    return %c0_i32, %c0_i32_0 : i32, i32
  }
  func.func @transform_12(%arg0: i32) -> (i32, i32) {
    %c0_i32 = arith.constant 0 : i32
    %c0_i32_0 = arith.constant 0 : i32
    %c0_i32_1 = arith.constant 0 : i32
    return %c0_i32, %c0_i32_0 : i32, i32
  }
  func.func @transform_13(%arg0: i32) -> (i32, i32, i32) {
    %c0_i32 = arith.constant 0 : i32
    %c0_i32_0 = arith.constant 0 : i32
    %c0_i32_1 = arith.constant 0 : i32
    %c0_i32_2 = arith.constant 0 : i32
    return %c0_i32, %c0_i32_0, %c0_i32_1 : i32, i32, i32
  }
  func.func @transform_14(%arg0: i32) -> (i32, i32, i32) {
    %c0_i32 = arith.constant 0 : i32
    %c0_i32_0 = arith.constant 0 : i32
    %c0_i32_1 = arith.constant 0 : i32
    %c0_i32_2 = arith.constant 0 : i32
    return %c0_i32, %c0_i32_0, %c0_i32_1 : i32, i32, i32
  }
  func.func @transform_15(%arg0: i32) -> (i32, i32) {
    %c0_i32 = arith.constant 0 : i32
    %c0_i32_0 = arith.constant 0 : i32
    %c0_i32_1 = arith.constant 0 : i32
    return %c0_i32, %c0_i32_0 : i32, i32
  }
  func.func @transform_16(%arg0: i32) -> (i32, i32) {
    %c0_i32 = arith.constant 0 : i32
    %c0_i32_0 = arith.constant 0 : i32
    %c0_i32_1 = arith.constant 0 : i32
    return %c0_i32, %c0_i32_0 : i32, i32
  }
  func.func @transform_17(%arg0: i32) -> (i32, i32) {
    %c0_i32 = arith.constant 0 : i32
    %c0_i32_0 = arith.constant 0 : i32
    return %arg0, %c0_i32 : i32, i32
  }
}

</mosaic_0001>

<bundles_post_ra>
// kernel: tpu_custom_call.1
= control target key start
LH: loop header
LB: loop body
LE: loop exit
PB: predicated region body
PF: predicated region fallthrough
CT: control target
= control target key end

     0   :  { %s6150_s0 = inlined_call_operand.hbm [shape: f32[16,128], index: 0, kind: input, shape index: {}]   ;;  %s6151_s1 = inlined_call_operand.hbm [shape: f32[128,512], index: 1, kind: input, shape index: {}]   ;;  %s6152_s2 = inlined_call_operand.hbm [shape: f32[1,512], index: 2, kind: input, shape index: {}]   ;;  %s6153_s3 = inlined_call_operand.hbm [shape: f32[3,512,512], index: 3, kind: input, shape index: {}]   ;;  %s6154_s4 = inlined_call_operand.hbm [shape: f32[3,1,512], index: 4, kind: input, shape index: {}]   ;;  %s6155_s5 = inlined_call_operand.hbm [shape: f32[512,128], index: 5, kind: input, shape index: {}]   ;;  %s6156_s6 = inlined_call_operand.hbm [shape: f32[1,128], index: 6, kind: input, shape index: {}]   ;;  %s6157_s7 = inlined_call_operand.hbm [shape: f32[5,50], index: 7, kind: input, shape index: {}]   ;;  %s6158_s8 = inlined_call_operand.hbm [shape: f32[1,50], index: 8, kind: input, shape index: {}]   ;;  %s6159_s9 = inlined_call_operand.vmem [shape: f32[4,50,50], index: 9, kind: input, shape index: {}]   ;;  %s6160_s10 = inlined_call_operand.hbm [shape: f32[4,1,50], index: 10, kind: input, shape index: {}]   ;;  %s6161_s11 = inlined_call_operand.hbm [shape: f32[1,50], index: 11, kind: input, shape index: {}]   ;;  %s6162_s12 = inlined_call_operand.hbm [shape: f32[1,50], index: 12, kind: input, shape index: {}]   ;;  %s6163_s13 = inlined_call_operand.hbm [shape: f32[5,50,50], index: 13, kind: input, shape index: {}]   ;;  %s6164_s14 = inlined_call_operand.hbm [shape: f32[5,1,50], index: 14, kind: input, shape index: {}]   ;;  %s6165_s15 = inlined_call_operand.hbm [shape: f32[50,128], index: 15, kind: input, shape index: {}]   ;;  %s6166_s16 = inlined_call_operand.hbm [shape: f32[1,128], index: 16, kind: input, shape index: {}]   ;;  %s6167_s17 = inlined_call_operand.hbm [shape: f32[16,128], index: 17, kind: output, shape index: {}]  }
   0x1   :  { %6171 = sst [smem:[#allocation39_spill]] %s6150_s0 }
   0x2   :  { %6172 = sst [smem:[#allocation40_spill]] %s6151_s1 }
   0x3   :  { %6173 = sst [smem:[#allocation41_spill]] %s6167_s17 }
   0x4   :  { %22 = vsyncpa [#allocation3], 0 }
   0x5   :  { %23 = vsyncpa [#allocation6], 0 }
   0x6   :  { %24 = vsyncpa [#allocation9], 0 }
   0x7   :  { %25 = vsyncpa [#allocation12], 0 }
   0x8   :  { %26 = vsyncpa [#allocation15], 0 }
   0x9   :  { %27 = vsyncpa [#allocation18], 0 }
   0xa   :  { %28 = vsyncpa [#allocation21], 0 }
   0xb   :  { %29 = vsyncpa [#allocation24], 0 }
   0xc   :  { %30 = vsyncpa [#allocation27], 0 }
   0xd   :  { %31 = vsyncpa [#allocation4], 0  ;;  %s5555_s24 = smov [#allocation5]   ;;  %s6174_s28 = sld [smem:[#allocation40_spill]] }
   0xe   :  { %s49_s25 = sshll.u32 %s5555_s24, 4  ;;  %s50_s25 = int_to_ptr.vmem [resolvable:$true] %s49_s25 }
  0x13   :  { %s5161_s29 = scalar_lea.hbm %s6174_s28, 8192 }
  0x14   :  { %p5162_p0 = scmp.ne.s32.totalorder %s6174_s28, %s5161_s29  ;;  %p5165_p1 = scmp.lt.u32.totalorder %s5161_s29, %s6174_s28 }
  0x16   :  { %p5167_p2 = pnand %p5165_p1, %p5162_p0 }
  0x18   :  { %5170 = shalt.err (!%p5167_p2)
}
  0x19   :  { %s5171_s1 = scalar_lea.vmem %s50_s25, 8192  ;;  %p5176_p4 = scmp.lt.s32.totalorder %s50_s25, %s50_s25 }
  0x1a   :  { %p5172_p3 = scmp.ne.s32.totalorder %s50_s25, %s5171_s1  ;;  %p5177_p5 = scmp.lt.s32.totalorder %s5171_s1, %s5171_s1 }
  0x1c   :  { %p5178_p6 = por %p5177_p5, %p5176_p4 }
  0x1e   :  { %p5179_p7 = pnand %p5178_p6, %p5172_p3 }
  0x20   :  { %5182 = shalt.err (!%p5179_p7)
}
  0x21   :  { %s5556_s20 = smov 512   ;;  %s5557_s21 = smov 32  }
  0x22   :  { %55 = dma.hbm_to_vmem [thread:$0]  %s6174_s28, 8192, %s50_s25, [#allocation6], %s5556_s20, %s5556_s20, %s5557_s21  }
  0x23   :  { %s5558_s24 = smov [#allocation8]   ;;  %s5183_s0 = scalar_lea.hbm %s6153_s3, 98304 }
  0x24   :  { %s71_s26 = sshll.u32 %s5558_s24, 4  ;;  %p5184_p8 = scmp.ne.s32.totalorder %s6153_s3, %s5183_s0  ;;  %s72_s26 = int_to_ptr.vmem [resolvable:$true] %s71_s26 }
  0x25   :  { %p5187_p9 = scmp.lt.u32.totalorder %s5183_s0, %s6153_s3 }
  0x27   :  { %p5189_p10 = pnand %p5187_p9, %p5184_p8 }
  0x29   :  { %5192 = shalt.err (!%p5189_p10)
}
  0x2a   :  { %s5193_s17 = scalar_lea.vmem %s72_s26, 98304  ;;  %p5198_p12 = scmp.lt.s32.totalorder %s72_s26, %s72_s26 }
  0x2b   :  { %p5194_p11 = scmp.ne.s32.totalorder %s72_s26, %s5193_s17  ;;  %p5199_p13 = scmp.lt.s32.totalorder %s5193_s17, %s5193_s17 }
  0x2d   :  { %p5200_p0 = por %p5199_p13, %p5198_p12 }
  0x2f   :  { %p5201_p1 = pnand %p5200_p0, %p5194_p11 }
  0x31   :  { %5204 = shalt.err (!%p5201_p1)
}
  0x32   :  { %77 = dma.hbm_to_vmem [thread:$0]  %s6153_s3, 98304, %s72_s26, [#allocation9], %s5556_s20, %s5556_s20, %s5557_s21  }
  0x33   :  { %s5559_s22 = smov [#allocation11]   ;;  %s5560_s24 = smov [#allocation14]  }
  0x34   :  { %s95_s23 = sshll.u32 %s5559_s22, 4  ;;  %s118_s27 = sshll.u32 %s5560_s24, 4  ;;  %s96_s23 = int_to_ptr.vmem [resolvable:$true] %s95_s23  ;;  %s119_s27 = int_to_ptr.vmem [resolvable:$true] %s118_s27 }
  0x35   :  { %s5205_s30 = scalar_lea.hbm %s6155_s5, 8192 }
  0x36   :  { %p5206_p2 = scmp.ne.s32.totalorder %s6155_s5, %s5205_s30  ;;  %p5209_p3 = scmp.lt.u32.totalorder %s5205_s30, %s6155_s5 }
  0x38   :  { %p5211_p4 = pnand %p5209_p3, %p5206_p2 }
  0x3a   :  { %5214 = shalt.err (!%p5211_p4)
}
  0x3b   :  { %s5215_s3 = scalar_lea.vmem %s96_s23, 8192  ;;  %p5220_p6 = scmp.lt.s32.totalorder %s96_s23, %s96_s23 }
  0x3c   :  { %p5216_p5 = scmp.ne.s32.totalorder %s96_s23, %s5215_s3  ;;  %p5221_p7 = scmp.lt.s32.totalorder %s5215_s3, %s5215_s3 }
  0x3e   :  { %p5222_p8 = por %p5221_p7, %p5220_p6 }
  0x40   :  { %p5223_p9 = pnand %p5222_p8, %p5216_p5 }
  0x42   :  { %5226 = shalt.err (!%p5223_p9)
}
  0x43   :  { %s5561_s20 = smov 128   ;;  %s5562_s21 = smov 8  }
  0x44   :  { %101 = dma.hbm_to_vmem [thread:$0]  %s6155_s5, 8192, %s96_s23, [#allocation12], %s5561_s20, %s5561_s20, %s5562_s21  }
  0x45   :  { %s5227_s24 = scalar_lea.hbm %s6157_s7, 128 }
  0x46   :  { %p5228_p10 = scmp.ne.s32.totalorder %s6157_s7, %s5227_s24  ;;  %p5231_p11 = scmp.lt.u32.totalorder %s5227_s24, %s6157_s7 }
  0x48   :  { %p5233_p12 = pnand %p5231_p11, %p5228_p10 }
  0x4a   :  { %5236 = shalt.err (!%p5233_p12)
}
  0x4b   :  { %s5237_s19 = scalar_lea.vmem %s119_s27, 128  ;;  %p5242_p0 = scmp.lt.s32.totalorder %s119_s27, %s119_s27 }
  0x4c   :  { %p5238_p13 = scmp.ne.s32.totalorder %s119_s27, %s5237_s19  ;;  %p5243_p1 = scmp.lt.s32.totalorder %s5237_s19, %s5237_s19 }
  0x4e   :  { %p5244_p2 = por %p5243_p1, %p5242_p0 }
  0x50   :  { %p5245_p3 = pnand %p5244_p2, %p5238_p13 }
  0x52   :  { %5248 = shalt.err (!%p5245_p3)
}
  0x53   :  { %121 = dma.hbm_to_vmem [thread:$0]  %s6157_s7, 128, %s119_s27, [#allocation15]  }
  0x54   :  { %s5563_s17 = smov [#allocation17]   ;;  %s5249_s25 = scalar_lea.hbm %s6160_s10, 64 }
  0x55   :  { %s139_s1 = sshll.u32 %s5563_s17, 4  ;;  %p5250_p4 = scmp.ne.s32.totalorder %s6160_s10, %s5249_s25  ;;  %s140_s1 = int_to_ptr.vmem [resolvable:$true] %s139_s1 }
  0x56   :  { %p5253_p5 = scmp.lt.u32.totalorder %s5249_s25, %s6160_s10 }
  0x58   :  { %p5255_p6 = pnand %p5253_p5, %p5250_p4 }
  0x5a   :  { %5258 = shalt.err (!%p5255_p6)
}
  0x5b   :  { %s5259_s0 = scalar_lea.vmem %s140_s1, 64  ;;  %p5264_p8 = scmp.lt.s32.totalorder %s140_s1, %s140_s1 }
  0x5c   :  { %p5260_p7 = scmp.ne.s32.totalorder %s140_s1, %s5259_s0  ;;  %p5265_p9 = scmp.lt.s32.totalorder %s5259_s0, %s5259_s0 }
  0x5e   :  { %p5266_p10 = por %p5265_p9, %p5264_p8 }
  0x60   :  { %p5267_p11 = pnand %p5266_p10, %p5260_p7 }
  0x62   :  { %5270 = shalt.err (!%p5267_p11)
}
  0x63   :  { %s5564_s7 = smov 16   ;;  %s5565_s27 = smov 1  }
  0x64   :  { %145 = dma.hbm_to_vmem [thread:$0]  %s6160_s10, 64, %s140_s1, [#allocation18], %s5564_s7, %s5564_s7, %s5565_s27  }
  0x65   :  { %s5566_s19 = smov [#allocation20]   ;;  %s5567_s23 = smov [#allocation23]  }
  0x66   :  { %s162_s5 = sshll.u32 %s5566_s19, 4  ;;  %s183_s17 = sshll.u32 %s5567_s23, 4  ;;  %s163_s5 = int_to_ptr.vmem [resolvable:$true] %s162_s5  ;;  %s184_s17 = int_to_ptr.vmem [resolvable:$true] %s183_s17 }
  0x67   :  { %s5271_s25 = scalar_lea.hbm %s6162_s12, 16 }
  0x68   :  { %p5272_p12 = scmp.ne.s32.totalorder %s6162_s12, %s5271_s25  ;;  %p5275_p13 = scmp.lt.u32.totalorder %s5271_s25, %s6162_s12 }
  0x6a   :  { %p5277_p0 = pnand %p5275_p13, %p5272_p12 }
  0x6c   :  { %5280 = shalt.err (!%p5277_p0)
}
  0x6d   :  { %s5281_s10 = scalar_lea.vmem %s163_s5, 16  ;;  %s5285_s1 = scalar_lea.vmem %s163_s5, 32 }
  0x6e   :  { %p5282_p1 = scmp.ne.s32.totalorder %s163_s5, %s5281_s10  ;;  %p5286_p2 = scmp.lt.s32.totalorder %s163_s5, %s163_s5 }
  0x6f   :  { %p5287_p3 = scmp.lt.s32.totalorder %s5285_s1, %s5281_s10 }
  0x71   :  { %p5288_p4 = por %p5287_p3, %p5286_p2 }
  0x73   :  { %p5289_p5 = pnand %p5288_p4, %p5282_p1 }
  0x75   :  { %5292 = shalt.err (!%p5289_p5)
}
  0x76   :  { %165 = dma.hbm_to_vmem [thread:$0]  %s6162_s12, 16, %s163_s5, [#allocation21]  }
  0x77   :  { %s5293_s23 = scalar_lea.hbm %s6164_s14, 80 }
  0x78   :  { %p5294_p6 = scmp.ne.s32.totalorder %s6164_s14, %s5293_s23  ;;  %p5297_p7 = scmp.lt.u32.totalorder %s5293_s23, %s6164_s14 }
  0x7a   :  { %p5299_p8 = pnand %p5297_p7, %p5294_p6 }
  0x7c   :  { %5302 = shalt.err (!%p5299_p8)
}
  0x7d   :  { %s5303_s22 = scalar_lea.vmem %s184_s17, 80  ;;  %s5307_s24 = scalar_lea.vmem %s184_s17, 96 }
  0x7e   :  { %p5304_p9 = scmp.ne.s32.totalorder %s184_s17, %s5303_s22  ;;  %p5308_p10 = scmp.lt.s32.totalorder %s184_s17, %s184_s17 }
  0x7f   :  { %p5309_p11 = scmp.lt.s32.totalorder %s5307_s24, %s5303_s22 }
  0x81   :  { %p5310_p12 = por %p5309_p11, %p5308_p10 }
  0x83   :  { %p5311_p13 = pnand %p5310_p12, %p5304_p9 }
  0x85   :  { %5314 = shalt.err (!%p5311_p13)
}
  0x86   :  { %189 = dma.hbm_to_vmem [thread:$0]  %s6164_s14, 80, %s184_s17, [#allocation24], %s5564_s7, %s5564_s7, %s5565_s27  }
  0x87   :  { %s5568_s29 = smov [#allocation2]   ;;  %s5569_s1 = smov [#allocation7]  }
  0x88   :  { %s37_s10 = sshll.u32 %s5568_s29, 4  ;;  %s62_s0 = sshll.u32 %s5569_s1, 4  ;;  %s38_s10 = int_to_ptr.vmem [resolvable:$true] %s37_s10  ;;  %s63_s0 = int_to_ptr.vmem [resolvable:$true] %s62_s0 }
  0x89   :  { %s6175_s19 = sld [smem:[#allocation39_spill]] }
  0x8f   :  { %s5315_s23 = scalar_lea.hbm %s6175_s19, 256 }
  0x90   :  { %p5316_p0 = scmp.ne.s32.totalorder %s6175_s19, %s5315_s23  ;;  %p5319_p1 = scmp.lt.u32.totalorder %s5315_s23, %s6175_s19 }
  0x92   :  { %p5321_p2 = pnand %p5319_p1, %p5316_p0 }
  0x94   :  { %5324 = shalt.err (!%p5321_p2)
}
  0x95   :  { %s5325_s14 = scalar_lea.vmem %s38_s10, 256  ;;  %p5330_p4 = scmp.lt.s32.totalorder %s38_s10, %s38_s10 }
  0x96   :  { %p5326_p3 = scmp.ne.s32.totalorder %s38_s10, %s5325_s14  ;;  %p5331_p5 = scmp.lt.s32.totalorder %s5325_s14, %s5325_s14 }
  0x98   :  { %p5332_p6 = por %p5331_p5, %p5330_p4 }
  0x9a   :  { %p5333_p7 = pnand %p5332_p6, %p5326_p3 }
  0x9c   :  { %5336 = shalt.err (!%p5333_p7)
}
  0x9d   :  { %43 = dma.hbm_to_vmem [thread:$0]  %s6175_s19, 256, %s38_s10, [#allocation3], %s5561_s20, %s5561_s20, %s5562_s21  }
  0x9e   :  { %s5337_s24 = scalar_lea.hbm %s6152_s2, 64 }
  0x9f   :  { %p5338_p8 = scmp.ne.s32.totalorder %s6152_s2, %s5337_s24  ;;  %p5341_p9 = scmp.lt.u32.totalorder %s5337_s24, %s6152_s2 }
  0xa1   :  { %p5343_p10 = pnand %p5341_p9, %p5338_p8 }
  0xa3   :  { %5346 = shalt.err (!%p5343_p10)
}
  0xa4   :  { %s5347_s30 = scalar_lea.vmem %s63_s0, 64  ;;  %p5352_p12 = scmp.lt.s32.totalorder %s63_s0, %s63_s0 }
  0xa5   :  { %p5348_p11 = scmp.ne.s32.totalorder %s63_s0, %s5347_s30  ;;  %p5353_p13 = scmp.lt.s32.totalorder %s5347_s30, %s5347_s30 }
  0xa7   :  { %p5354_p0 = por %p5353_p13, %p5352_p12 }
  0xa9   :  { %p5355_p1 = pnand %p5354_p0, %p5348_p11 }
  0xab   :  { %5358 = shalt.err (!%p5355_p1)
}
  0xac   :  { %65 = dma.hbm_to_vmem [thread:$0]  %s6152_s2, 64, %s63_s0, [#allocation6]  }
  0xad   :  { %s5570_s19 = smov [#allocation10]   ;;  %s5359_s25 = scalar_lea.hbm %s6154_s4, 192 }
  0xae   :  { %s83_s23 = sshll.u32 %s5570_s19, 4  ;;  %p5360_p2 = scmp.ne.s32.totalorder %s6154_s4, %s5359_s25  ;;  %s84_s23 = int_to_ptr.vmem [resolvable:$true] %s83_s23 }
  0xaf   :  { %p5363_p3 = scmp.lt.u32.totalorder %s5359_s25, %s6154_s4 }
  0xb1   :  { %p5365_p4 = pnand %p5363_p3, %p5360_p2 }
  0xb3   :  { %5368 = shalt.err (!%p5365_p4)
}
  0xb4   :  { %s5369_s17 = scalar_lea.vmem %s84_s23, 192  ;;  %p5374_p6 = scmp.lt.s32.totalorder %s84_s23, %s84_s23 }
  0xb5   :  { %p5370_p5 = scmp.ne.s32.totalorder %s84_s23, %s5369_s17  ;;  %p5375_p7 = scmp.lt.s32.totalorder %s5369_s17, %s5369_s17 }
  0xb7   :  { %p5376_p8 = por %p5375_p7, %p5374_p6 }
  0xb9   :  { %p5377_p9 = pnand %p5376_p8, %p5370_p5 }
  0xbb   :  { %5380 = shalt.err (!%p5377_p9)
}
  0xbc   :  { %s5571_s2 = smov 64   ;;  %s5572_s0 = smov 4  }
  0xbd   :  { %89 = dma.hbm_to_vmem [thread:$0]  %s6154_s4, 192, %s84_s23, [#allocation9], %s5571_s2, %s5571_s2, %s5572_s0  }
  0xbe   :  { %s5573_s12 = smov [#allocation13]   ;;  %s5574_s29 = smov [#allocation16]  }
  0xbf   :  { %s108_s5 = sshll.u32 %s5573_s12, 4  ;;  %s128_s1 = sshll.u32 %s5574_s29, 4  ;;  %s109_s5 = int_to_ptr.vmem [resolvable:$true] %s108_s5  ;;  %s129_s1 = int_to_ptr.vmem [resolvable:$true] %s128_s1 }
  0xc0   :  { %s5381_s18 = scalar_lea.hbm %s6156_s6, 16 }
  0xc1   :  { %p5382_p10 = scmp.ne.s32.totalorder %s6156_s6, %s5381_s18  ;;  %p5385_p11 = scmp.lt.u32.totalorder %s5381_s18, %s6156_s6 }
  0xc3   :  { %p5387_p12 = pnand %p5385_p11, %p5382_p10 }
  0xc5   :  { %5390 = shalt.err (!%p5387_p12)
}
  0xc6   :  { %s5391_s4 = scalar_lea.vmem %s109_s5, 16  ;;  %s5395_s23 = scalar_lea.vmem %s109_s5, 32 }
  0xc7   :  { %p5392_p13 = scmp.ne.s32.totalorder %s109_s5, %s5391_s4  ;;  %p5396_p0 = scmp.lt.s32.totalorder %s109_s5, %s109_s5 }
  0xc8   :  { %p5397_p1 = scmp.lt.s32.totalorder %s5395_s23, %s5391_s4 }
  0xca   :  { %p5398_p2 = por %p5397_p1, %p5396_p0 }
  0xcc   :  { %p5399_p3 = pnand %p5398_p2, %p5392_p13 }
  0xce   :  { %5402 = shalt.err (!%p5399_p3)
}
  0xcf   :  { %111 = dma.hbm_to_vmem [thread:$0]  %s6156_s6, 16, %s109_s5, [#allocation12]  }
  0xd0   :  { %s5403_s17 = scalar_lea.hbm %s6158_s8, 16 }
  0xd1   :  { %p5404_p4 = scmp.ne.s32.totalorder %s6158_s8, %s5403_s17  ;;  %p5407_p5 = scmp.lt.u32.totalorder %s5403_s17, %s6158_s8 }
  0xd3   :  { %p5409_p6 = pnand %p5407_p5, %p5404_p4 }
  0xd5   :  { %5412 = shalt.err (!%p5409_p6)
}
  0xd6   :  { %s5413_s12 = scalar_lea.vmem %s129_s1, 16  ;;  %s5417_s29 = scalar_lea.vmem %s129_s1, 32 }
  0xd7   :  { %p5414_p7 = scmp.ne.s32.totalorder %s129_s1, %s5413_s12  ;;  %p5418_p8 = scmp.lt.s32.totalorder %s129_s1, %s129_s1 }
  0xd8   :  { %p5419_p9 = scmp.lt.s32.totalorder %s5417_s29, %s5413_s12 }
  0xda   :  { %p5420_p10 = por %p5419_p9, %p5418_p8 }
  0xdc   :  { %p5421_p11 = pnand %p5420_p10, %p5414_p7 }
  0xde   :  { %5424 = shalt.err (!%p5421_p11)
}
  0xdf   :  { %131 = dma.hbm_to_vmem [thread:$0]  %s6158_s8, 16, %s129_s1, [#allocation15]  }
  0xe0   :  { %s5575_s30 = smov [#allocation19]   ;;  %s5576_s18 = smov [#allocation22]  }
  0xe1   :  { %s152_s10 = sshll.u32 %s5575_s30, 4  ;;  %s171_s19 = sshll.u32 %s5576_s18, 4  ;;  %s153_s10 = int_to_ptr.vmem [resolvable:$true] %s152_s10  ;;  %s5832_s19 = int_to_ptr.vmem [resolvable:$true] %s171_s19 }
  0xe2   :  { %s5425_s25 = scalar_lea.hbm %s6161_s11, 16 }
  0xe3   :  { %p5426_p12 = scmp.ne.s32.totalorder %s6161_s11, %s5425_s25  ;;  %p5429_p13 = scmp.lt.u32.totalorder %s5425_s25, %s6161_s11 }
  0xe5   :  { %p5431_p0 = pnand %p5429_p13, %p5426_p12 }
  0xe7   :  { %5434 = shalt.err (!%p5431_p0)
}
  0xe8   :  { %s5435_s8 = scalar_lea.vmem %s153_s10, 16  ;;  %s5439_s1 = scalar_lea.vmem %s153_s10, 32 }
  0xe9   :  { %p5436_p1 = scmp.ne.s32.totalorder %s153_s10, %s5435_s8  ;;  %p5440_p2 = scmp.lt.s32.totalorder %s153_s10, %s153_s10 }
  0xea   :  { %p5441_p3 = scmp.lt.s32.totalorder %s5439_s1, %s5435_s8 }
  0xec   :  { %p5442_p4 = por %p5441_p3, %p5440_p2 }
  0xee   :  { %p5443_p5 = pnand %p5442_p4, %p5436_p1 }
  0xf0   :  { %5446 = shalt.err (!%p5443_p5)
}
  0xf1   :  { %155 = dma.hbm_to_vmem [thread:$0]  %s6161_s11, 16, %s153_s10, [#allocation18]  }
  0xf2   :  { %s5447_s0 = scalar_lea.hbm %s6163_s13, 4480 }
  0xf3   :  { %p5448_p6 = scmp.ne.s32.totalorder %s6163_s13, %s5447_s0  ;;  %p5451_p7 = scmp.lt.u32.totalorder %s5447_s0, %s6163_s13 }
  0xf5   :  { %p5453_p8 = pnand %p5451_p7, %p5448_p6 }
  0xf7   :  { %5456 = shalt.err (!%p5453_p8)
}
  0xf8   :  { %s5457_s6 = scalar_lea.vmem %s5832_s19, 4480  ;;  %p5462_p10 = scmp.lt.s32.totalorder %s5832_s19, %s5832_s19 }
  0xf9   :  { %p5458_p9 = scmp.ne.s32.totalorder %s5832_s19, %s5457_s6  ;;  %p5463_p11 = scmp.lt.s32.totalorder %s5457_s6, %s5457_s6 }
  0xfb   :  { %p5464_p12 = por %p5463_p11, %p5462_p10 }
  0xfd   :  { %p5465_p13 = pnand %p5464_p12, %p5458_p9 }
  0xff   :  { %5468 = shalt.err (!%p5465_p13)
}
 0x100   :  { %177 = dma.hbm_to_vmem [thread:$0]  %s6163_s13, 4480, %s5832_s19, [#allocation21], %s5561_s20, %s5561_s20, %s5562_s21  }
 0x101   :  { %s5577_s30 = smov [#allocation25]   ;;  %s5578_s18 = smov [#allocation26]  }
 0x102   :  { %s195_s10 = sshll.u32 %s5577_s30, 4  ;;  %s208_s3 = sshll.u32 %s5578_s18, 4  ;;  %s196_s10 = int_to_ptr.vmem [resolvable:$true] %s195_s10  ;;  %s209_s3 = int_to_ptr.vmem [resolvable:$true] %s208_s3 }
 0x103   :  { %s5469_s4 = scalar_lea.hbm %s6165_s15, 896 }
 0x104   :  { %p5470_p0 = scmp.ne.s32.totalorder %s6165_s15, %s5469_s4  ;;  %p5473_p1 = scmp.lt.u32.totalorder %s5469_s4, %s6165_s15 }
 0x106   :  { %p5475_p2 = pnand %p5473_p1, %p5470_p0 }
 0x108   :  { %5478 = shalt.err (!%p5475_p2)
}
 0x109   :  { %s5479_s13 = scalar_lea.vmem %s196_s10, 896  ;;  %p5484_p4 = scmp.lt.s32.totalorder %s196_s10, %s196_s10 }
 0x10a   :  { %p5480_p3 = scmp.ne.s32.totalorder %s196_s10, %s5479_s13  ;;  %p5485_p5 = scmp.lt.s32.totalorder %s5479_s13, %s5479_s13 }
 0x10c   :  { %p5486_p6 = por %p5485_p5, %p5484_p4 }
 0x10e   :  { %p5487_p7 = pnand %p5486_p6, %p5480_p3 }
 0x110   :  { %5490 = shalt.err (!%p5487_p7)
}
 0x111   :  { %201 = dma.hbm_to_vmem [thread:$0]  %s6165_s15, 896, %s196_s10, [#allocation24], %s5561_s20, %s5561_s20, %s5562_s21  }
 0x112   :  { %s5491_s17 = scalar_lea.hbm %s6166_s16, 16 }
 0x113   :  { %p5492_p8 = scmp.ne.s32.totalorder %s6166_s16, %s5491_s17  ;;  %p5495_p9 = scmp.lt.u32.totalorder %s5491_s17, %s6166_s16 }
 0x115   :  { %p5497_p10 = pnand %p5495_p9, %p5492_p8 }
 0x117   :  { %5500 = shalt.err (!%p5497_p10)
}
 0x118   :  { %s5501_s12 = scalar_lea.vmem %s209_s3, 16  ;;  %s5505_s29 = scalar_lea.vmem %s209_s3, 32 }
 0x119   :  { %p5502_p11 = scmp.ne.s32.totalorder %s209_s3, %s5501_s12  ;;  %p5506_p12 = scmp.lt.s32.totalorder %s209_s3, %s209_s3 }
 0x11a   :  { %p5507_p13 = scmp.lt.s32.totalorder %s5505_s29, %s5501_s12 }
 0x11c   :  { %p5508_p0 = por %p5507_p13, %p5506_p12 }
 0x11e   :  { %p5509_p1 = pnand %p5508_p0, %p5502_p11 }
 0x120   :  { %5512 = shalt.err (!%p5509_p1)
}
 0x121   :  { %211 = dma.hbm_to_vmem [thread:$0]  %s6166_s16, 16, %s209_s3, [#allocation27]  }
 0x122   :  { %5535 = dma.done.wait [#allocation3], 256  }
 0x123   :  { %5536 = vsyncadd [#allocation3], 4294967040 }
 0x124   :  { %5537 = dma.done.wait [#allocation6], 8256  }
 0x125   :  { %5538 = vsyncadd [#allocation6], 4294959040 }
 0x126   :  { %5539 = dma.done.wait [#allocation9], 98496  }
 0x127   :  { %5540 = vsyncadd [#allocation9], 4294868800 }
 0x128   :  { %5541 = dma.done.wait [#allocation12], 8208  }
 0x129   :  { %5542 = vsyncadd [#allocation12], 4294959088 }
 0x12a   :  { %5543 = dma.done.wait [#allocation15], 144  }
 0x12b   :  { %5544 = vsyncadd [#allocation15], 4294967152 }
 0x12c   :  { %5545 = dma.done.wait [#allocation18], 80  }
 0x12d   :  { %5546 = vsyncadd [#allocation18], 4294967216 }
 0x12e   :  { %5547 = dma.done.wait [#allocation21], 4496  }
 0x12f   :  { %5548 = vsyncadd [#allocation21], 4294962800 }
 0x130   :  { %5549 = dma.done.wait [#allocation24], 976  }
 0x131   :  { %5550 = vsyncadd [#allocation24], 4294966320 }
 0x132   :  { %5551 = dma.done.wait [#allocation27], 16  }
 0x133   :  { %5552 = vsyncadd [#allocation27], 4294967280  ;;  %v5579_v0 = vmov 0.0   ;;  %v263_v1 = vld [vmem:[#allocation5 + $0x8] sm:$0xff]  ;;  %v262_v3 = vld [vmem:[#allocation5] sm:$0xff]  ;;  %vm2533_vm0 = vcmask 1044480  }
 0x134   :  { %412 = vmatprep.mubr.f32.mxu0 %v5579_v0  ;;  %489 = vmatprep.mubr.f32.mxu1 %v5579_v0  ;;  %v267_v2 = vld [vmem:[#allocation5 + $0x28] sm:$0xff]  ;;  %v266_v5 = vld [vmem:[#allocation5 + $0x20] sm:$0xff]  ;;  %v265_v28 = vld [vmem:[#allocation5 + $0x18] sm:$0xff]  ;;  %vm5581_vm1 = vmmov 0   ;;  %vm2529_vm2 = vcmask 39936   ;;  %vm2626_vm3 = vcmask 1041408  }
 0x135   :  { %v4073_v4 = vpack.c.bf16 %v267_v2, %v263_v1  ;;  %v271_v6 = vld [vmem:[#allocation5 + $0x48] sm:$0xff]  ;;  %v4075_v8 = vpack.c.bf16 %v266_v5, %v262_v3  ;;  %v270_v10 = vld [vmem:[#allocation5 + $0x40] sm:$0xff]  ;;  %v269_v29 = vld [vmem:[#allocation5 + $0x38] sm:$0xff]  ;;  %vm2622_vm4 = vcmask 408576  }
 0x136   :  { %v275_v7 = vld [vmem:[#allocation5 + $0x68] sm:$0xff]  ;;  %v274_v11 = vld [vmem:[#allocation5 + $0x60] sm:$0xff]  ;;  %v264_v30 = vld [vmem:[#allocation5 + $0x10] sm:$0xff]  ;;  %v4105_v32 = vpack.c.bf16 %v269_v29, %v265_v28 }
 0x137   :  { %v4077_v9 = vpack.c.bf16 %v275_v7, %v271_v6  ;;  %v279_v12 = vld [vmem:[#allocation5 + $0x88] sm:$0xff]  ;;  %4074 = vmatprep.subr.bf16.mxu0 %v4073_v4  ;;  %v4079_v14 = vpack.c.bf16 %v274_v11, %v270_v10  ;;  %v278_v16 = vld [vmem:[#allocation5 + $0x80] sm:$0xff]  ;;  %v268_v33 = vld [vmem:[#allocation5 + $0x30] sm:$0xff] }
 0x138   :  { %v283_v13 = vld [vmem:[#allocation5 + $0xa8] sm:$0xff]  ;;  %4076 = vmatpush1.bf16.msra.mxu0 %v4075_v8  ;;  %v282_v17 = vld [vmem:[#allocation5 + $0xa0] sm:$0xff]  ;;  %v273_v34 = vld [vmem:[#allocation5 + $0x58] sm:$0xff]  ;;  %v4107_v37 = vpack.c.bf16 %v268_v33, %v264_v30  ;;  %4106 = vmatprep.subr.bf16.mxu1 %v4105_v32 }
 0x139   :  { %4078 = vmatprep.subr.bf16.mxu0 %v4077_v9  ;;  %v4081_v15 = vpack.c.bf16 %v283_v13, %v279_v12  ;;  %v287_v18 = vld [vmem:[#allocation5 + $0xc8] sm:$0xff]  ;;  %v4083_v20 = vpack.c.bf16 %v282_v17, %v278_v16  ;;  %v286_v22 = vld [vmem:[#allocation5 + $0xc0] sm:$0xff]  ;;  %v277_v35 = vld [vmem:[#allocation5 + $0x78] sm:$0xff] }
 0x13a   :  { %v291_v19 = vld [vmem:[#allocation5 + $0xe8] sm:$0xff]  ;;  %v290_v23 = vld [vmem:[#allocation5 + $0xe0] sm:$0xff]  ;;  %v4109_v38 = vpack.c.bf16 %v277_v35, %v273_v34  ;;  %v272_v39 = vld [vmem:[#allocation5 + $0x50] sm:$0xff]  ;;  %4108 = vmatpush1.bf16.msra.mxu1 %v4107_v37 }
 0x13b   :  { %v4085_v21 = vpack.c.bf16 %v291_v19, %v287_v18  ;;  %v295_v24 = vld [vmem:[#allocation5 + $0x108] sm:$0xff]  ;;  %v294_v26 = vld [vmem:[#allocation5 + $0x100] sm:$0xff]  ;;  %v4087_v31 = vpack.c.bf16 %v290_v23, %v286_v22  ;;  %v276_v40 = vld [vmem:[#allocation5 + $0x70] sm:$0xff] }
 0x13c   :  { %4080 = vmatpush1.bf16.msra.mxu0 %v4079_v14  ;;  %v299_v25 = vld [vmem:[#allocation5 + $0x128] sm:$0xff]  ;;  %v298_v27 = vld [vmem:[#allocation5 + $0x120] sm:$0xff]  ;;  %v281_v41 = vld [vmem:[#allocation5 + $0x98] sm:$0xff]  ;;  %v4111_v45 = vpack.c.bf16 %v276_v40, %v272_v39  ;;  %4110 = vmatprep.subr.bf16.mxu1 %v4109_v38 }
 0x13d   :  { %4082 = vmatprep.subr.bf16.mxu0 %v4081_v15  ;;  %v4089_v36 = vpack.c.bf16 %v299_v25, %v295_v24  ;;  %v303_v42 = vld [vmem:[#allocation5 + $0x148] sm:$0xff]  ;;  %v285_v44 = vld [vmem:[#allocation5 + $0xb8] sm:$0xff]  ;;  %v4091_v46 = vpack.c.bf16 %v298_v27, %v294_v26  ;;  %v302_v47 = vld [vmem:[#allocation5 + $0x140] sm:$0xff] }
 0x13e   :  { %v307_v43 = vld [vmem:[#allocation5 + $0x168] sm:$0xff]  ;;  %v4113_v48 = vpack.c.bf16 %v285_v44, %v281_v41  ;;  %v280_v49 = vld [vmem:[#allocation5 + $0x90] sm:$0xff]  ;;  %v306_v52 = vld [vmem:[#allocation5 + $0x160] sm:$0xff]  ;;  %4112 = vmatpush1.bf16.msra.mxu1 %v4111_v45 }
 0x13f   :  { %v284_v50 = vld [vmem:[#allocation5 + $0xb0] sm:$0xff]  ;;  %v4093_v51 = vpack.c.bf16 %v307_v43, %v303_v42  ;;  %v289_v53 = vld [vmem:[#allocation5 + $0xd8] sm:$0xff]  ;;  %v311_v55 = vld [vmem:[#allocation5 + $0x188] sm:$0xff]  ;;  %v4095_v58 = vpack.c.bf16 %v306_v52, %v302_v47 }
 0x140   :  { %4084 = vmatpush1.bf16.msra.mxu0 %v4083_v20  ;;  %v293_v54 = vld [vmem:[#allocation5 + $0xf8] sm:$0xff]  ;;  %v315_v56 = vld [vmem:[#allocation5 + $0x1a8] sm:$0xff]  ;;  %v4115_v57 = vpack.c.bf16 %v284_v50, %v280_v49  ;;  %v310_v59 = vld [vmem:[#allocation5 + $0x180] sm:$0xff]  ;;  %4114 = vmatprep.subr.bf16.mxu1 %v4113_v48 }
 0x141   :  { %4086 = vmatprep.subr.bf16.mxu0 %v4085_v21  ;;  %v4117_v60 = vpack.c.bf16 %v293_v54, %v289_v53  ;;  %v288_v61 = vld [vmem:[#allocation5 + $0xd0] sm:$0xff]  ;;  %v4097_v63 = vpack.c.bf16 %v315_v56, %v311_v55  ;;  %v314_v1 = vld [vmem:[#allocation5 + $0x1a0] sm:$0xff]  ;;  %v297_v2 = vld [vmem:[#allocation5 + $0x118] sm:$0xff] }
 0x142   :  { %v292_v62 = vld [vmem:[#allocation5 + $0xf0] sm:$0xff]  ;;  %v301_v3 = vld [vmem:[#allocation5 + $0x138] sm:$0xff]  ;;  %v319_v4 = vld [vmem:[#allocation5 + $0x1c8] sm:$0xff]  ;;  %4116 = vmatpush1.bf16.msra.mxu1 %v4115_v57  ;;  %v4099_v7 = vpack.c.bf16 %v314_v1, %v310_v59 }
 0x143   :  { %v323_v5 = vld [vmem:[#allocation5 + $0x1e8] sm:$0xff]  ;;  %v4119_v6 = vpack.c.bf16 %v292_v62, %v288_v61  ;;  %v318_v8 = vld [vmem:[#allocation5 + $0x1c0] sm:$0xff]  ;;  %4118 = vmatprep.subr.bf16.mxu1 %v4117_v60  ;;  %v4121_v9 = vpack.c.bf16 %v301_v3, %v297_v2  ;;  %v296_v10 = vld [vmem:[#allocation5 + $0x110] sm:$0xff] }
 0x144   :  { %4088 = vmatpush1.bf16.msra.mxu0 %v4087_v31  ;;  %v300_v11 = vld [vmem:[#allocation5 + $0x130] sm:$0xff]  ;;  %v4101_v12 = vpack.c.bf16 %v323_v5, %v319_v4  ;;  %v322_v13 = vld [vmem:[#allocation5 + $0x1e0] sm:$0xff]  ;;  %v305_v14 = vld [vmem:[#allocation5 + $0x158] sm:$0xff] }
 0x145   :  { %4090 = vmatprep.subr.bf16.mxu0 %v4089_v36  ;;  %v309_v15 = vld [vmem:[#allocation5 + $0x178] sm:$0xff]  ;;  %v511_v16 = vld [vmem:[#allocation8 + $0x8] sm:$0xff]  ;;  %v4123_v18 = vpack.c.bf16 %v300_v11, %v296_v10  ;;  %v4103_v19 = vpack.c.bf16 %v322_v13, %v318_v8  ;;  %v510_v26 = vld [vmem:[#allocation8] sm:$0xff] }
 0x146   :  { %v515_v17 = vld [vmem:[#allocation8 + $0x28] sm:$0xff]  ;;  %4120 = vmatpush1.bf16.msra.mxu1 %v4119_v6  ;;  %v4125_v20 = vpack.c.bf16 %v309_v15, %v305_v14  ;;  %v313_v23 = vld [vmem:[#allocation5 + $0x198] sm:$0xff]  ;;  %v514_v27 = vld [vmem:[#allocation8 + $0x20] sm:$0xff] }
 0x147   :  { %4122 = vmatprep.subr.bf16.mxu1 %v4121_v9  ;;  %v304_v21 = vld [vmem:[#allocation5 + $0x150] sm:$0xff]  ;;  %v317_v24 = vld [vmem:[#allocation5 + $0x1b8] sm:$0xff]  ;;  %v4137_v25 = vpack.c.bf16 %v515_v17, %v511_v16  ;;  %v4139_v37 = vpack.c.bf16 %v514_v27, %v510_v26  ;;  %v518_v39 = vld [vmem:[#allocation8 + $0x40] sm:$0xff] }
 0x148   :  { %4092 = vmatpush1.bf16.msra.mxu0 %v4091_v46  ;;  %v308_v22 = vld [vmem:[#allocation5 + $0x170] sm:$0xff]  ;;  %v4129_v32 = vpack.c.bf16 %v317_v24, %v313_v23  ;;  %v321_v35 = vld [vmem:[#allocation5 + $0x1d8] sm:$0xff]  ;;  %v522_v40 = vld [vmem:[#allocation8 + $0x60] sm:$0xff] }
 0x149   :  { %4094 = vmatprep.subr.bf16.mxu0 %v4093_v51  ;;  %v4127_v28 = vpack.c.bf16 %v308_v22, %v304_v21  ;;  %v519_v29 = vld [vmem:[#allocation8 + $0x48] sm:$0xff]  ;;  %v325_v36 = vld [vmem:[#allocation5 + $0x1f8] sm:$0xff]  ;;  %v4143_v50 = vpack.c.bf16 %v522_v40, %v518_v39  ;;  %v526_v52 = vld [vmem:[#allocation8 + $0x80] sm:$0xff] }
 0x14a   :  { %4124 = vmatpush1.bf16.msra.mxu1 %v4123_v18  ;;  %v523_v30 = vld [vmem:[#allocation8 + $0x68] sm:$0xff]  ;;  %v261_v44 = vld [vmem:[#allocation2 + $0x8] sm:$0xff]  ;;  %v4133_v45 = vpack.c.bf16 %v325_v36, %v321_v35  ;;  %v530_v53 = vld [vmem:[#allocation8 + $0xa0] sm:$0xff] }
 0x14b   :  { %v260_v31 = vld [vmem:[#allocation2] sm:$0xff]  ;;  %4126 = vmatprep.subr.bf16.mxu1 %v4125_v20  ;;  %v4141_v38 = vpack.c.bf16 %v523_v30, %v519_v29  ;;  %v513_v48 = vld [vmem:[#allocation8 + $0x18] sm:$0xff]  ;;  %v4147_v62 = vpack.c.bf16 %v530_v53, %v526_v52  ;;  %v534_v1 = vld [vmem:[#allocation8 + $0xc0] sm:$0xff] }
 0x14c   :  { %4096 = vmatpush1.bf16.msra.mxu0 %v4095_v58  ;;  %v312_v33 = vld [vmem:[#allocation5 + $0x190] sm:$0xff]  ;;  %v517_v49 = vld [vmem:[#allocation8 + $0x38] sm:$0xff]  ;;  %v538_v2 = vld [vmem:[#allocation8 + $0xe0] sm:$0xff] }
 0x14d   :  { %4098 = vmatprep.subr.bf16.mxu0 %v4097_v63  ;;  %v316_v34 = vld [vmem:[#allocation5 + $0x1b0] sm:$0xff]  ;;  %v4265_v57 = vpack.c.bf16 %v517_v49, %v513_v48  ;;  %v521_v60 = vld [vmem:[#allocation8 + $0x58] sm:$0xff]  ;;  %v4151_v11 = vpack.c.bf16 %v538_v2, %v534_v1  ;;  %v542_v13 = vld [vmem:[#allocation8 + $0x100] sm:$0xff] }
 0x14e   :  { %4128 = vmatpush1.bf16.msra.mxu1 %v4127_v28  ;;  %v4131_v41 = vpack.c.bf16 %v316_v34, %v312_v33  ;;  %v527_v42 = vld [vmem:[#allocation8 + $0x88] sm:$0xff]  ;;  %v512_v58 = vld [vmem:[#allocation8 + $0x10] sm:$0xff]  ;;  %v525_v61 = vld [vmem:[#allocation8 + $0x78] sm:$0xff] }
 0x14f   :  { %v531_v43 = vld [vmem:[#allocation8 + $0xa8] sm:$0xff]  ;;  %4130 = vmatprep.subr.bf16.mxu1 %v4129_v32  ;;  %v516_v59 = vld [vmem:[#allocation8 + $0x30] sm:$0xff]  ;;  %v4269_v6 = vpack.c.bf16 %v525_v61, %v521_v60  ;;  %v529_v9 = vld [vmem:[#allocation8 + $0x98] sm:$0xff] }
 0x150   :  { %4100 = vmatpush1.bf16.msra.mxu0 %v4099_v7  ;;  %v320_v46 = vld [vmem:[#allocation5 + $0x1d0] sm:$0xff]  ;;  %v4145_v51 = vpack.c.bf16 %v531_v43, %v527_v42  ;;  %v4267_v3 = vpack.c.bf16 %v516_v59, %v512_v58  ;;  %v533_v10 = vld [vmem:[#allocation8 + $0xb8] sm:$0xff]  ;;  %v546_v14 = vld [vmem:[#allocation8 + $0x120] sm:$0xff] }
 0x151   :  { %4102 = vmatprep.subr.bf16.mxu0 %v4101_v12  ;;  %v324_v47 = vld [vmem:[#allocation5 + $0x1f0] sm:$0xff]  ;;  %v4273_v18 = vpack.c.bf16 %v533_v10, %v529_v9  ;;  %v537_v21 = vld [vmem:[#allocation8 + $0xd8] sm:$0xff]  ;;  %v4155_v23 = vpack.c.bf16 %v546_v14, %v542_v13  ;;  %v554_v26 = vld [vmem:[#allocation8 + $0x160] sm:$0xff] }
 0x152   :  { %4132 = vmatpush1.bf16.msra.mxu1 %v4131_v41  ;;  %v4135_v54 = vpack.c.bf16 %v324_v47, %v320_v46  ;;  %v535_v55 = vld [vmem:[#allocation8 + $0xc8] sm:$0xff]  ;;  %v520_v7 = vld [vmem:[#allocation8 + $0x50] sm:$0xff]  ;;  %v541_v22 = vld [vmem:[#allocation8 + $0xf8] sm:$0xff] }
 0x153   :  { %v539_v56 = vld [vmem:[#allocation8 + $0xe8] sm:$0xff]  ;;  %4134 = vmatprep.subr.bf16.mxu1 %v4133_v45  ;;  %v524_v8 = vld [vmem:[#allocation8 + $0x70] sm:$0xff]  ;;  %v4277_v30 = vpack.c.bf16 %v541_v22, %v537_v21  ;;  %v545_v33 = vld [vmem:[#allocation8 + $0x118] sm:$0xff] }
 0x154   :  { %4104 = vmatpush1.bf16.msra.mxu0 %v4103_v19  ;;  %v4149_v63 = vpack.c.bf16 %v539_v56, %v535_v55  ;;  %v543_v4 = vld [vmem:[#allocation8 + $0x108] sm:$0xff]  ;;  %v4271_v15 = vpack.c.bf16 %v524_v8, %v520_v7  ;;  %v528_v19 = vld [vmem:[#allocation8 + $0x90] sm:$0xff]  ;;  %v549_v34 = vld [vmem:[#allocation8 + $0x138] sm:$0xff] }
 0x155   :  { %4138 = vmatprep.subr.bf16.mxu0 %v4137_v25  ;;  %v547_v5 = vld [vmem:[#allocation8 + $0x128] sm:$0xff]  ;;  %v532_v20 = vld [vmem:[#allocation8 + $0xb0] sm:$0xff]  ;;  %v550_v25 = vld [vmem:[#allocation8 + $0x140] sm:$0xff]  ;;  %v4281_v42 = vpack.c.bf16 %v549_v34, %v545_v33 }
 0x156   :  { %4136 = vmatpush1.bf16.msra.mxu1 %v4135_v54  ;;  %v4153_v12 = vpack.c.bf16 %v547_v5, %v543_v4  ;;  %v551_v16 = vld [vmem:[#allocation8 + $0x148] sm:$0xff]  ;;  %v4275_v27 = vpack.c.bf16 %v532_v20, %v528_v19  ;;  %v540_v32 = vld [vmem:[#allocation8 + $0xf0] sm:$0xff]  ;;  %v4159_v35 = vpack.c.bf16 %v554_v26, %v550_v25  ;;  %v553_v45 = vld [vmem:[#allocation8 + $0x158] sm:$0xff] }
 0x157   :  { %413 = vmatmul.mubr.f32.vlgmr.msra.gmra.mrb[0].mxu0 %v260_v31  ;;  %4266 = vmatprep.subr.bf16.mxu1 %v4265_v57  ;;  %v555_v17 = vld [vmem:[#allocation8 + $0x168] sm:$0xff]  ;;  %v544_v43 = vld [vmem:[#allocation8 + $0x110] sm:$0xff]  ;;  %v557_v46 = vld [vmem:[#allocation8 + $0x178] sm:$0xff] }
 0x158   :  { %418 = vmatprep.mubr.f32.mxu0 %v5579_v0  ;;  %4140 = vmatpush1.bf16.msra.mxu0 %v4139_v37  ;;  %v4157_v24 = vpack.c.bf16 %v555_v17, %v551_v16  ;;  %v559_v28 = vld [vmem:[#allocation8 + $0x188] sm:$0xff]  ;;  %v558_v37 = vld [vmem:[#allocation8 + $0x180] sm:$0xff]  ;;  %v4285_v54 = vpack.c.bf16 %v557_v46, %v553_v45  ;;  %v552_v55 = vld [vmem:[#allocation8 + $0x150] sm:$0xff] }
 0x159   :  { %4142 = vmatprep.subr.bf16.mxu0 %v4141_v38  ;;  %490 = vmatmul.mubr.f32.vlgmr.msra.gmra.mrb[0].mxu1 %v260_v31  ;;  %v563_v29 = vld [vmem:[#allocation8 + $0x1a8] sm:$0xff]  ;;  %v536_v31 = vld [vmem:[#allocation8 + $0xd0] sm:$0xff]  ;;  %v562_v38 = vld [vmem:[#allocation8 + $0x1a0] sm:$0xff] }
 0x15a   :  { %495 = vmatprep.mubr.f32.mxu1 %v5579_v0  ;;  %4268 = vmatpush1.bf16.msra.mxu1 %v4267_v3  ;;  %v4161_v36 = vpack.c.bf16 %v563_v29, %v559_v28  ;;  %v4279_v39 = vpack.c.bf16 %v540_v32, %v536_v31  ;;  %v567_v40 = vld [vmem:[#allocation8 + $0x1c8] sm:$0xff]  ;;  %v4163_v47 = vpack.c.bf16 %v562_v38, %v558_v37  ;;  %v566_v49 = vld [vmem:[#allocation8 + $0x1c0] sm:$0xff]  ;;  %v556_v56 = vld [vmem:[#allocation8 + $0x170] sm:$0xff] }
 0x15b   :  { %419 = vmatmul.mubr.f32.gmra.mrb[2].mxu0 %v261_v44  ;;  %4270 = vmatprep.subr.bf16.mxu1 %v4269_v6  ;;  %v571_v41 = vld [vmem:[#allocation8 + $0x1e8] sm:$0xff]  ;;  %v561_v57 = vld [vmem:[#allocation8 + $0x198] sm:$0xff]  ;;  %v574_v61 = vld [vmem:[#allocation8 + $0x200] sm:$0xff] }
 0x15c   :  { %4144 = vmatpush1.bf16.msra.mxu0 %v4143_v50  ;;  %v4165_v48 = vpack.c.bf16 %v571_v41, %v567_v40  ;;  %v570_v50 = vld [vmem:[#allocation8 + $0x1e0] sm:$0xff]  ;;  %v575_v52 = vld [vmem:[#allocation8 + $0x208] sm:$0xff]  ;;  %v565_v58 = vld [vmem:[#allocation8 + $0x1b8] sm:$0xff] }
 0x15d   :  { %4146 = vmatprep.subr.bf16.mxu0 %v4145_v51  ;;  %496 = vmatmul.mubr.f32.gmra.mrb[2].mxu1 %v261_v44  ;;  %v548_v44 = vld [vmem:[#allocation8 + $0x130] sm:$0xff]  ;;  %v579_v53 = vld [vmem:[#allocation8 + $0x228] sm:$0xff]  ;;  %v4167_v59 = vpack.c.bf16 %v570_v50, %v566_v49  ;;  %v4289_v3 = vpack.c.bf16 %v565_v58, %v561_v57  ;;  %v569_v6 = vld [vmem:[#allocation8 + $0x1d8] sm:$0xff] }
 0x15e   :  { %4272 = vmatpush1.bf16.msra.mxu1 %v4271_v15  ;;  %v4283_v51 = vpack.c.bf16 %v548_v44, %v544_v43  ;;  %v4169_v60 = vpack.c.bf16 %v579_v53, %v575_v52  ;;  %v583_v1 = vld [vmem:[#allocation8 + $0x248] sm:$0xff]  ;;  %v560_v4 = vld [vmem:[#allocation8 + $0x190] sm:$0xff]  ;;  %v573_v7 = vld [vmem:[#allocation8 + $0x1f8] sm:$0xff] }
 0x15f   :  { %4274 = vmatprep.subr.bf16.mxu1 %v4273_v18  ;;  %v587_v2 = vld [vmem:[#allocation8 + $0x268] sm:$0xff]  ;;  %v564_v5 = vld [vmem:[#allocation8 + $0x1b0] sm:$0xff]  ;;  %v582_v10 = vld [vmem:[#allocation8 + $0x240] sm:$0xff]  ;;  %v4293_v15 = vpack.c.bf16 %v573_v7, %v569_v6 }
 0x160   :  { %4148 = vmatpush1.bf16.msra.mxu0 %v4147_v62  ;;  %v578_v62 = vld [vmem:[#allocation8 + $0x220] sm:$0xff]  ;;  %v4173_v9 = vpack.c.bf16 %v587_v2, %v583_v1  ;;  %v591_v13 = vld [vmem:[#allocation8 + $0x288] sm:$0xff]  ;;  %v568_v16 = vld [vmem:[#allocation8 + $0x1d0] sm:$0xff] }
 0x161   :  { %4150 = vmatprep.subr.bf16.mxu0 %v4149_v63  ;;  %v4287_v63 = vpack.c.bf16 %v556_v56, %v552_v55  ;;  %v4171_v8 = vpack.c.bf16 %v578_v62, %v574_v61  ;;  %v595_v14 = vld [vmem:[#allocation8 + $0x2a8] sm:$0xff]  ;;  %v572_v17 = vld [vmem:[#allocation8 + $0x1f0] sm:$0xff]  ;;  %v577_v18 = vld [vmem:[#allocation8 + $0x218] sm:$0xff] }
 0x162   :  { %4276 = vmatpush1.bf16.msra.mxu1 %v4275_v27  ;;  %v581_v19 = vld [vmem:[#allocation8 + $0x238] sm:$0xff]  ;;  %v4177_v21 = vpack.c.bf16 %v595_v14, %v591_v13  ;;  %v590_v22 = vld [vmem:[#allocation8 + $0x280] sm:$0xff]  ;;  %v599_v25 = vld [vmem:[#allocation8 + $0x2c8] sm:$0xff] }
 0x163   :  { %4278 = vmatprep.subr.bf16.mxu1 %v4277_v30  ;;  %v603_v26 = vld [vmem:[#allocation8 + $0x2e8] sm:$0xff]  ;;  %v4297_v27 = vpack.c.bf16 %v581_v19, %v577_v18  ;;  %v576_v28 = vld [vmem:[#allocation8 + $0x210] sm:$0xff]  ;;  %v585_v30 = vld [vmem:[#allocation8 + $0x258] sm:$0xff] }
 0x164   :  { %4152 = vmatpush1.bf16.msra.mxu0 %v4151_v11  ;;  %v586_v11 = vld [vmem:[#allocation8 + $0x260] sm:$0xff]  ;;  %v580_v29 = vld [vmem:[#allocation8 + $0x230] sm:$0xff]  ;;  %v589_v31 = vld [vmem:[#allocation8 + $0x278] sm:$0xff]  ;;  %v4181_v33 = vpack.c.bf16 %v603_v26, %v599_v25 }
 0x165   :  { %4154 = vmatprep.subr.bf16.mxu0 %v4153_v12  ;;  %v4291_v12 = vpack.c.bf16 %v564_v5, %v560_v4  ;;  %v4175_v20 = vpack.c.bf16 %v586_v11, %v582_v10  ;;  %v598_v34 = vld [vmem:[#allocation8 + $0x2c0] sm:$0xff]  ;;  %v607_v37 = vld [vmem:[#allocation8 + $0x308] sm:$0xff]  ;;  %v584_v40 = vld [vmem:[#allocation8 + $0x250] sm:$0xff] }
 0x166   :  { %4280 = vmatpush1.bf16.msra.mxu1 %v4279_v39  ;;  %v611_v38 = vld [vmem:[#allocation8 + $0x328] sm:$0xff]  ;;  %v4301_v39 = vpack.c.bf16 %v589_v31, %v585_v30  ;;  %v588_v41 = vld [vmem:[#allocation8 + $0x270] sm:$0xff]  ;;  %v597_v43 = vld [vmem:[#allocation8 + $0x2b8] sm:$0xff] }
 0x167   :  { %4282 = vmatprep.subr.bf16.mxu1 %v4281_v42  ;;  %v593_v42 = vld [vmem:[#allocation8 + $0x298] sm:$0xff]  ;;  %v4185_v45 = vpack.c.bf16 %v611_v38, %v607_v37  ;;  %v606_v46 = vld [vmem:[#allocation8 + $0x300] sm:$0xff]  ;;  %v615_v49 = vld [vmem:[#allocation8 + $0x348] sm:$0xff] }
 0x168   :  { %4156 = vmatpush1.bf16.msra.mxu0 %v4155_v23  ;;  %v594_v23 = vld [vmem:[#allocation8 + $0x2a0] sm:$0xff]  ;;  %v619_v50 = vld [vmem:[#allocation8 + $0x368] sm:$0xff]  ;;  %v592_v52 = vld [vmem:[#allocation8 + $0x290] sm:$0xff] }
 0x169   :  { %4158 = vmatprep.subr.bf16.mxu0 %v4157_v24  ;;  %v4295_v24 = vpack.c.bf16 %v572_v17, %v568_v16  ;;  %v4179_v32 = vpack.c.bf16 %v594_v23, %v590_v22  ;;  %v596_v53 = vld [vmem:[#allocation8 + $0x2b0] sm:$0xff]  ;;  %v605_v55 = vld [vmem:[#allocation8 + $0x2f8] sm:$0xff]  ;;  %v4189_v57 = vpack.c.bf16 %v619_v50, %v615_v49  ;;  %v614_v58 = vld [vmem:[#allocation8 + $0x340] sm:$0xff] }
 0x16a   :  { %4284 = vmatpush1.bf16.msra.mxu1 %v4283_v51  ;;  %v4305_v51 = vpack.c.bf16 %v597_v43, %v593_v42  ;;  %v623_v61 = vld [vmem:[#allocation8 + $0x388] sm:$0xff]  ;;  %v600_v1 = vld [vmem:[#allocation8 + $0x2d0] sm:$0xff]  ;;  %v613_v4 = vld [vmem:[#allocation8 + $0x338] sm:$0xff] }
 0x16b   :  { %4286 = vmatprep.subr.bf16.mxu1 %v4285_v54  ;;  %v601_v54 = vld [vmem:[#allocation8 + $0x2d8] sm:$0xff]  ;;  %v627_v62 = vld [vmem:[#allocation8 + $0x3a8] sm:$0xff]  ;;  %v604_v2 = vld [vmem:[#allocation8 + $0x2f0] sm:$0xff] }
 0x16c   :  { %4160 = vmatpush1.bf16.msra.mxu0 %v4159_v35  ;;  %v602_v35 = vld [vmem:[#allocation8 + $0x2e0] sm:$0xff]  ;;  %v4193_v6 = vpack.c.bf16 %v627_v62, %v623_v61  ;;  %v608_v11 = vld [vmem:[#allocation8 + $0x310] sm:$0xff]  ;;  %v617_v13 = vld [vmem:[#allocation8 + $0x358] sm:$0xff] }
 0x16d   :  { %4162 = vmatprep.subr.bf16.mxu0 %v4161_v36  ;;  %v4299_v36 = vpack.c.bf16 %v580_v29, %v576_v28  ;;  %v4183_v44 = vpack.c.bf16 %v602_v35, %v598_v34  ;;  %v622_v7 = vld [vmem:[#allocation8 + $0x380] sm:$0xff]  ;;  %v621_v14 = vld [vmem:[#allocation8 + $0x378] sm:$0xff]  ;;  %v616_v18 = vld [vmem:[#allocation8 + $0x350] sm:$0xff] }
 0x16e   :  { %4288 = vmatpush1.bf16.msra.mxu1 %v4287_v63  ;;  %v4309_v63 = vpack.c.bf16 %v605_v55, %v601_v54  ;;  %v4317_v17 = vpack.c.bf16 %v621_v14, %v617_v13  ;;  %v620_v19 = vld [vmem:[#allocation8 + $0x370] sm:$0xff]  ;;  %v635_v28 = vld [vmem:[#allocation8 + $0x3e8] sm:$0xff]  ;;  %v633_v29 = vld [vmem:[#allocation8 + $0x3d8] sm:$0xff] }
 0x16f   :  { %4290 = vmatprep.subr.bf16.mxu1 %v4289_v3  ;;  %v609_v3 = vld [vmem:[#allocation8 + $0x318] sm:$0xff]  ;;  %v4319_v22 = vpack.c.bf16 %v620_v19, %v616_v18  ;;  %v628_v25 = vld [vmem:[#allocation8 + $0x3b0] sm:$0xff]  ;;  %v642_v54 = vld [vmem:[#allocation8 + $0x420] sm:$0xff] }
 0x170   :  { %4164 = vmatpush1.bf16.msra.mxu0 %v4163_v47  ;;  %v610_v47 = vld [vmem:[#allocation8 + $0x320] sm:$0xff]  ;;  %v4313_v10 = vpack.c.bf16 %v613_v4, %v609_v3  ;;  %v637_v31 = vld [vmem:[#allocation8 + $0x3f8] sm:$0xff]  ;;  %v636_v37 = vld [vmem:[#allocation8 + $0x3f0] sm:$0xff] }
 0x171   :  { %4166 = vmatprep.subr.bf16.mxu0 %v4165_v48  ;;  %v4303_v48 = vpack.c.bf16 %v588_v41, %v584_v40  ;;  %v4187_v56 = vpack.c.bf16 %v610_v47, %v606_v46  ;;  %v4325_v34 = vpack.c.bf16 %v637_v31, %v633_v29  ;;  %v643_v40 = vld [vmem:[#allocation8 + $0x428] sm:$0xff]  ;;  %v641_v41 = vld [vmem:[#allocation8 + $0x418] sm:$0xff]  ;;  %v640_v55 = vld [vmem:[#allocation8 + $0x410] sm:$0xff] }
 0x172   :  { %4292 = vmatpush1.bf16.msra.mxu1 %v4291_v12  ;;  %v612_v12 = vld [vmem:[#allocation8 + $0x330] sm:$0xff]  ;;  %v645_v43 = vld [vmem:[#allocation8 + $0x438] sm:$0xff] }
 0x173   :  { %4294 = vmatprep.subr.bf16.mxu1 %v4293_v15  ;;  %v4315_v16 = vpack.c.bf16 %v612_v12, %v608_v11  ;;  %v649_v62 = vld [vmem:[#allocation8 + $0x458] sm:$0xff]  ;;  %v652_v11 = vld [vmem:[#allocation8 + $0x470] sm:$0xff]  ;;  %v655_v12 = vld [vmem:[#allocation8 + $0x488] sm:$0xff] }
 0x174   :  { %4168 = vmatpush1.bf16.msra.mxu0 %v4167_v59  ;;  %v618_v59 = vld [vmem:[#allocation8 + $0x360] sm:$0xff]  ;;  %v661_v18 = vld [vmem:[#allocation8 + $0x4b8] sm:$0xff]  ;;  %v660_v29 = vld [vmem:[#allocation8 + $0x4b0] sm:$0xff] }
 0x175   :  { %4170 = vmatprep.subr.bf16.mxu0 %v4169_v60  ;;  %v4307_v60 = vpack.c.bf16 %v596_v53, %v592_v52  ;;  %v4191_v5 = vpack.c.bf16 %v618_v59, %v614_v58  ;;  %v638_v53 = vld [vmem:[#allocation8 + $0x400] sm:$0xff]  ;;  %v644_v58 = vld [vmem:[#allocation8 + $0x430] sm:$0xff]  ;;  %v647_v59 = vld [vmem:[#allocation8 + $0x448] sm:$0xff] }
 0x176   :  { %4296 = vmatpush1.bf16.msra.mxu1 %v4295_v24  ;;  %v624_v24 = vld [vmem:[#allocation8 + $0x390] sm:$0xff]  ;;  %v4331_v3 = vpack.c.bf16 %v644_v58, %v640_v55  ;;  %v670_v58 = vld [vmem:[#allocation8 + $0x500] sm:$0xff] }
 0x177   :  { %4298 = vmatprep.subr.bf16.mxu1 %v4297_v27  ;;  %v4323_v26 = vpack.c.bf16 %v628_v25, %v624_v24  ;;  %v631_v27 = vld [vmem:[#allocation8 + $0x3c8] sm:$0xff]  ;;  %v658_v24 = vld [vmem:[#allocation8 + $0x4a0] sm:$0xff] }
 0x178   :  { %4172 = vmatpush1.bf16.msra.mxu0 %v4171_v8  ;;  %v626_v8 = vld [vmem:[#allocation8 + $0x3a0] sm:$0xff]  ;;  %v4197_v30 = vpack.c.bf16 %v635_v28, %v631_v27  ;;  %v656_v28 = vld [vmem:[#allocation8 + $0x490] sm:$0xff] }
 0x179   :  { %4174 = vmatprep.subr.bf16.mxu0 %v4173_v9  ;;  %v4311_v9 = vpack.c.bf16 %v604_v2, %v600_v1  ;;  %v4195_v15 = vpack.c.bf16 %v626_v8, %v622_v7  ;;  %v4203_v2 = vpack.c.bf16 %v642_v54, %v638_v53  ;;  %v677_v53 = vld [vmem:[#allocation8 + $0x538] sm:$0xff] }
 0x17a   :  { %4300 = vmatpush1.bf16.msra.mxu1 %v4299_v36  ;;  %v632_v36 = vld [vmem:[#allocation8 + $0x3d0] sm:$0xff] }
 0x17b   :  { %4302 = vmatprep.subr.bf16.mxu1 %v4301_v39  ;;  %v4327_v38 = vpack.c.bf16 %v636_v37, %v632_v36  ;;  %v639_v39 = vld [vmem:[#allocation8 + $0x408] sm:$0xff]  ;;  %v4339_v37 = vpack.c.bf16 %v660_v29, %v656_v28  ;;  %v697_v29 = vld [vmem:[#allocation8 + $0x5d8] sm:$0xff] }
 0x17c   :  { %4176 = vmatpush1.bf16.msra.mxu0 %v4175_v20  ;;  %v625_v20 = vld [vmem:[#allocation8 + $0x398] sm:$0xff]  ;;  %v4201_v42 = vpack.c.bf16 %v643_v40, %v639_v39  ;;  %v666_v39 = vld [vmem:[#allocation8 + $0x4e0] sm:$0xff]  ;;  %v699_v28 = vld [vmem:[#allocation8 + $0x5e8] sm:$0xff] }
 0x17d   :  { %4178 = vmatprep.subr.bf16.mxu0 %v4177_v21  ;;  %v629_v21 = vld [vmem:[#allocation8 + $0x3b8] sm:$0xff] }
 0x17e   :  { %4304 = vmatpush1.bf16.msra.mxu1 %v4303_v48  ;;  %v4321_v23 = vpack.c.bf16 %v629_v21, %v625_v20  ;;  %v5902_v48 = vld [vmem:[#allocation7] sm:$0xf] }
 0x17f   :  { %4306 = vmatprep.subr.bf16.mxu1 %v4305_v51 }
 0x180   :  { %4180 = vmatpush1.bf16.msra.mxu0 %v4179_v32  ;;  %v630_v32 = vld [vmem:[#allocation8 + $0x3c0] sm:$0xff] }
 0x181   :  { %4182 = vmatprep.subr.bf16.mxu0 %v4181_v33  ;;  %v634_v33 = vld [vmem:[#allocation8 + $0x3e0] sm:$0xff] }
 0x182   :  { %4308 = vmatpush1.bf16.msra.mxu1 %v4307_v60  ;;  %v4199_v35 = vpack.c.bf16 %v634_v33, %v630_v32  ;;  %v651_v60 = vld [vmem:[#allocation8 + $0x468] sm:$0xff]  ;;  %v665_v33 = vld [vmem:[#allocation8 + $0x4d8] sm:$0xff] }
 0x183   :  { %4310 = vmatprep.subr.bf16.mxu1 %v4309_v63  ;;  %v653_v63 = vld [vmem:[#allocation8 + $0x478] sm:$0xff]  ;;  %v4205_v4 = vpack.c.bf16 %v651_v60, %v647_v59  ;;  %v667_v32 = vld [vmem:[#allocation8 + $0x4e8] sm:$0xff]  ;;  %v674_v59 = vld [vmem:[#allocation8 + $0x520] sm:$0xff] }
 0x184   :  { %4184 = vmatpush1.bf16.msra.mxu0 %v4183_v44  ;;  %v4329_v44 = vpack.c.bf16 %v645_v43, %v641_v41  ;;  %v664_v43 = vld [vmem:[#allocation8 + $0x4d0] sm:$0xff] }
 0x185   :  { %4186 = vmatprep.subr.bf16.mxu0 %v4185_v45  ;;  %v328_v45 = vlaneseq }
 0x186   :  { %4312 = vmatpush1.bf16.msra.mxu1 %v4311_v9  ;;  %v4333_v9 = vpack.c.bf16 %v653_v63, %v649_v62  ;;  %v672_v63 = vld [vmem:[#allocation8 + $0x510] sm:$0xff] }
 0x187   :  { %4314 = vmatprep.subr.bf16.mxu1 %v4313_v10  ;;  %v5897_v46 = vshrl.u32 %v328_v45, 7  ;;  %v648_v10 = vld [vmem:[#allocation8 + $0x450] sm:$0xff]  ;;  %v671_v45 = vld [vmem:[#allocation8 + $0x508] sm:$0xff] }
 0x188   :  { %4188 = vmatpush1.bf16.msra.mxu0 %v4187_v56 }
 0x189   :  { %4190 = vmatprep.subr.bf16.mxu0 %v4189_v57  ;;  %v5900_v47 = vsub.s32 0, %v5897_v46  ;;  %v5905_v49 = vsub.s32 1, %v5897_v46 }
 0x18a   :  { %4316 = vmatpush1.bf16.msra.mxu1 %v4315_v16  ;;  %v659_v16 = vld [vmem:[#allocation8 + $0x4a8] sm:$0xff] }
 0x18b   :  { %4318 = vmatprep.subr.bf16.mxu1 %v4317_v17  ;;  %v331_v50 = vrot.slane %v5902_v48, %v5900_v47  ;;  %v335_v51 = vrot.slane %v5902_v48, %v5905_v49  ;;  %v657_v17 = vld [vmem:[#allocation8 + $0x498] sm:$0xff] }
 0x18c   :  { %4192 = vmatpush1.bf16.msra.mxu0 %v4191_v5  ;;  %v646_v5 = vld [vmem:[#allocation8 + $0x440] sm:$0xff]  ;;  %v4337_v27 = vpack.c.bf16 %v661_v18, %v657_v17  ;;  %v689_v17 = vld [vmem:[#allocation8 + $0x598] sm:$0xff] }
 0x18d   :  { %4194 = vmatprep.subr.bf16.mxu0 %v4193_v6  ;;  %v650_v6 = vld [vmem:[#allocation8 + $0x460] sm:$0xff]  ;;  %v693_v18 = vld [vmem:[#allocation8 + $0x5b8] sm:$0xff] }
 0x18e   :  { %4320 = vmatpush1.bf16.msra.mxu1 %v4319_v22  ;;  %v4207_v21 = vpack.c.bf16 %v650_v6, %v646_v5  ;;  %v4335_v22 = vpack.c.bf16 %v652_v11, %v648_v10  ;;  %v685_v5 = vld [vmem:[#allocation8 + $0x578] sm:$0xff]  ;;  %v4219_v6 = vpack.c.bf16 %v674_v59, %v670_v58  ;;  %v711_v58 = vld [vmem:[#allocation8 + $0x648] sm:$0xff] }
 0x18f   :  { %4322 = vmatprep.subr.bf16.mxu1 %v4321_v23  ;;  %v654_v23 = vld [vmem:[#allocation8 + $0x480] sm:$0xff]  ;;  %v715_v59 = vld [vmem:[#allocation8 + $0x668] sm:$0xff] }
 0x190   :  { %4196 = vmatpush1.bf16.msra.mxu0 %v4195_v15  ;;  %v5912_v15 = vsub.s32 3, %v5897_v46  ;;  %v4211_v36 = vpack.c.bf16 %v658_v24, %v654_v23  ;;  %v4353_v24 = vpack.c.bf16 %v693_v18, %v689_v17 }
 0x191   :  { %4198 = vmatprep.subr.bf16.mxu0 %v4197_v30  ;;  %v663_v30 = vld [vmem:[#allocation8 + $0x4c8] sm:$0xff] }
 0x192   :  { %4324 = vmatpush1.bf16.msra.mxu1 %v4323_v26  ;;  %v4209_v26 = vpack.c.bf16 %v659_v16, %v655_v12  ;;  %v5916_v31 = vrot.slane %v5902_v48, %v5912_v15  ;;  %v4213_v41 = vpack.c.bf16 %v667_v32, %v663_v30  ;;  %v680_v12 = vld [vmem:[#allocation8 + $0x550] sm:$0xff]  ;;  %v691_v16 = vld [vmem:[#allocation8 + $0x5a8] sm:$0xff]  ;;  %v701_v30 = vld [vmem:[#allocation8 + $0x5f8] sm:$0xff] }
 0x193   :  { %4326 = vmatprep.subr.bf16.mxu1 %v4325_v34  ;;  %v669_v34 = vld [vmem:[#allocation8 + $0x4f8] sm:$0xff] }
 0x194   :  { %4200 = vmatpush1.bf16.msra.mxu0 %v4199_v35 }
 0x195   :  { %4202 = vmatprep.subr.bf16.mxu0 %v4201_v42  ;;  %v4341_v42 = vpack.c.bf16 %v669_v34, %v665_v33  ;;  %v694_v34 = vld [vmem:[#allocation8 + $0x5c0] sm:$0xff] }
 0x196   :  { %4328 = vmatpush1.bf16.msra.mxu1 %v4327_v38  ;;  %v662_v38 = vld [vmem:[#allocation8 + $0x4c0] sm:$0xff] }
 0x197   :  { %4330 = vmatprep.subr.bf16.mxu1 %v4329_v44  ;;  %v668_v44 = vld [vmem:[#allocation8 + $0x4f0] sm:$0xff] }
 0x22a   :  { %v414_v52 = vpop.f32.mrb[0].mxu0 }
 0x22b   :  { %v415_v56 = vadd.f32 %v414_v52, %v331_v50  ;;  %v416_v57 = vpop.f32.mrb[1].mxu0  ;;  %v673_v52 = vld [vmem:[#allocation8 + $0x518] sm:$0xff] }
 0x22c   :  { %v417_v61 = vadd.f32 %v416_v57, %v335_v51  ;;  %v5918_v35 = vpop.f32.mrb[0].mxu1  ;;  %v4343_v57 = vpack.c.bf16 %v668_v44, %v664_v43  ;;  %v4345_v62 = vpack.c.bf16 %v677_v53, %v673_v52  ;;  %v705_v43 = vld [vmem:[#allocation8 + $0x618] sm:$0xff]  ;;  %v706_v52 = vld [vmem:[#allocation8 + $0x620] sm:$0xff] }
 0x22d   :  { %v502_v8 = vmax.f32 %v415_v56, 0.0  ;;  %v493_v40 = vpop.f32.mrb[1].mxu1  ;;  %v4215_v56 = vpack.c.bf16 %v666_v39, %v662_v38  ;;  %v4357_v38 = vpack.c.bf16 %v701_v30, %v697_v29  ;;  %v696_v39 = vld [vmem:[#allocation8 + $0x5d0] sm:$0xff]  ;;  %v709_v44 = vld [vmem:[#allocation8 + $0x638] sm:$0xff] }
 0x22e   :  { %v503_v1 = vmax.f32 %v417_v61, 0.0  ;;  %v420_v7 = vpop.f32.mrb[2].mxu0 }
 0x22f   :  { %v421_v13 = vadd.f32 %v420_v7, %v331_v50  ;;  %v422_v14 = vpop.f32.mrb[3].mxu0  ;;  %v494_v50 = vadd.f32 %v493_v40, %v5916_v31  ;;  %v700_v40 = vld [vmem:[#allocation8 + $0x5f0] sm:$0xff] }
 0x230   :  { %852 = vmatprep.mubr.f32.mxu0 %v503_v1  ;;  %1006 = vmatprep.mubr.f32.mxu1 %v503_v1  ;;  %v423_v19 = vadd.f32 %v422_v14, %v335_v51  ;;  %v675_v51 = vld [vmem:[#allocation8 + $0x528] sm:$0xff]  ;;  %v5921_v55 = vpop.f32.mrb[2].mxu1  ;;  %v676_v1 = vld [vmem:[#allocation8 + $0x530] sm:$0xff] }
 0x231   :  { %853 = vmatmul.mubr.f32.vlgmr.msra.gmra.mrb[4].mxu0 %v502_v8  ;;  %1007 = vmatmul.mubr.f32.vlgmr.msra.gmra.mrb[4].mxu1 %v502_v8  ;;  %v506_v20 = vmax.f32 %v421_v13, 0.0  ;;  %v505_v54 = vmax.f32 %v494_v50, 0.0  ;;  %v5923_v60 = vpop.f32.mrb[3].mxu1  ;;  %v4217_v61 = vpack.c.bf16 %v675_v51, %v671_v45  ;;  %v4347_v7 = vpack.c.bf16 %v676_v1, %v672_v63  ;;  %v678_v8 = vld [vmem:[#allocation8 + $0x540] sm:$0xff]  ;;  %v684_v13 = vld [vmem:[#allocation8 + $0x570] sm:$0xff]  ;;  %v687_v14 = vld [vmem:[#allocation8 + $0x588] sm:$0xff] }
 0x232   :  { %4204 = vmatpush1.bf16.msra.mxu0 %v4203_v2  ;;  %4332 = vmatpush1.bf16.msra.mxu1 %v4331_v3  ;;  %v507_v25 = vmax.f32 %v423_v19, 0.0  ;;  %v679_v2 = vld [vmem:[#allocation8 + $0x548] sm:$0xff]  ;;  %v4225_v23 = vpack.c.bf16 %v691_v16, %v687_v14  ;;  %v4359_v50 = vpack.c.bf16 %v700_v40, %v696_v39  ;;  %v702_v51 = vld [vmem:[#allocation8 + $0x600] sm:$0xff] }
 0x233   :  { %4206 = vmatprep.subr.bf16.mxu0 %v4205_v4  ;;  %4334 = vmatprep.subr.bf16.mxu1 %v4333_v9  ;;  %v683_v3 = vld [vmem:[#allocation8 + $0x568] sm:$0xff]  ;;  %v681_v4 = vld [vmem:[#allocation8 + $0x558] sm:$0xff]  ;;  %v682_v9 = vld [vmem:[#allocation8 + $0x560] sm:$0xff]  ;;  %v4235_v63 = vpack.c.bf16 %v706_v52, %v702_v51 }
 0x234   :  { %858 = vmatprep.mubr.f32.mxu0 %v507_v25  ;;  %1012 = vmatprep.mubr.f32.mxu1 %v507_v25  ;;  %v4221_v10 = vpack.c.bf16 %v683_v3, %v679_v2  ;;  %v4349_v11 = vpack.c.bf16 %v685_v5, %v681_v4  ;;  %v4223_v19 = vpack.c.bf16 %v682_v9, %v678_v8  ;;  %v688_v25 = vld [vmem:[#allocation8 + $0x590] sm:$0xff]  ;;  %v710_v2 = vld [vmem:[#allocation8 + $0x640] sm:$0xff]  ;;  %v719_v8 = vld [vmem:[#allocation8 + $0x688] sm:$0xff] }
 0x235   :  { %859 = vmatmul.mubr.f32.gmra.mrb[6].mxu0 %v506_v20  ;;  %1013 = vmatmul.mubr.f32.gmra.mrb[6].mxu1 %v506_v20  ;;  %v4351_v20 = vpack.c.bf16 %v684_v13, %v680_v12  ;;  %v714_v3 = vld [vmem:[#allocation8 + $0x660] sm:$0xff]  ;;  %v4237_v4 = vpack.c.bf16 %v715_v59, %v711_v58  ;;  %v723_v9 = vld [vmem:[#allocation8 + $0x6a8] sm:$0xff] }
 0x236   :  { %4208 = vmatpush1.bf16.msra.mxu0 %v4207_v21  ;;  %4336 = vmatpush1.bf16.msra.mxu1 %v4335_v22  ;;  %v686_v21 = vld [vmem:[#allocation8 + $0x580] sm:$0xff]  ;;  %v4239_v12 = vpack.c.bf16 %v714_v3, %v710_v2  ;;  %v4241_v17 = vpack.c.bf16 %v723_v9, %v719_v8  ;;  %v743_v51 = vld [vmem:[#allocation8 + $0x748] sm:$0xff] }
 0x237   :  { %4210 = vmatprep.subr.bf16.mxu0 %v4209_v26  ;;  %4338 = vmatprep.subr.bf16.mxu1 %v4337_v27  ;;  %v690_v22 = vld [vmem:[#allocation8 + $0x5a0] sm:$0xff]  ;;  %v692_v26 = vld [vmem:[#allocation8 + $0x5b0] sm:$0xff]  ;;  %v695_v27 = vld [vmem:[#allocation8 + $0x5c8] sm:$0xff] }
 0x238   :  { %929 = vmatprep.mubr.f32.mxu0 %v505_v54  ;;  %1083 = vmatprep.mubr.f32.mxu1 %v505_v54  ;;  %v4227_v32 = vpack.c.bf16 %v690_v22, %v686_v21  ;;  %v4355_v33 = vpack.c.bf16 %v692_v26, %v688_v25  ;;  %v4361_v54 = vpack.c.bf16 %v709_v44, %v705_v43  ;;  %v718_v14 = vld [vmem:[#allocation8 + $0x680] sm:$0xff]  ;;  %v727_v21 = vld [vmem:[#allocation8 + $0x6c8] sm:$0xff] }
 0x239   :  { %v722_v16 = vld [vmem:[#allocation8 + $0x6a0] sm:$0xff]  ;;  %v731_v22 = vld [vmem:[#allocation8 + $0x6e8] sm:$0xff] }
 0x23a   :  { %4212 = vmatpush1.bf16.msra.mxu0 %v4211_v36  ;;  %4340 = vmatpush1.bf16.msra.mxu1 %v4339_v37  ;;  %v698_v36 = vld [vmem:[#allocation8 + $0x5e0] sm:$0xff]  ;;  %v4229_v37 = vpack.c.bf16 %v699_v28, %v695_v27  ;;  %v4243_v25 = vpack.c.bf16 %v722_v16, %v718_v14  ;;  %v4245_v29 = vpack.c.bf16 %v731_v22, %v727_v21  ;;  %v747_v52 = vld [vmem:[#allocation8 + $0x768] sm:$0xff]  ;;  %v756_v14 = vld [vmem:[#allocation8 + $0x7b0] sm:$0xff] }
 0x23b   :  { %4214 = vmatprep.subr.bf16.mxu0 %v4213_v41  ;;  %4342 = vmatprep.subr.bf16.mxu1 %v4341_v42  ;;  %v703_v41 = vld [vmem:[#allocation8 + $0x608] sm:$0xff]  ;;  %v4231_v45 = vpack.c.bf16 %v698_v36, %v694_v34  ;;  %v726_v27 = vld [vmem:[#allocation8 + $0x6c0] sm:$0xff] }
 0x23c   :  { %v707_v42 = vld [vmem:[#allocation8 + $0x628] sm:$0xff]  ;;  %v730_v28 = vld [vmem:[#allocation8 + $0x6e0] sm:$0xff] }
 0x23d   :  { %v4233_v53 = vpack.c.bf16 %v707_v42, %v703_v41  ;;  %v735_v34 = vld [vmem:[#allocation8 + $0x708] sm:$0xff]  ;;  %v4247_v39 = vpack.c.bf16 %v730_v28, %v726_v27  ;;  %v734_v41 = vld [vmem:[#allocation8 + $0x700] sm:$0xff]  ;;  %v764_v27 = vld [vmem:[#allocation8 + $0x7f0] sm:$0xff] }
 0x23e   :  { %4216 = vmatpush1.bf16.msra.mxu0 %v4215_v56  ;;  %4344 = vmatpush1.bf16.msra.mxu1 %v4343_v57  ;;  %v704_v56 = vld [vmem:[#allocation8 + $0x610] sm:$0xff]  ;;  %v739_v36 = vld [vmem:[#allocation8 + $0x728] sm:$0xff]  ;;  %v738_v42 = vld [vmem:[#allocation8 + $0x720] sm:$0xff] }
 0x23f   :  { %4218 = vmatprep.subr.bf16.mxu0 %v4217_v61  ;;  %4346 = vmatprep.subr.bf16.mxu1 %v4345_v62  ;;  %v708_v57 = vld [vmem:[#allocation8 + $0x630] sm:$0xff]  ;;  %v713_v61 = vld [vmem:[#allocation8 + $0x658] sm:$0xff]  ;;  %v4249_v43 = vpack.c.bf16 %v739_v36, %v735_v34  ;;  %v742_v58 = vld [vmem:[#allocation8 + $0x740] sm:$0xff]  ;;  %v500_v36 = vadd.f32 %v5923_v60, %v5916_v31 }
 0x240   :  { %v717_v62 = vld [vmem:[#allocation8 + $0x678] sm:$0xff]  ;;  %v4363_v1 = vpack.c.bf16 %v708_v57, %v704_v56  ;;  %v4251_v56 = vpack.c.bf16 %v738_v42, %v734_v41  ;;  %v746_v59 = vld [vmem:[#allocation8 + $0x760] sm:$0xff]  ;;  %v751_v2 = vld [vmem:[#allocation8 + $0x788] sm:$0xff] }
 0x241   :  { %v4365_v5 = vpack.c.bf16 %v717_v62, %v713_v61  ;;  %v4253_v61 = vpack.c.bf16 %v747_v52, %v743_v51  ;;  %v755_v3 = vld [vmem:[#allocation8 + $0x7a8] sm:$0xff]  ;;  %v750_v8 = vld [vmem:[#allocation8 + $0x780] sm:$0xff]  ;;  %v1107_v41 = vld [vmem:[#allocation8 + $0x810] sm:$0xff]  ;;  %v509_v52 = vmax.f32 %v500_v36, 0.0 }
 0x242   :  { %4220 = vmatpush1.bf16.msra.mxu0 %v4219_v6  ;;  %4348 = vmatpush1.bf16.msra.mxu1 %v4347_v7  ;;  %v712_v6 = vld [vmem:[#allocation8 + $0x650] sm:$0xff]  ;;  %v754_v9 = vld [vmem:[#allocation8 + $0x7a0] sm:$0xff]  ;;  %v759_v16 = vld [vmem:[#allocation8 + $0x7c8] sm:$0xff] }
 0x243   :  { %4222 = vmatprep.subr.bf16.mxu0 %v4221_v10  ;;  %4350 = vmatprep.subr.bf16.mxu1 %v4349_v11  ;;  %v716_v7 = vld [vmem:[#allocation8 + $0x670] sm:$0xff]  ;;  %v721_v10 = vld [vmem:[#allocation8 + $0x698] sm:$0xff]  ;;  %v758_v22 = vld [vmem:[#allocation8 + $0x7c0] sm:$0xff] }
 0x244   :  { %v725_v11 = vld [vmem:[#allocation8 + $0x6b8] sm:$0xff]  ;;  %v4367_v13 = vpack.c.bf16 %v716_v7, %v712_v6  ;;  %v4255_v6 = vpack.c.bf16 %v746_v59, %v742_v58  ;;  %v1106_v28 = vld [vmem:[#allocation8 + $0x808] sm:$0xff]  ;;  %v1111_v42 = vld [vmem:[#allocation8 + $0x830] sm:$0xff] }
 0x245   :  { %v4369_v18 = vpack.c.bf16 %v725_v11, %v721_v10  ;;  %v5926_v10 = vsub.s32 2, %v5897_v46  ;;  %v4257_v11 = vpack.c.bf16 %v755_v3, %v751_v2  ;;  %v1120_v51 = vld [vmem:[#allocation8 + $0x878] sm:$0xff]  ;;  %v4523_v60 = vpack.c.bf16 %v1111_v42, %v1107_v41  ;;  %v1115_v58 = vld [vmem:[#allocation8 + $0x850] sm:$0xff]  ;;  %v1145_v42 = vld [vmem:[#allocation8 + $0x940] sm:$0xff] }
 0x246   :  { %4224 = vmatpush1.bf16.msra.mxu0 %v4223_v19  ;;  %4352 = vmatpush1.bf16.msra.mxu1 %v4351_v20  ;;  %v720_v19 = vld [vmem:[#allocation8 + $0x690] sm:$0xff] }
 0x247   :  { %4226 = vmatprep.subr.bf16.mxu0 %v4225_v23  ;;  %4354 = vmatprep.subr.bf16.mxu1 %v4353_v24  ;;  %v724_v20 = vld [vmem:[#allocation8 + $0x6b0] sm:$0xff]  ;;  %v729_v23 = vld [vmem:[#allocation8 + $0x6d8] sm:$0xff] }
 0x248   :  { %v733_v24 = vld [vmem:[#allocation8 + $0x6f8] sm:$0xff]  ;;  %v4371_v26 = vpack.c.bf16 %v724_v20, %v720_v19  ;;  %v4259_v20 = vpack.c.bf16 %v754_v9, %v750_v8  ;;  %v1119_v59 = vld [vmem:[#allocation8 + $0x870] sm:$0xff] }
 0x249   :  { %v4373_v30 = vpack.c.bf16 %v733_v24, %v729_v23  ;;  %v765_v19 = vld [vmem:[#allocation8 + $0x7f8] sm:$0xff]  ;;  %v762_v23 = vld [vmem:[#allocation8 + $0x7e0] sm:$0xff]  ;;  %v339_v24 = vrot.slane %v5902_v48, %v5926_v10  ;;  %v4527_v3 = vpack.c.bf16 %v1119_v59, %v1115_v58  ;;  %v1123_v8 = vld [vmem:[#allocation8 + $0x890] sm:$0xff] }
 0x24a   :  { %4228 = vmatpush1.bf16.msra.mxu0 %v4227_v32  ;;  %4356 = vmatpush1.bf16.msra.mxu1 %v4355_v33  ;;  %v728_v32 = vld [vmem:[#allocation8 + $0x6d0] sm:$0xff] }
 0x24b   :  { %4230 = vmatprep.subr.bf16.mxu0 %v4229_v37  ;;  %4358 = vmatprep.subr.bf16.mxu1 %v4357_v38  ;;  %v732_v33 = vld [vmem:[#allocation8 + $0x6f0] sm:$0xff]  ;;  %v737_v37 = vld [vmem:[#allocation8 + $0x718] sm:$0xff] }
 0x24c   :  { %v741_v38 = vld [vmem:[#allocation8 + $0x738] sm:$0xff]  ;;  %v4375_v40 = vpack.c.bf16 %v732_v33, %v728_v32  ;;  %v4263_v33 = vpack.c.bf16 %v762_v23, %v758_v22  ;;  %v1127_v9 = vld [vmem:[#allocation8 + $0x8b0] sm:$0xff] }
 0x24d   :  { %v4377_v44 = vpack.c.bf16 %v741_v38, %v737_v37  ;;  %v1112_v32 = vld [vmem:[#allocation8 + $0x838] sm:$0xff]  ;;  %v492_v37 = vadd.f32 %v5918_v35, %v339_v24  ;;  %v1131_v22 = vld [vmem:[#allocation8 + $0x8d0] sm:$0xff] }
 0x24e   :  { %4232 = vmatpush1.bf16.msra.mxu0 %v4231_v45  ;;  %4360 = vmatpush1.bf16.msra.mxu1 %v4359_v50  ;;  %v736_v45 = vld [vmem:[#allocation8 + $0x710] sm:$0xff] }
 0x24f   :  { %4234 = vmatprep.subr.bf16.mxu0 %v4233_v53  ;;  %4362 = vmatprep.subr.bf16.mxu1 %v4361_v54  ;;  %v740_v50 = vld [vmem:[#allocation8 + $0x730] sm:$0xff]  ;;  %v745_v53 = vld [vmem:[#allocation8 + $0x758] sm:$0xff]  ;;  %v504_v31 = vmax.f32 %v492_v37, 0.0  ;;  %v1146_v37 = vld [vmem:[#allocation8 + $0x948] sm:$0xff] }
 0x250   :  { %v749_v54 = vld [vmem:[#allocation8 + $0x778] sm:$0xff]  ;;  %v4379_v57 = vpack.c.bf16 %v740_v50, %v736_v45  ;;  %v1118_v45 = vld [vmem:[#allocation8 + $0x868] sm:$0xff]  ;;  %v1135_v23 = vld [vmem:[#allocation8 + $0x8f0] sm:$0xff] }
 0x251   :  { %v4381_v62 = vpack.c.bf16 %v749_v54, %v745_v53  ;;  %v1116_v50 = vld [vmem:[#allocation8 + $0x858] sm:$0xff]  ;;  %v1113_v53 = vld [vmem:[#allocation8 + $0x840] sm:$0xff]  ;;  %v1143_v36 = vld [vmem:[#allocation8 + $0x930] sm:$0xff] }
 0x252   :  { %4236 = vmatpush1.bf16.msra.mxu0 %v4235_v63  ;;  %4364 = vmatpush1.bf16.msra.mxu1 %v4363_v1  ;;  %v744_v63 = vld [vmem:[#allocation8 + $0x750] sm:$0xff]  ;;  %v1117_v54 = vld [vmem:[#allocation8 + $0x860] sm:$0xff] }
 0x253   :  { %4238 = vmatprep.subr.bf16.mxu0 %v4237_v4  ;;  %4366 = vmatprep.subr.bf16.mxu1 %v4365_v5  ;;  %v748_v1 = vld [vmem:[#allocation8 + $0x770] sm:$0xff]  ;;  %v753_v4 = vld [vmem:[#allocation8 + $0x798] sm:$0xff]  ;;  %v4399_v2 = vpack.c.bf16 %v1117_v54, %v1113_v53 }
 0x254   :  { %v757_v5 = vld [vmem:[#allocation8 + $0x7b8] sm:$0xff]  ;;  %v4383_v7 = vpack.c.bf16 %v748_v1, %v744_v63 }
 0x255   :  { %v1124_v63 = vld [vmem:[#allocation8 + $0x898] sm:$0xff] }
 0x256   :  { %4240 = vmatpush1.bf16.msra.mxu0 %v4239_v12  ;;  %4368 = vmatpush1.bf16.msra.mxu1 %v4367_v13  ;;  %v4385_v12 = vpack.c.bf16 %v757_v5, %v753_v4  ;;  %v752_v13 = vld [vmem:[#allocation8 + $0x790] sm:$0xff]  ;;  %v1128_v1 = vld [vmem:[#allocation8 + $0x8b8] sm:$0xff]  ;;  %v1121_v4 = vld [vmem:[#allocation8 + $0x880] sm:$0xff] }
 0x257   :  { %4242 = vmatprep.subr.bf16.mxu0 %v4241_v17  ;;  %4370 = vmatprep.subr.bf16.mxu1 %v4369_v18  ;;  %v763_v17 = vld [vmem:[#allocation8 + $0x7e8] sm:$0xff]  ;;  %v761_v18 = vld [vmem:[#allocation8 + $0x7d8] sm:$0xff]  ;;  %v4387_v21 = vpack.c.bf16 %v756_v14, %v752_v13  ;;  %v1125_v5 = vld [vmem:[#allocation8 + $0x8a0] sm:$0xff] }
 0x258   :  { %v4261_v46 = vpack.c.bf16 %v763_v17, %v759_v16  ;;  %v1132_v13 = vld [vmem:[#allocation8 + $0x8d8] sm:$0xff]  ;;  %v4403_v16 = vpack.c.bf16 %v1125_v5, %v1121_v4  ;;  %v4531_v17 = vpack.c.bf16 %v1127_v9, %v1123_v8  ;;  %v1161_v5 = vld [vmem:[#allocation8 + $0x9c0] sm:$0xff]  ;;  %v1163_v9 = vld [vmem:[#allocation8 + $0x9d0] sm:$0xff] }
 0x259   :  { %v1136_v14 = vld [vmem:[#allocation8 + $0x8f8] sm:$0xff] }
 0x25a   :  { %4244 = vmatpush1.bf16.msra.mxu0 %v4243_v25  ;;  %4372 = vmatpush1.bf16.msra.mxu1 %v4371_v26  ;;  %v4389_v25 = vpack.c.bf16 %v765_v19, %v761_v18  ;;  %v760_v26 = vld [vmem:[#allocation8 + $0x7d0] sm:$0xff]  ;;  %v1129_v18 = vld [vmem:[#allocation8 + $0x8c0] sm:$0xff] }
 0x25b   :  { %4246 = vmatprep.subr.bf16.mxu0 %v4245_v29  ;;  %4374 = vmatprep.subr.bf16.mxu1 %v4373_v30  ;;  %v1110_v29 = vld [vmem:[#allocation8 + $0x828] sm:$0xff]  ;;  %v1108_v30 = vld [vmem:[#allocation8 + $0x818] sm:$0xff]  ;;  %v4391_v34 = vpack.c.bf16 %v764_v27, %v760_v26  ;;  %v1133_v19 = vld [vmem:[#allocation8 + $0x8e0] sm:$0xff] }
 0x25c   :  { %v4393_v48 = vpack.c.bf16 %v1110_v29, %v1106_v28  ;;  %v4521_v38 = vpack.c.bf16 %v1112_v32, %v1108_v30  ;;  %v1144_v26 = vld [vmem:[#allocation8 + $0x938] sm:$0xff]  ;;  %v4407_v27 = vpack.c.bf16 %v1133_v19, %v1129_v18  ;;  %v4535_v28 = vpack.c.bf16 %v1135_v23, %v1131_v22  ;;  %v1137_v29 = vld [vmem:[#allocation8 + $0x900] sm:$0xff]  ;;  %v1171_v23 = vld [vmem:[#allocation8 + $0xa10] sm:$0xff] }
 0x25d   :  { %v1141_v30 = vld [vmem:[#allocation8 + $0x920] sm:$0xff] }
 0x25e   :  { %4248 = vmatpush1.bf16.msra.mxu0 %v4247_v39  ;;  %4376 = vmatpush1.bf16.msra.mxu1 %v4375_v40  ;;  %v1105_v39 = vld [vmem:[#allocation8 + $0x800] sm:$0xff] }
 0x25f   :  { %4250 = vmatprep.subr.bf16.mxu0 %v4249_v43  ;;  %4378 = vmatprep.subr.bf16.mxu1 %v4377_v44  ;;  %v1109_v40 = vld [vmem:[#allocation8 + $0x820] sm:$0xff]  ;;  %v1114_v43 = vld [vmem:[#allocation8 + $0x848] sm:$0xff]  ;;  %v498_v44 = vadd.f32 %v5921_v55, %v339_v24 }
 0x260   :  { %v4395_v35 = vpack.c.bf16 %v1109_v40, %v1105_v39  ;;  %v1126_v55 = vld [vmem:[#allocation8 + $0x8a8] sm:$0xff]  ;;  %v1152_v39 = vld [vmem:[#allocation8 + $0x978] sm:$0xff]  ;;  %v4411_v40 = vpack.c.bf16 %v1141_v30, %v1137_v29  ;;  %v1169_v19 = vld [vmem:[#allocation8 + $0xa00] sm:$0xff] }
 0x261   :  { %v1138_v24 = vld [vmem:[#allocation8 + $0x908] sm:$0xff]  ;;  %v1177_v30 = vld [vmem:[#allocation8 + $0xa40] sm:$0xff] }
 0x262   :  { %4252 = vmatpush1.bf16.msra.mxu0 %v4251_v56  ;;  %4380 = vmatpush1.bf16.msra.mxu1 %v4379_v57  ;;  %v4397_v56 = vpack.c.bf16 %v1118_v45, %v1114_v43  ;;  %v4525_v57 = vpack.c.bf16 %v1120_v51, %v1116_v50  ;;  %v1149_v43 = vld [vmem:[#allocation8 + $0x960] sm:$0xff]  ;;  %v1147_v50 = vld [vmem:[#allocation8 + $0x950] sm:$0xff] }
 0x263   :  { %4254 = vmatprep.subr.bf16.mxu0 %v4253_v61  ;;  %4382 = vmatprep.subr.bf16.mxu1 %v4381_v62  ;;  %v1122_v61 = vld [vmem:[#allocation8 + $0x888] sm:$0xff]  ;;  %v508_v62 = vmax.f32 %v498_v44, 0.0  ;;  %v1151_v51 = vld [vmem:[#allocation8 + $0x970] sm:$0xff]  ;;  %v4415_v53 = vpack.c.bf16 %v1149_v43, %v1145_v42  ;;  %v1185_v43 = vld [vmem:[#allocation8 + $0xa80] sm:$0xff] }
 0x264   :  { %v4543_v54 = vpack.c.bf16 %v1151_v51, %v1147_v50  ;;  %v1187_v51 = vld [vmem:[#allocation8 + $0xa90] sm:$0xff] }
 0x266   :  { %4256 = vmatpush1.bf16.msra.mxu0 %v4255_v6  ;;  %4384 = vmatpush1.bf16.msra.mxu1 %v4383_v7  ;;  %v4401_v6 = vpack.c.bf16 %v1126_v55, %v1122_v61  ;;  %v4529_v7 = vpack.c.bf16 %v1128_v1, %v1124_v63  ;;  %v1155_v61 = vld [vmem:[#allocation8 + $0x990] sm:$0xff]  ;;  %v1162_v55 = vld [vmem:[#allocation8 + $0x9c8] sm:$0xff]  ;;  %v1164_v1 = vld [vmem:[#allocation8 + $0x9d8] sm:$0xff] }
 0x267   :  { %4258 = vmatprep.subr.bf16.mxu0 %v4257_v11  ;;  %4386 = vmatprep.subr.bf16.mxu1 %v4385_v12  ;;  %v1130_v11 = vld [vmem:[#allocation8 + $0x8c8] sm:$0xff] }
 0x268   :  { %v1134_v12 = vld [vmem:[#allocation8 + $0x8e8] sm:$0xff] }
 0x269   :  { %v1166_v63 = vld [vmem:[#allocation8 + $0x9e8] sm:$0xff] }
 0x26a   :  { %4260 = vmatpush1.bf16.msra.mxu0 %v4259_v20  ;;  %4388 = vmatpush1.bf16.msra.mxu1 %v4387_v21  ;;  %v4405_v20 = vpack.c.bf16 %v1134_v12, %v1130_v11  ;;  %v4533_v21 = vpack.c.bf16 %v1136_v14, %v1132_v13  ;;  %v1167_v11 = vld [vmem:[#allocation8 + $0x9f0] sm:$0xff]  ;;  %v1170_v12 = vld [vmem:[#allocation8 + $0xa08] sm:$0xff]  ;;  %v1172_v14 = vld [vmem:[#allocation8 + $0xa18] sm:$0xff] }
 0x26b   :  { %4262 = vmatprep.subr.bf16.mxu0 %v4261_v46  ;;  %4390 = vmatprep.subr.bf16.mxu1 %v4389_v25  ;;  %v1142_v46 = vld [vmem:[#allocation8 + $0x928] sm:$0xff]  ;;  %v1140_v25 = vld [vmem:[#allocation8 + $0x918] sm:$0xff]  ;;  %v4551_v18 = vpack.c.bf16 %v1167_v11, %v1163_v9  ;;  %v1203_v11 = vld [vmem:[#allocation8 + $0xb10] sm:$0xff] }
 0x26c   :  { %v4409_v32 = vpack.c.bf16 %v1142_v46, %v1138_v24  ;;  %v1174_v13 = vld [vmem:[#allocation8 + $0xa28] sm:$0xff]  ;;  %v1175_v24 = vld [vmem:[#allocation8 + $0xa30] sm:$0xff] }
 0x26d   :  { %v1178_v46 = vld [vmem:[#allocation8 + $0xa48] sm:$0xff]  ;;  %v4555_v29 = vpack.c.bf16 %v1175_v24, %v1171_v23  ;;  %v1211_v24 = vld [vmem:[#allocation8 + $0xb50] sm:$0xff] }
 0x26e   :  { %4264 = vmatpush1.bf16.msra.mxu0 %v4263_v33  ;;  %4392 = vmatpush1.bf16.msra.mxu1 %v4391_v34  ;;  %v4537_v33 = vpack.c.bf16 %v1144_v26, %v1140_v25  ;;  %v1139_v34 = vld [vmem:[#allocation8 + $0x910] sm:$0xff]  ;;  %v1182_v25 = vld [vmem:[#allocation8 + $0xa68] sm:$0xff]  ;;  %v1180_v26 = vld [vmem:[#allocation8 + $0xa58] sm:$0xff] }
 0x26f   :  { %4394 = vmatprep.subr.bf16.mxu0 %v4393_v48  ;;  %4522 = vmatprep.subr.bf16.mxu1 %v4521_v38  ;;  %v1150_v48 = vld [vmem:[#allocation8 + $0x968] sm:$0xff]  ;;  %v1148_v38 = vld [vmem:[#allocation8 + $0x958] sm:$0xff]  ;;  %v4539_v41 = vpack.c.bf16 %v1143_v36, %v1139_v34  ;;  %v1179_v36 = vld [vmem:[#allocation8 + $0xa50] sm:$0xff] }
 0x270   :  { %v4413_v44 = vpack.c.bf16 %v1150_v48, %v1146_v37  ;;  %v4541_v45 = vpack.c.bf16 %v1152_v39, %v1148_v38  ;;  %v1183_v37 = vld [vmem:[#allocation8 + $0xa70] sm:$0xff]  ;;  %v1186_v48 = vld [vmem:[#allocation8 + $0xa88] sm:$0xff]  ;;  %v1188_v39 = vld [vmem:[#allocation8 + $0xa98] sm:$0xff] }
 0x271   :  { %930 = vmatmul.mubr.f32.vlgmr.msra.gmra.mrb[4].mxu0 %v504_v31  ;;  %1084 = vmatmul.mubr.f32.vlgmr.msra.gmra.mrb[4].mxu1 %v504_v31  ;;  %v1158_v31 = vld [vmem:[#allocation8 + $0x9a8] sm:$0xff]  ;;  %v4559_v42 = vpack.c.bf16 %v1183_v37, %v1179_v36  ;;  %v1221_v36 = vld [vmem:[#allocation8 + $0xba0] sm:$0xff]  ;;  %v1219_v37 = vld [vmem:[#allocation8 + $0xb90] sm:$0xff] }
 0x272   :  { %935 = vmatprep.mubr.f32.mxu0 %v509_v52  ;;  %1089 = vmatprep.mubr.f32.mxu1 %v509_v52  ;;  %v1154_v52 = vld [vmem:[#allocation8 + $0x988] sm:$0xff] }
 0x273   :  { %4396 = vmatpush1.bf16.msra.mxu0 %v4395_v35  ;;  %4524 = vmatpush1.bf16.msra.mxu1 %v4523_v60  ;;  %v1156_v35 = vld [vmem:[#allocation8 + $0x998] sm:$0xff]  ;;  %v4417_v58 = vpack.c.bf16 %v1158_v31, %v1154_v52  ;;  %v1190_v38 = vld [vmem:[#allocation8 + $0xaa8] sm:$0xff]  ;;  %v1191_v52 = vld [vmem:[#allocation8 + $0xab0] sm:$0xff] }
 0x274   :  { %4398 = vmatprep.subr.bf16.mxu0 %v4397_v56  ;;  %4526 = vmatprep.subr.bf16.mxu1 %v4525_v57  ;;  %v1160_v60 = vld [vmem:[#allocation8 + $0x9b8] sm:$0xff]  ;;  %v1153_v56 = vld [vmem:[#allocation8 + $0x980] sm:$0xff]  ;;  %v1194_v31 = vld [vmem:[#allocation8 + $0xac8] sm:$0xff] }
 0x275   :  { %936 = vmatmul.mubr.f32.gmra.mrb[6].mxu0 %v508_v62  ;;  %1090 = vmatmul.mubr.f32.gmra.mrb[6].mxu1 %v508_v62  ;;  %v1157_v57 = vld [vmem:[#allocation8 + $0x9a0] sm:$0xff]  ;;  %v4545_v59 = vpack.c.bf16 %v1160_v60, %v1156_v35  ;;  %v1159_v62 = vld [vmem:[#allocation8 + $0x9b0] sm:$0xff]  ;;  %v1198_v35 = vld [vmem:[#allocation8 + $0xae8] sm:$0xff] }
 0x276   :  { %v4547_v4 = vpack.c.bf16 %v1159_v62, %v1155_v61  ;;  %v1196_v60 = vld [vmem:[#allocation8 + $0xad8] sm:$0xff]  ;;  %v1195_v62 = vld [vmem:[#allocation8 + $0xad0] sm:$0xff] }
 0x277   :  { %4400 = vmatpush1.bf16.msra.mxu0 %v4399_v2  ;;  %4528 = vmatpush1.bf16.msra.mxu1 %v4527_v3  ;;  %v1168_v2 = vld [vmem:[#allocation8 + $0x9f8] sm:$0xff]  ;;  %v4419_v3 = vpack.c.bf16 %v1157_v57, %v1153_v56  ;;  %v4563_v56 = vpack.c.bf16 %v1191_v52, %v1187_v51  ;;  %v1193_v57 = vld [vmem:[#allocation8 + $0xac0] sm:$0xff] }
 0x278   :  { %4402 = vmatprep.subr.bf16.mxu0 %v4401_v6  ;;  %4530 = vmatprep.subr.bf16.mxu1 %v4529_v7  ;;  %v1165_v6 = vld [vmem:[#allocation8 + $0x9e0] sm:$0xff]  ;;  %v4421_v7 = vpack.c.bf16 %v1166_v63, %v1162_v55  ;;  %v4549_v8 = vpack.c.bf16 %v1168_v2, %v1164_v1  ;;  %v1199_v55 = vld [vmem:[#allocation8 + $0xaf0] sm:$0xff]  ;;  %v1202_v63 = vld [vmem:[#allocation8 + $0xb08] sm:$0xff] }
 0x279   :  { %v1206_v1 = vld [vmem:[#allocation8 + $0xb28] sm:$0xff]  ;;  %v1204_v2 = vld [vmem:[#allocation8 + $0xb18] sm:$0xff] }
 0x27b   :  { %4404 = vmatpush1.bf16.msra.mxu0 %v4403_v16  ;;  %4532 = vmatpush1.bf16.msra.mxu1 %v4531_v17  ;;  %v1176_v16 = vld [vmem:[#allocation8 + $0xa38] sm:$0xff]  ;;  %v4423_v17 = vpack.c.bf16 %v1165_v6, %v1161_v5  ;;  %v4567_v5 = vpack.c.bf16 %v1199_v55, %v1195_v62  ;;  %v1201_v6 = vld [vmem:[#allocation8 + $0xb00] sm:$0xff] }
 0x27c   :  { %4406 = vmatprep.subr.bf16.mxu0 %v4405_v20  ;;  %4534 = vmatprep.subr.bf16.mxu1 %v4533_v21  ;;  %v1173_v20 = vld [vmem:[#allocation8 + $0xa20] sm:$0xff]  ;;  %v4425_v21 = vpack.c.bf16 %v1174_v13, %v1170_v12  ;;  %v4553_v22 = vpack.c.bf16 %v1176_v16, %v1172_v14  ;;  %v1207_v12 = vld [vmem:[#allocation8 + $0xb30] sm:$0xff]  ;;  %v1210_v13 = vld [vmem:[#allocation8 + $0xb48] sm:$0xff] }
 0x27d   :  { %v1214_v14 = vld [vmem:[#allocation8 + $0xb68] sm:$0xff]  ;;  %v1212_v16 = vld [vmem:[#allocation8 + $0xb58] sm:$0xff] }
 0x27f   :  { %4408 = vmatpush1.bf16.msra.mxu0 %v4407_v27  ;;  %4536 = vmatpush1.bf16.msra.mxu1 %v4535_v28  ;;  %v1184_v27 = vld [vmem:[#allocation8 + $0xa78] sm:$0xff]  ;;  %v4427_v28 = vpack.c.bf16 %v1173_v20, %v1169_v19  ;;  %v4571_v19 = vpack.c.bf16 %v1207_v12, %v1203_v11  ;;  %v1209_v20 = vld [vmem:[#allocation8 + $0xb40] sm:$0xff]  ;;  %v1246_v12 = vld [vmem:[#allocation8 + $0xc68] sm:$0xff] }
 0x280   :  { %4410 = vmatprep.subr.bf16.mxu0 %v4409_v32  ;;  %4538 = vmatprep.subr.bf16.mxu1 %v4537_v33  ;;  %v1181_v32 = vld [vmem:[#allocation8 + $0xa60] sm:$0xff]  ;;  %v4429_v33 = vpack.c.bf16 %v1182_v25, %v1178_v46  ;;  %v4557_v34 = vpack.c.bf16 %v1184_v27, %v1180_v26  ;;  %v1215_v46 = vld [vmem:[#allocation8 + $0xb70] sm:$0xff]  ;;  %v1218_v25 = vld [vmem:[#allocation8 + $0xb88] sm:$0xff] }
 0x281   :  { %v1222_v26 = vld [vmem:[#allocation8 + $0xba8] sm:$0xff]  ;;  %v1220_v27 = vld [vmem:[#allocation8 + $0xb98] sm:$0xff] }
 0x283   :  { %4412 = vmatpush1.bf16.msra.mxu0 %v4411_v40  ;;  %4540 = vmatpush1.bf16.msra.mxu1 %v4539_v41  ;;  %v1192_v40 = vld [vmem:[#allocation8 + $0xab8] sm:$0xff]  ;;  %v4431_v41 = vpack.c.bf16 %v1181_v32, %v1177_v30  ;;  %v4575_v30 = vpack.c.bf16 %v1215_v46, %v1211_v24  ;;  %v1217_v32 = vld [vmem:[#allocation8 + $0xb80] sm:$0xff] }
 0x284   :  { %4414 = vmatprep.subr.bf16.mxu0 %v4413_v44  ;;  %4542 = vmatprep.subr.bf16.mxu1 %v4541_v45  ;;  %v1189_v44 = vld [vmem:[#allocation8 + $0xaa0] sm:$0xff]  ;;  %v4433_v45 = vpack.c.bf16 %v1190_v38, %v1186_v48  ;;  %v4561_v50 = vpack.c.bf16 %v1192_v40, %v1188_v39  ;;  %v1223_v48 = vld [vmem:[#allocation8 + $0xbb0] sm:$0xff]  ;;  %v4451_v38 = vpack.c.bf16 %v1221_v36, %v1217_v32  ;;  %v1226_v40 = vld [vmem:[#allocation8 + $0xbc8] sm:$0xff] }
 0x285   :  { %v4579_v39 = vpack.c.bf16 %v1223_v48, %v1219_v37  ;;  %v1254_v36 = vld [vmem:[#allocation8 + $0xca8] sm:$0xff]  ;;  %v1252_v37 = vld [vmem:[#allocation8 + $0xc98] sm:$0xff] }
 0x286   :  { %v1256_v48 = vld [vmem:[#allocation8 + $0xcb8] sm:$0xff] }
 0x287   :  { %4416 = vmatpush1.bf16.msra.mxu0 %v4415_v53  ;;  %4544 = vmatpush1.bf16.msra.mxu1 %v4543_v54  ;;  %v1200_v53 = vld [vmem:[#allocation8 + $0xaf8] sm:$0xff]  ;;  %v4435_v54 = vpack.c.bf16 %v1189_v44, %v1185_v43 }
 0x288   :  { %4418 = vmatprep.subr.bf16.mxu0 %v4417_v58  ;;  %4546 = vmatprep.subr.bf16.mxu1 %v4545_v59  ;;  %v1197_v58 = vld [vmem:[#allocation8 + $0xae0] sm:$0xff]  ;;  %v4437_v59 = vpack.c.bf16 %v1198_v35, %v1194_v31  ;;  %v4565_v61 = vpack.c.bf16 %v1200_v53, %v1196_v60  ;;  %v1232_v44 = vld [vmem:[#allocation8 + $0xbf8] sm:$0xff]  ;;  %v1227_v31 = vld [vmem:[#allocation8 + $0xbd0] sm:$0xff] }
 0x289   :  { %v1231_v35 = vld [vmem:[#allocation8 + $0xbf0] sm:$0xff]  ;;  %v1234_v53 = vld [vmem:[#allocation8 + $0xc08] sm:$0xff] }
 0x28a   :  { %v4583_v60 = vpack.c.bf16 %v1231_v35, %v1227_v31  ;;  %v1262_v31 = vld [vmem:[#allocation8 + $0xce8] sm:$0xff]  ;;  %v1260_v35 = vld [vmem:[#allocation8 + $0xcd8] sm:$0xff] }
 0x28b   :  { %4420 = vmatpush1.bf16.msra.mxu0 %v4419_v3  ;;  %4548 = vmatpush1.bf16.msra.mxu1 %v4547_v4  ;;  %v1208_v3 = vld [vmem:[#allocation8 + $0xb38] sm:$0xff]  ;;  %v4439_v4 = vpack.c.bf16 %v1197_v58, %v1193_v57 }
 0x28c   :  { %4422 = vmatprep.subr.bf16.mxu0 %v4421_v7  ;;  %4550 = vmatprep.subr.bf16.mxu1 %v4549_v8  ;;  %v1205_v7 = vld [vmem:[#allocation8 + $0xb20] sm:$0xff]  ;;  %v4441_v8 = vpack.c.bf16 %v1206_v1, %v1202_v63  ;;  %v4569_v9 = vpack.c.bf16 %v1208_v3, %v1204_v2  ;;  %v1240_v58 = vld [vmem:[#allocation8 + $0xc38] sm:$0xff] }
 0x28d   :  { %v1233_v2 = vld [vmem:[#allocation8 + $0xc00] sm:$0xff] }
 0x28e   :  { %v1237_v3 = vld [vmem:[#allocation8 + $0xc20] sm:$0xff] }
 0x28f   :  { %4424 = vmatpush1.bf16.msra.mxu0 %v4423_v17  ;;  %4552 = vmatpush1.bf16.msra.mxu1 %v4551_v18  ;;  %v1216_v17 = vld [vmem:[#allocation8 + $0xb78] sm:$0xff]  ;;  %v4443_v18 = vpack.c.bf16 %v1205_v7, %v1201_v6  ;;  %v1235_v7 = vld [vmem:[#allocation8 + $0xc10] sm:$0xff] }
 0x290   :  { %4426 = vmatprep.subr.bf16.mxu0 %v4425_v21  ;;  %4554 = vmatprep.subr.bf16.mxu1 %v4553_v22  ;;  %v1213_v21 = vld [vmem:[#allocation8 + $0xb60] sm:$0xff]  ;;  %v4445_v22 = vpack.c.bf16 %v1214_v14, %v1210_v13  ;;  %v4573_v23 = vpack.c.bf16 %v1216_v17, %v1212_v16  ;;  %v1244_v13 = vld [vmem:[#allocation8 + $0xc58] sm:$0xff] }
 0x291   :  { %v1248_v14 = vld [vmem:[#allocation8 + $0xc78] sm:$0xff] }
 0x293   :  { %4428 = vmatpush1.bf16.msra.mxu0 %v4427_v28  ;;  %4556 = vmatpush1.bf16.msra.mxu1 %v4555_v29  ;;  %v1224_v28 = vld [vmem:[#allocation8 + $0xbb8] sm:$0xff]  ;;  %v4447_v29 = vpack.c.bf16 %v1213_v21, %v1209_v20  ;;  %v4459_v20 = vpack.c.bf16 %v1237_v3, %v1233_v2  ;;  %v1266_v2 = vld [vmem:[#allocation8 + $0xd08] sm:$0xff] }
 0x294   :  { %4430 = vmatprep.subr.bf16.mxu0 %v4429_v33  ;;  %4558 = vmatprep.subr.bf16.mxu1 %v4557_v34  ;;  %v4449_v33 = vpack.c.bf16 %v1222_v26, %v1218_v25  ;;  %v4577_v34 = vpack.c.bf16 %v1224_v28, %v1220_v27  ;;  %v4589_v27 = vpack.c.bf16 %v1248_v14, %v1244_v13  ;;  %v1245_v28 = vld [vmem:[#allocation8 + $0xc60] sm:$0xff]  ;;  %v1270_v3 = vld [vmem:[#allocation8 + $0xd28] sm:$0xff]  ;;  %v1267_v13 = vld [vmem:[#allocation8 + $0xd10] sm:$0xff] }
 0x295   :  { %v1271_v14 = vld [vmem:[#allocation8 + $0xd30] sm:$0xff] }
 0x297   :  { %4432 = vmatpush1.bf16.msra.mxu0 %v4431_v41  ;;  %4560 = vmatpush1.bf16.msra.mxu1 %v4559_v42  ;;  %v1230_v41 = vld [vmem:[#allocation8 + $0xbe8] sm:$0xff]  ;;  %v1228_v42 = vld [vmem:[#allocation8 + $0xbd8] sm:$0xff] }
 0x298   :  { %4434 = vmatprep.subr.bf16.mxu0 %v4433_v45  ;;  %4562 = vmatprep.subr.bf16.mxu1 %v4561_v50  ;;  %v4453_v43 = vpack.c.bf16 %v1230_v41, %v1226_v40  ;;  %v1225_v45 = vld [vmem:[#allocation8 + $0xbc0] sm:$0xff]  ;;  %v4581_v51 = vpack.c.bf16 %v1232_v44, %v1228_v42  ;;  %v1251_v44 = vld [vmem:[#allocation8 + $0xc90] sm:$0xff] }
 0x299   :  { %v1229_v50 = vld [vmem:[#allocation8 + $0xbe0] sm:$0xff] }
 0x29a   :  { %v4455_v52 = vpack.c.bf16 %v1229_v50, %v1225_v45  ;;  %v1249_v41 = vld [vmem:[#allocation8 + $0xc80] sm:$0xff]  ;;  %v1255_v45 = vld [vmem:[#allocation8 + $0xcb0] sm:$0xff]  ;;  %v1258_v50 = vld [vmem:[#allocation8 + $0xcc8] sm:$0xff] }
 0x29b   :  { %4436 = vmatpush1.bf16.msra.mxu0 %v4435_v54  ;;  %4564 = vmatpush1.bf16.msra.mxu1 %v4563_v56  ;;  %v1238_v54 = vld [vmem:[#allocation8 + $0xc28] sm:$0xff]  ;;  %v1236_v56 = vld [vmem:[#allocation8 + $0xc18] sm:$0xff]  ;;  %v1253_v42 = vld [vmem:[#allocation8 + $0xca0] sm:$0xff] }
 0x29c   :  { %4438 = vmatprep.subr.bf16.mxu0 %v4437_v59  ;;  %4566 = vmatprep.subr.bf16.mxu1 %v4565_v61  ;;  %v4457_v57 = vpack.c.bf16 %v1238_v54, %v1234_v53  ;;  %v4585_v59 = vpack.c.bf16 %v1240_v58, %v1236_v56  ;;  %v5934_v61 = vld [vmem:[#allocation10] sm:$0xf]  ;;  %v4467_v54 = vpack.c.bf16 %v1253_v42, %v1249_v41  ;;  %v1283_v41 = vld [vmem:[#allocation8 + $0xd90] sm:$0xff] }
 0x29d   :  { %v771_v62 = vrot.slane %v5934_v61, %v5900_v47  ;;  %v775_v55 = vrot.slane %v5934_v61, %v5905_v49  ;;  %v5944_v16 = vrot.slane %v5934_v61, %v5912_v15  ;;  %v4595_v56 = vpack.c.bf16 %v1255_v45, %v1251_v44  ;;  %v1261_v58 = vld [vmem:[#allocation8 + $0xce0] sm:$0xff]  ;;  %v1287_v42 = vld [vmem:[#allocation8 + $0xdb0] sm:$0xff]  ;;  %v1294_v44 = vld [vmem:[#allocation8 + $0xde8] sm:$0xff] }
 0x29e   :  { %v1292_v45 = vld [vmem:[#allocation8 + $0xdd8] sm:$0xff] }
 0x29f   :  { %4440 = vmatpush1.bf16.msra.mxu0 %v4439_v4  ;;  %4568 = vmatpush1.bf16.msra.mxu1 %v4567_v5 }
 0x2a0   :  { %4442 = vmatprep.subr.bf16.mxu0 %v4441_v8  ;;  %4570 = vmatprep.subr.bf16.mxu1 %v4569_v9  ;;  %v1239_v8 = vld [vmem:[#allocation8 + $0xc30] sm:$0xff]  ;;  %v1242_v9 = vld [vmem:[#allocation8 + $0xc48] sm:$0xff] }
 0x2a1   :  { %v4587_v21 = vpack.c.bf16 %v1239_v8, %v1235_v7  ;;  %v4461_v26 = vpack.c.bf16 %v1246_v12, %v1242_v9  ;;  %v1265_v8 = vld [vmem:[#allocation8 + $0xd00] sm:$0xff] }
 0x2a2   :  { %v1269_v9 = vld [vmem:[#allocation8 + $0xd20] sm:$0xff] }
 0x2a3   :  { %4444 = vmatpush1.bf16.msra.mxu0 %v4443_v18  ;;  %4572 = vmatpush1.bf16.msra.mxu1 %v4571_v19 }
 0x2a4   :  { %4446 = vmatprep.subr.bf16.mxu0 %v4445_v22  ;;  %4574 = vmatprep.subr.bf16.mxu1 %v4573_v23  ;;  %v1241_v22 = vld [vmem:[#allocation8 + $0xc40] sm:$0xff] }
 0x2a7   :  { %4448 = vmatpush1.bf16.msra.mxu0 %v4447_v29  ;;  %4576 = vmatpush1.bf16.msra.mxu1 %v4575_v30  ;;  %v1243_v29 = vld [vmem:[#allocation8 + $0xc50] sm:$0xff] }
 0x2a8   :  { %4450 = vmatprep.subr.bf16.mxu0 %v4449_v33  ;;  %4578 = vmatprep.subr.bf16.mxu1 %v4577_v34  ;;  %v1247_v30 = vld [vmem:[#allocation8 + $0xc70] sm:$0xff]  ;;  %v1250_v33 = vld [vmem:[#allocation8 + $0xc88] sm:$0xff] }
 0x2a9   :  { %v4591_v40 = vpack.c.bf16 %v1247_v30, %v1243_v29  ;;  %v1279_v29 = vld [vmem:[#allocation8 + $0xd70] sm:$0xff]  ;;  %v1282_v30 = vld [vmem:[#allocation8 + $0xd88] sm:$0xff] }
 0x2ab   :  { %4452 = vmatpush1.bf16.msra.mxu0 %v4451_v38  ;;  %4580 = vmatpush1.bf16.msra.mxu1 %v4579_v39  ;;  %v4463_v39 = vpack.c.bf16 %v1245_v28, %v1241_v22  ;;  %v4475_v22 = vpack.c.bf16 %v1269_v9, %v1265_v8  ;;  %v1275_v28 = vld [vmem:[#allocation8 + $0xd50] sm:$0xff]  ;;  %v1306_v8 = vld [vmem:[#allocation8 + $0xe48] sm:$0xff] }
 0x2ac   :  { %4454 = vmatprep.subr.bf16.mxu0 %v4453_v43  ;;  %4582 = vmatprep.subr.bf16.mxu1 %v4581_v51  ;;  %v4465_v51 = vpack.c.bf16 %v1254_v36, %v1250_v33  ;;  %v1284_v33 = vld [vmem:[#allocation8 + $0xd98] sm:$0xff]  ;;  %v1310_v9 = vld [vmem:[#allocation8 + $0xe68] sm:$0xff] }
 0x2af   :  { %4456 = vmatpush1.bf16.msra.mxu0 %v4455_v52  ;;  %4584 = vmatpush1.bf16.msra.mxu1 %v4583_v60  ;;  %v4593_v52 = vpack.c.bf16 %v1256_v48, %v1252_v37  ;;  %v1264_v60 = vld [vmem:[#allocation8 + $0xcf8] sm:$0xff]  ;;  %v4607_v37 = vpack.c.bf16 %v1279_v29, %v1275_v28  ;;  %v1281_v48 = vld [vmem:[#allocation8 + $0xd80] sm:$0xff] }
 0x2b0   :  { %4458 = vmatprep.subr.bf16.mxu0 %v4457_v57  ;;  %4586 = vmatprep.subr.bf16.mxu1 %v4585_v59  ;;  %v1257_v57 = vld [vmem:[#allocation8 + $0xcc0] sm:$0xff]  ;;  %v4469_v59 = vpack.c.bf16 %v1262_v31, %v1258_v50  ;;  %v1296_v50 = vld [vmem:[#allocation8 + $0xdf8] sm:$0xff] }
 0x2b1   :  { %v1289_v31 = vld [vmem:[#allocation8 + $0xdc0] sm:$0xff] }
 0x344   :  { %v931_v63 = vpop.f32.mrb[4].mxu0  ;;  %v5940_v1 = vpop.f32.mrb[4].mxu1 }
 0x345   :  { %v5077_v4 = vadd.f32 %v931_v63, %v771_v62  ;;  %v933_v5 = vpop.f32.mrb[5].mxu0  ;;  %v1087_v6 = vpop.f32.mrb[5].mxu1  ;;  %v1263_v63 = vld [vmem:[#allocation8 + $0xcf0] sm:$0xff] }
 0x346   :  { %v5078_v11 = vadd.f32 %v933_v5, %v775_v55  ;;  %v5082_v34 = vadd.f32 %v1087_v6, %v5944_v16  ;;  %v1272_v5 = vld [vmem:[#allocation8 + $0xd38] sm:$0xff]  ;;  %v4471_v6 = vpack.c.bf16 %v1261_v58, %v1257_v57  ;;  %v1298_v57 = vld [vmem:[#allocation8 + $0xe08] sm:$0xff] }
 0x347   :  { %v1096_v23 = vmax.f32 %v5077_v4, 0.0  ;;  %v1268_v4 = vld [vmem:[#allocation8 + $0xd18] sm:$0xff]  ;;  %v1302_v58 = vld [vmem:[#allocation8 + $0xe28] sm:$0xff] }
 0x348   :  { %v1097_v17 = vmax.f32 %v5078_v11, 0.0  ;;  %v937_v18 = vpop.f32.mrb[6].mxu0  ;;  %v5946_v19 = vpop.f32.mrb[6].mxu1  ;;  %v1099_v53 = vmax.f32 %v5082_v34, 0.0  ;;  %v4473_v11 = vpack.c.bf16 %v1270_v3, %v1266_v2  ;;  %v4601_v12 = vpack.c.bf16 %v1272_v5, %v1268_v4  ;;  %v1288_v34 = vld [vmem:[#allocation8 + $0xdb8] sm:$0xff]  ;;  %v1297_v2 = vld [vmem:[#allocation8 + $0xe00] sm:$0xff] }
 0x349   :  { %v5079_v24 = vadd.f32 %v937_v18, %v771_v62  ;;  %v939_v46 = vpop.f32.mrb[7].mxu0  ;;  %v5948_v25 = vpop.f32.mrb[7].mxu1  ;;  %v4597_v62 = vpack.c.bf16 %v1264_v60, %v1260_v35  ;;  %v1278_v18 = vld [vmem:[#allocation8 + $0xd68] sm:$0xff]  ;;  %v1293_v35 = vld [vmem:[#allocation8 + $0xde0] sm:$0xff]  ;;  %v4489_v4 = vpack.c.bf16 %v1302_v58, %v1298_v57 }
 0x34a   :  { %v5080_v32 = vadd.f32 %v939_v46, %v775_v55  ;;  %1448 = vmatprep.mubr.f32.mxu0 %v1097_v17  ;;  %1602 = vmatprep.mubr.f32.mxu1 %v1097_v17  ;;  %v1259_v55 = vld [vmem:[#allocation8 + $0xcd0] sm:$0xff]  ;;  %v1274_v17 = vld [vmem:[#allocation8 + $0xd48] sm:$0xff]  ;;  %v1277_v46 = vld [vmem:[#allocation8 + $0xd60] sm:$0xff] }
 0x34b   :  { %1449 = vmatmul.mubr.f32.vlgmr.msra.gmra.mrb[8].mxu0 %v1096_v23  ;;  %1603 = vmatmul.mubr.f32.vlgmr.msra.gmra.mrb[8].mxu1 %v1096_v23  ;;  %v1100_v43 = vmax.f32 %v5079_v24, 0.0  ;;  %v4599_v7 = vpack.c.bf16 %v1263_v63, %v1259_v55  ;;  %v4603_v23 = vpack.c.bf16 %v1271_v14, %v1267_v13  ;;  %v1273_v24 = vld [vmem:[#allocation8 + $0xd40] sm:$0xff]  ;;  %v4487_v55 = vpack.c.bf16 %v1293_v35, %v1289_v31  ;;  %v1330_v31 = vld [vmem:[#allocation8 + $0xf08] sm:$0xff] }
 0x34c   :  { %v1101_v38 = vmax.f32 %v5080_v32, 0.0  ;;  %4460 = vmatpush1.bf16.msra.mxu0 %v4459_v20  ;;  %4588 = vmatpush1.bf16.msra.mxu1 %v4587_v21  ;;  %v1276_v20 = vld [vmem:[#allocation8 + $0xd58] sm:$0xff]  ;;  %v1286_v32 = vld [vmem:[#allocation8 + $0xda8] sm:$0xff]  ;;  %v4479_v36 = vpack.c.bf16 %v1277_v46, %v1273_v24  ;;  %v1301_v3 = vld [vmem:[#allocation8 + $0xe20] sm:$0xff] }
 0x34d   :  { %4462 = vmatprep.subr.bf16.mxu0 %v4461_v26  ;;  %4590 = vmatprep.subr.bf16.mxu1 %v4589_v27  ;;  %v1280_v21 = vld [vmem:[#allocation8 + $0xd78] sm:$0xff]  ;;  %v4477_v26 = vpack.c.bf16 %v1278_v18, %v1274_v17  ;;  %v4491_v13 = vpack.c.bf16 %v1301_v3, %v1297_v2  ;;  %v1305_v17 = vld [vmem:[#allocation8 + $0xe40] sm:$0xff]  ;;  %v1314_v24 = vld [vmem:[#allocation8 + $0xe88] sm:$0xff] }
 0x34e   :  { %1454 = vmatprep.mubr.f32.mxu0 %v1101_v38  ;;  %1608 = vmatprep.mubr.f32.mxu1 %v1101_v38  ;;  %v4605_v27 = vpack.c.bf16 %v1280_v21, %v1276_v20  ;;  %v1285_v38 = vld [vmem:[#allocation8 + $0xda0] sm:$0xff]  ;;  %v4493_v20 = vpack.c.bf16 %v1310_v9, %v1306_v8  ;;  %v1318_v46 = vld [vmem:[#allocation8 + $0xea8] sm:$0xff] }
 0x34f   :  { %1455 = vmatmul.mubr.f32.gmra.mrb[10].mxu0 %v1100_v43  ;;  %1609 = vmatmul.mubr.f32.gmra.mrb[10].mxu1 %v1100_v43  ;;  %v1290_v43 = vld [vmem:[#allocation8 + $0xdc8] sm:$0xff]  ;;  %v1309_v18 = vld [vmem:[#allocation8 + $0xe60] sm:$0xff] }
 0x350   :  { %4464 = vmatpush1.bf16.msra.mxu0 %v4463_v39  ;;  %4592 = vmatpush1.bf16.msra.mxu1 %v4591_v40  ;;  %v4481_v39 = vpack.c.bf16 %v1286_v32, %v1282_v30  ;;  %v4609_v40 = vpack.c.bf16 %v1288_v34, %v1284_v33  ;;  %v4485_v60 = vpack.c.bf16 %v1294_v44, %v1290_v43  ;;  %v1313_v30 = vld [vmem:[#allocation8 + $0xe80] sm:$0xff]  ;;  %v1334_v35 = vld [vmem:[#allocation8 + $0xf28] sm:$0xff] }
 0x351   :  { %1525 = vmatprep.mubr.f32.mxu0 %v1099_v53  ;;  %1679 = vmatprep.mubr.f32.mxu1 %v1099_v53  ;;  %v4613_v53 = vpack.c.bf16 %v1296_v50, %v1292_v45  ;;  %v4495_v28 = vpack.c.bf16 %v1309_v18, %v1305_v17  ;;  %v1317_v32 = vld [vmem:[#allocation8 + $0xea0] sm:$0xff]  ;;  %v4497_v33 = vpack.c.bf16 %v1318_v46, %v1314_v24  ;;  %v1338_v2 = vld [vmem:[#allocation8 + $0xf48] sm:$0xff] }
 0x352   :  { %4466 = vmatprep.subr.bf16.mxu0 %v4465_v51  ;;  %4594 = vmatprep.subr.bf16.mxu1 %v4593_v52  ;;  %v4483_v51 = vpack.c.bf16 %v1285_v38, %v1281_v48  ;;  %v4611_v52 = vpack.c.bf16 %v1287_v42, %v1283_v41  ;;  %v1322_v48 = vld [vmem:[#allocation8 + $0xec8] sm:$0xff]  ;;  %v4499_v41 = vpack.c.bf16 %v1317_v32, %v1313_v30  ;;  %v1321_v43 = vld [vmem:[#allocation8 + $0xec0] sm:$0xff] }
 0x353   :  { %v1326_v38 = vld [vmem:[#allocation8 + $0xee8] sm:$0xff]  ;;  %v1325_v44 = vld [vmem:[#allocation8 + $0xee0] sm:$0xff] }
 0x354   :  { %4468 = vmatpush1.bf16.msra.mxu0 %v4467_v54  ;;  %4596 = vmatpush1.bf16.msra.mxu1 %v4595_v56  ;;  %v1291_v54 = vld [vmem:[#allocation8 + $0xdd0] sm:$0xff]  ;;  %v4501_v45 = vpack.c.bf16 %v1326_v38, %v1322_v48  ;;  %v1329_v57 = vld [vmem:[#allocation8 + $0xf00] sm:$0xff]  ;;  %v1342_v3 = vld [vmem:[#allocation8 + $0xf68] sm:$0xff] }
 0x355   :  { %4470 = vmatprep.subr.bf16.mxu0 %v4469_v59  ;;  %4598 = vmatprep.subr.bf16.mxu1 %v4597_v62  ;;  %v1295_v56 = vld [vmem:[#allocation8 + $0xdf0] sm:$0xff]  ;;  %v1300_v59 = vld [vmem:[#allocation8 + $0xe18] sm:$0xff]  ;;  %v1333_v58 = vld [vmem:[#allocation8 + $0xf20] sm:$0xff] }
 0x356   :  { %v1304_v62 = vld [vmem:[#allocation8 + $0xe38] sm:$0xff]  ;;  %v4615_v63 = vpack.c.bf16 %v1295_v56, %v1291_v54  ;;  %v4503_v54 = vpack.c.bf16 %v1325_v44, %v1321_v43  ;;  %v1337_v8 = vld [vmem:[#allocation8 + $0xf40] sm:$0xff]  ;;  %v1346_v17 = vld [vmem:[#allocation8 + $0xf88] sm:$0xff] }
 0x357   :  { %v4617_v5 = vpack.c.bf16 %v1304_v62, %v1300_v59  ;;  %v4505_v59 = vpack.c.bf16 %v1334_v35, %v1330_v31  ;;  %v1341_v9 = vld [vmem:[#allocation8 + $0xf60] sm:$0xff]  ;;  %v1350_v18 = vld [vmem:[#allocation8 + $0xfa8] sm:$0xff]  ;;  %v1359_v43 = vld [vmem:[#allocation8 + $0xff0] sm:$0xff] }
 0x358   :  { %4472 = vmatpush1.bf16.msra.mxu0 %v4471_v6  ;;  %4600 = vmatpush1.bf16.msra.mxu1 %v4599_v7  ;;  %v1299_v6 = vld [vmem:[#allocation8 + $0xe10] sm:$0xff]  ;;  %v1345_v24 = vld [vmem:[#allocation8 + $0xf80] sm:$0xff]  ;;  %v1354_v30 = vld [vmem:[#allocation8 + $0xfc8] sm:$0xff] }
 0x359   :  { %4474 = vmatprep.subr.bf16.mxu0 %v4473_v11  ;;  %4602 = vmatprep.subr.bf16.mxu1 %v4601_v12  ;;  %v1303_v7 = vld [vmem:[#allocation8 + $0xe30] sm:$0xff]  ;;  %v1308_v11 = vld [vmem:[#allocation8 + $0xe58] sm:$0xff]  ;;  %v1349_v46 = vld [vmem:[#allocation8 + $0xfa0] sm:$0xff] }
 0x35a   :  { %v1312_v12 = vld [vmem:[#allocation8 + $0xe78] sm:$0xff]  ;;  %v4619_v14 = vpack.c.bf16 %v1303_v7, %v1299_v6  ;;  %v4507_v6 = vpack.c.bf16 %v1333_v58, %v1329_v57  ;;  %v1358_v32 = vld [vmem:[#allocation8 + $0xfe8] sm:$0xff]  ;;  %v1353_v48 = vld [vmem:[#allocation8 + $0xfc0] sm:$0xff] }
 0x35b   :  { %v4621_v21 = vpack.c.bf16 %v1312_v12, %v1308_v11  ;;  %v4509_v11 = vpack.c.bf16 %v1342_v3, %v1338_v2  ;;  %v1357_v38 = vld [vmem:[#allocation8 + $0xfe0] sm:$0xff]  ;;  %v1702_v44 = vld [vmem:[#allocation8 + $0x1008] sm:$0xff]  ;;  %v1703_v57 = vld [vmem:[#allocation8 + $0x1010] sm:$0xff] }
 0x35c   :  { %4476 = vmatpush1.bf16.msra.mxu0 %v4475_v22  ;;  %4604 = vmatpush1.bf16.msra.mxu1 %v4603_v23  ;;  %v1307_v22 = vld [vmem:[#allocation8 + $0xe50] sm:$0xff] }
 0x35d   :  { %4478 = vmatprep.subr.bf16.mxu0 %v4477_v26  ;;  %4606 = vmatprep.subr.bf16.mxu1 %v4605_v27  ;;  %v1311_v23 = vld [vmem:[#allocation8 + $0xe70] sm:$0xff]  ;;  %v1316_v26 = vld [vmem:[#allocation8 + $0xe98] sm:$0xff] }
 0x35e   :  { %v1320_v27 = vld [vmem:[#allocation8 + $0xeb8] sm:$0xff]  ;;  %v4623_v29 = vpack.c.bf16 %v1311_v23, %v1307_v22  ;;  %v4511_v22 = vpack.c.bf16 %v1341_v9, %v1337_v8  ;;  %v1707_v58 = vld [vmem:[#allocation8 + $0x1030] sm:$0xff] }
 0x35f   :  { %v4625_v34 = vpack.c.bf16 %v1320_v27, %v1316_v26  ;;  %v4513_v26 = vpack.c.bf16 %v1350_v18, %v1346_v17  ;;  %v1715_v9 = vld [vmem:[#allocation8 + $0x1070] sm:$0xff] }
 0x360   :  { %4480 = vmatpush1.bf16.msra.mxu0 %v4479_v36  ;;  %4608 = vmatpush1.bf16.msra.mxu1 %v4607_v37  ;;  %v1315_v36 = vld [vmem:[#allocation8 + $0xe90] sm:$0xff] }
 0x361   :  { %4482 = vmatprep.subr.bf16.mxu0 %v4481_v39  ;;  %4610 = vmatprep.subr.bf16.mxu1 %v4609_v40  ;;  %v1319_v37 = vld [vmem:[#allocation8 + $0xeb0] sm:$0xff]  ;;  %v1324_v39 = vld [vmem:[#allocation8 + $0xed8] sm:$0xff] }
 0x362   :  { %v1328_v40 = vld [vmem:[#allocation8 + $0xef8] sm:$0xff]  ;;  %v4627_v42 = vpack.c.bf16 %v1319_v37, %v1315_v36  ;;  %v4515_v36 = vpack.c.bf16 %v1349_v46, %v1345_v24  ;;  %v1719_v24 = vld [vmem:[#allocation8 + $0x1090] sm:$0xff] }
 0x363   :  { %v4629_v50 = vpack.c.bf16 %v1328_v40, %v1324_v39  ;;  %v779_v39 = vrot.slane %v5934_v61, %v5926_v10  ;;  %v4517_v40 = vpack.c.bf16 %v1358_v32, %v1354_v30  ;;  %v1723_v46 = vld [vmem:[#allocation8 + $0x10b0] sm:$0xff] }
 0x364   :  { %4484 = vmatpush1.bf16.msra.mxu0 %v4483_v51  ;;  %4612 = vmatpush1.bf16.msra.mxu1 %v4611_v52  ;;  %v1323_v51 = vld [vmem:[#allocation8 + $0xed0] sm:$0xff]  ;;  %v4787_v32 = vpack.c.bf16 %v1723_v46, %v1719_v24 }
 0x365   :  { %4486 = vmatprep.subr.bf16.mxu0 %v4485_v60  ;;  %4614 = vmatprep.subr.bf16.mxu1 %v4613_v53  ;;  %v1327_v52 = vld [vmem:[#allocation8 + $0xef0] sm:$0xff]  ;;  %v1332_v60 = vld [vmem:[#allocation8 + $0xf18] sm:$0xff]  ;;  %v5081_v35 = vadd.f32 %v5940_v1, %v779_v39  ;;  %v5083_v1 = vadd.f32 %v5946_v19, %v779_v39  ;;  %v1734_v39 = vld [vmem:[#allocation8 + $0x1108] sm:$0xff] }
 0x366   :  { %v1336_v53 = vld [vmem:[#allocation8 + $0xf38] sm:$0xff]  ;;  %v4631_v56 = vpack.c.bf16 %v1327_v52, %v1323_v51  ;;  %v4519_v52 = vpack.c.bf16 %v1357_v38, %v1353_v48  ;;  %v1727_v48 = vld [vmem:[#allocation8 + $0x10d0] sm:$0xff] }
 0x367   :  { %v4633_v62 = vpack.c.bf16 %v1336_v53, %v1332_v60  ;;  %v1708_v51 = vld [vmem:[#allocation8 + $0x1038] sm:$0xff]  ;;  %v1701_v53 = vld [vmem:[#allocation8 + $0x1000] sm:$0xff]  ;;  %v1098_v2 = vmax.f32 %v5081_v35, 0.0  ;;  %v1102_v19 = vmax.f32 %v5083_v1, 0.0  ;;  %v1731_v38 = vld [vmem:[#allocation8 + $0x10f0] sm:$0xff] }
 0x368   :  { %4488 = vmatpush1.bf16.msra.mxu0 %v4487_v55  ;;  %4616 = vmatpush1.bf16.msra.mxu1 %v4615_v63  ;;  %v1331_v55 = vld [vmem:[#allocation8 + $0xf10] sm:$0xff]  ;;  %v1750_v1 = vld [vmem:[#allocation8 + $0x1188] sm:$0xff] }
 0x369   :  { %4490 = vmatprep.subr.bf16.mxu0 %v4489_v4  ;;  %4618 = vmatprep.subr.bf16.mxu1 %v4617_v5  ;;  %v1335_v63 = vld [vmem:[#allocation8 + $0xf30] sm:$0xff]  ;;  %v1340_v4 = vld [vmem:[#allocation8 + $0xf58] sm:$0xff] }
 0x36a   :  { %v1344_v5 = vld [vmem:[#allocation8 + $0xf78] sm:$0xff]  ;;  %v4635_v7 = vpack.c.bf16 %v1335_v63, %v1331_v55  ;;  %v1739_v35 = vld [vmem:[#allocation8 + $0x1130] sm:$0xff] }
 0x36b   :  { %v4637_v12 = vpack.c.bf16 %v1344_v5, %v1340_v4  ;;  %v1712_v55 = vld [vmem:[#allocation8 + $0x1058] sm:$0xff]  ;;  %v4779_v4 = vpack.c.bf16 %v1707_v58, %v1703_v57  ;;  %v1709_v5 = vld [vmem:[#allocation8 + $0x1040] sm:$0xff]  ;;  %v1759_v46 = vld [vmem:[#allocation8 + $0x11d0] sm:$0xff] }
 0x36c   :  { %4492 = vmatpush1.bf16.msra.mxu0 %v4491_v13  ;;  %4620 = vmatpush1.bf16.msra.mxu1 %v4619_v14  ;;  %v1339_v13 = vld [vmem:[#allocation8 + $0xf50] sm:$0xff]  ;;  %v1716_v63 = vld [vmem:[#allocation8 + $0x1078] sm:$0xff]  ;;  %v1741_v58 = vld [vmem:[#allocation8 + $0x1140] sm:$0xff] }
 0x36d   :  { %4494 = vmatprep.subr.bf16.mxu0 %v4493_v20  ;;  %4622 = vmatprep.subr.bf16.mxu1 %v4621_v21  ;;  %v1343_v14 = vld [vmem:[#allocation8 + $0xf70] sm:$0xff]  ;;  %v1348_v20 = vld [vmem:[#allocation8 + $0xf98] sm:$0xff] }
 0x36e   :  { %v1352_v21 = vld [vmem:[#allocation8 + $0xfb8] sm:$0xff]  ;;  %v4639_v23 = vpack.c.bf16 %v1343_v14, %v1339_v13 }
 0x36f   :  { %v4641_v27 = vpack.c.bf16 %v1352_v21, %v1348_v20  ;;  %v1720_v13 = vld [vmem:[#allocation8 + $0x1098] sm:$0xff]  ;;  %v1717_v20 = vld [vmem:[#allocation8 + $0x1080] sm:$0xff] }
 0x370   :  { %4496 = vmatpush1.bf16.msra.mxu0 %v4495_v28  ;;  %4624 = vmatpush1.bf16.msra.mxu1 %v4623_v29  ;;  %v1347_v28 = vld [vmem:[#allocation8 + $0xf90] sm:$0xff]  ;;  %v1724_v14 = vld [vmem:[#allocation8 + $0x10b8] sm:$0xff]  ;;  %v1721_v21 = vld [vmem:[#allocation8 + $0x10a0] sm:$0xff] }
 0x371   :  { %4498 = vmatprep.subr.bf16.mxu0 %v4497_v33  ;;  %4626 = vmatprep.subr.bf16.mxu1 %v4625_v34  ;;  %v1351_v29 = vld [vmem:[#allocation8 + $0xfb0] sm:$0xff]  ;;  %v1356_v33 = vld [vmem:[#allocation8 + $0xfd8] sm:$0xff]  ;;  %v4659_v30 = vpack.c.bf16 %v1721_v21, %v1717_v20  ;;  %v1757_v21 = vld [vmem:[#allocation8 + $0x11c0] sm:$0xff] }
 0x372   :  { %v1360_v34 = vld [vmem:[#allocation8 + $0xff8] sm:$0xff]  ;;  %v4643_v37 = vpack.c.bf16 %v1351_v29, %v1347_v28 }
 0x373   :  { %v1728_v28 = vld [vmem:[#allocation8 + $0x10d8] sm:$0xff] }
 0x374   :  { %4500 = vmatpush1.bf16.msra.mxu0 %v4499_v41  ;;  %4628 = vmatpush1.bf16.msra.mxu1 %v4627_v42  ;;  %v4645_v41 = vpack.c.bf16 %v1360_v34, %v1356_v33  ;;  %v1355_v42 = vld [vmem:[#allocation8 + $0xfd0] sm:$0xff]  ;;  %v1732_v29 = vld [vmem:[#allocation8 + $0x10f8] sm:$0xff]  ;;  %v1725_v33 = vld [vmem:[#allocation8 + $0x10c0] sm:$0xff] }
 0x375   :  { %4502 = vmatprep.subr.bf16.mxu0 %v4501_v45  ;;  %4630 = vmatprep.subr.bf16.mxu1 %v4629_v50  ;;  %v1706_v45 = vld [vmem:[#allocation8 + $0x1028] sm:$0xff]  ;;  %v1704_v50 = vld [vmem:[#allocation8 + $0x1018] sm:$0xff]  ;;  %v4647_v31 = vpack.c.bf16 %v1359_v43, %v1355_v42  ;;  %v1729_v34 = vld [vmem:[#allocation8 + $0x10e0] sm:$0xff] }
 0x376   :  { %v4649_v60 = vpack.c.bf16 %v1706_v45, %v1702_v44  ;;  %v4777_v61 = vpack.c.bf16 %v1708_v51, %v1704_v50  ;;  %v1740_v42 = vld [vmem:[#allocation8 + $0x1138] sm:$0xff]  ;;  %v4663_v43 = vpack.c.bf16 %v1729_v34, %v1725_v33  ;;  %v4791_v44 = vpack.c.bf16 %v1731_v38, %v1727_v48  ;;  %v1733_v45 = vld [vmem:[#allocation8 + $0x1100] sm:$0xff]  ;;  %v1767_v38 = vld [vmem:[#allocation8 + $0x1210] sm:$0xff] }
 0x377   :  { %v1737_v50 = vld [vmem:[#allocation8 + $0x1120] sm:$0xff] }
 0x378   :  { %4504 = vmatpush1.bf16.msra.mxu0 %v4503_v54  ;;  %4632 = vmatpush1.bf16.msra.mxu1 %v4631_v56  ;;  %v1705_v54 = vld [vmem:[#allocation8 + $0x1020] sm:$0xff]  ;;  %v5084_v56 = vadd.f32 %v5948_v25, %v5944_v16  ;;  %v4781_v16 = vpack.c.bf16 %v1716_v63, %v1712_v55  ;;  %v1711_v25 = vld [vmem:[#allocation8 + $0x1050] sm:$0xff] }
 0x379   :  { %4506 = vmatprep.subr.bf16.mxu0 %v4505_v59  ;;  %4634 = vmatprep.subr.bf16.mxu1 %v4633_v62  ;;  %v1710_v59 = vld [vmem:[#allocation8 + $0x1048] sm:$0xff]  ;;  %v4651_v3 = vpack.c.bf16 %v1705_v54, %v1701_v53  ;;  %v4783_v18 = vpack.c.bf16 %v1715_v9, %v1711_v25  ;;  %v1744_v53 = vld [vmem:[#allocation8 + $0x1158] sm:$0xff]  ;;  %v1743_v63 = vld [vmem:[#allocation8 + $0x1150] sm:$0xff] }
 0x37a   :  { %v1714_v62 = vld [vmem:[#allocation8 + $0x1068] sm:$0xff]  ;;  %v1748_v54 = vld [vmem:[#allocation8 + $0x1178] sm:$0xff]  ;;  %v1765_v34 = vld [vmem:[#allocation8 + $0x1200] sm:$0xff] }
 0x37b   :  { %v4653_v8 = vpack.c.bf16 %v1714_v62, %v1710_v59  ;;  %v1745_v59 = vld [vmem:[#allocation8 + $0x1160] sm:$0xff]  ;;  %v4797_v55 = vpack.c.bf16 %v1748_v54, %v1744_v53  ;;  %v1786_v53 = vld [vmem:[#allocation8 + $0x12a8] sm:$0xff]  ;;  %v1784_v54 = vld [vmem:[#allocation8 + $0x1298] sm:$0xff] }
 0x37c   :  { %4508 = vmatpush1.bf16.msra.mxu0 %v4507_v6  ;;  %4636 = vmatpush1.bf16.msra.mxu1 %v4635_v7  ;;  %v1713_v6 = vld [vmem:[#allocation8 + $0x1060] sm:$0xff]  ;;  %v1103_v7 = vmax.f32 %v5084_v56, 0.0  ;;  %v4667_v56 = vpack.c.bf16 %v1737_v50, %v1733_v45 }
 0x37d   :  { %4510 = vmatprep.subr.bf16.mxu0 %v4509_v11  ;;  %4638 = vmatprep.subr.bf16.mxu1 %v4637_v12  ;;  %v1718_v11 = vld [vmem:[#allocation8 + $0x1088] sm:$0xff]  ;;  %v4655_v17 = vpack.c.bf16 %v1713_v6, %v1709_v5  ;;  %v1756_v5 = vld [vmem:[#allocation8 + $0x11b8] sm:$0xff]  ;;  %v4671_v6 = vpack.c.bf16 %v1745_v59, %v1741_v58  ;;  %v1773_v50 = vld [vmem:[#allocation8 + $0x1240] sm:$0xff] }
 0x37e   :  { %v1722_v12 = vld [vmem:[#allocation8 + $0x10a8] sm:$0xff]  ;;  %v1781_v59 = vld [vmem:[#allocation8 + $0x1280] sm:$0xff] }
 0x380   :  { %4512 = vmatpush1.bf16.msra.mxu0 %v4511_v22  ;;  %4640 = vmatpush1.bf16.msra.mxu1 %v4639_v23  ;;  %v4657_v22 = vpack.c.bf16 %v1722_v12, %v1718_v11  ;;  %v4785_v23 = vpack.c.bf16 %v1724_v14, %v1720_v13  ;;  %v1751_v11 = vld [vmem:[#allocation8 + $0x1190] sm:$0xff]  ;;  %v1758_v13 = vld [vmem:[#allocation8 + $0x11c8] sm:$0xff] }
 0x381   :  { %4514 = vmatprep.subr.bf16.mxu0 %v4513_v26  ;;  %4642 = vmatprep.subr.bf16.mxu1 %v4641_v27  ;;  %v1726_v26 = vld [vmem:[#allocation8 + $0x10c8] sm:$0xff]  ;;  %v1755_v12 = vld [vmem:[#allocation8 + $0x11b0] sm:$0xff] }
 0x382   :  { %v1730_v27 = vld [vmem:[#allocation8 + $0x10e8] sm:$0xff]  ;;  %v4803_v20 = vpack.c.bf16 %v1755_v12, %v1751_v11  ;;  %v1791_v12 = vld [vmem:[#allocation8 + $0x12d0] sm:$0xff] }
 0x383   :  { %v1762_v14 = vld [vmem:[#allocation8 + $0x11e8] sm:$0xff] }
 0x384   :  { %4516 = vmatpush1.bf16.msra.mxu0 %v4515_v36  ;;  %4644 = vmatpush1.bf16.msra.mxu1 %v4643_v37  ;;  %v4661_v36 = vpack.c.bf16 %v1730_v27, %v1726_v26  ;;  %v4789_v37 = vpack.c.bf16 %v1732_v29, %v1728_v28  ;;  %v1763_v26 = vld [vmem:[#allocation8 + $0x11f0] sm:$0xff]  ;;  %v1766_v27 = vld [vmem:[#allocation8 + $0x1208] sm:$0xff]  ;;  %v1768_v29 = vld [vmem:[#allocation8 + $0x1218] sm:$0xff] }
 0x385   :  { %4518 = vmatprep.subr.bf16.mxu0 %v4517_v40  ;;  %4646 = vmatprep.subr.bf16.mxu1 %v4645_v41  ;;  %v1738_v40 = vld [vmem:[#allocation8 + $0x1128] sm:$0xff]  ;;  %v1736_v41 = vld [vmem:[#allocation8 + $0x1118] sm:$0xff]  ;;  %v4807_v33 = vpack.c.bf16 %v1763_v26, %v1759_v46  ;;  %v1799_v26 = vld [vmem:[#allocation8 + $0x1310] sm:$0xff] }
 0x386   :  { %v4665_v51 = vpack.c.bf16 %v1738_v40, %v1734_v39  ;;  %v1770_v28 = vld [vmem:[#allocation8 + $0x1228] sm:$0xff]  ;;  %v1771_v39 = vld [vmem:[#allocation8 + $0x1230] sm:$0xff] }
 0x387   :  { %v1774_v40 = vld [vmem:[#allocation8 + $0x1248] sm:$0xff]  ;;  %v4811_v45 = vpack.c.bf16 %v1771_v39, %v1767_v38  ;;  %v1807_v39 = vld [vmem:[#allocation8 + $0x1350] sm:$0xff] }
 0x388   :  { %4520 = vmatpush1.bf16.msra.mxu0 %v4519_v52  ;;  %4648 = vmatpush1.bf16.msra.mxu1 %v4647_v31  ;;  %v4793_v52 = vpack.c.bf16 %v1740_v42, %v1736_v41  ;;  %v1735_v31 = vld [vmem:[#allocation8 + $0x1110] sm:$0xff]  ;;  %v1778_v41 = vld [vmem:[#allocation8 + $0x1268] sm:$0xff]  ;;  %v1776_v42 = vld [vmem:[#allocation8 + $0x1258] sm:$0xff] }
 0x389   :  { %4650 = vmatprep.subr.bf16.mxu0 %v4649_v60  ;;  %4778 = vmatprep.subr.bf16.mxu1 %v4777_v61  ;;  %v1742_v60 = vld [vmem:[#allocation8 + $0x1148] sm:$0xff]  ;;  %v4795_v57 = vpack.c.bf16 %v1739_v35, %v1735_v31  ;;  %v1775_v35 = vld [vmem:[#allocation8 + $0x1250] sm:$0xff] }
 0x38a   :  { %v1746_v61 = vld [vmem:[#allocation8 + $0x1168] sm:$0xff] }
 0x38b   :  { %1526 = vmatmul.mubr.f32.vlgmr.msra.gmra.mrb[8].mxu0 %v1098_v2  ;;  %1680 = vmatmul.mubr.f32.vlgmr.msra.gmra.mrb[8].mxu1 %v1098_v2  ;;  %v4669_v62 = vpack.c.bf16 %v1746_v61, %v1742_v60  ;;  %v1747_v2 = vld [vmem:[#allocation8 + $0x1170] sm:$0xff]  ;;  %v1782_v61 = vld [vmem:[#allocation8 + $0x1288] sm:$0xff] }
 0x38c   :  { %1531 = vmatprep.mubr.f32.mxu0 %v1103_v7  ;;  %1685 = vmatprep.mubr.f32.mxu1 %v1103_v7  ;;  %v4799_v7 = vpack.c.bf16 %v1747_v2, %v1743_v63  ;;  %v1779_v60 = vld [vmem:[#allocation8 + $0x1270] sm:$0xff] }
 0x38d   :  { %4652 = vmatpush1.bf16.msra.mxu0 %v4651_v3  ;;  %4780 = vmatpush1.bf16.msra.mxu1 %v4779_v4  ;;  %v1754_v3 = vld [vmem:[#allocation8 + $0x11a8] sm:$0xff]  ;;  %v1752_v4 = vld [vmem:[#allocation8 + $0x1198] sm:$0xff]  ;;  %v4815_v58 = vpack.c.bf16 %v1779_v60, %v1775_v35  ;;  %v1783_v2 = vld [vmem:[#allocation8 + $0x1290] sm:$0xff] }
 0x38e   :  { %4654 = vmatprep.subr.bf16.mxu0 %v4653_v8  ;;  %4782 = vmatprep.subr.bf16.mxu1 %v4781_v16  ;;  %v1749_v8 = vld [vmem:[#allocation8 + $0x1180] sm:$0xff]  ;;  %v4673_v25 = vpack.c.bf16 %v1754_v3, %v1750_v1  ;;  %v4801_v9 = vpack.c.bf16 %v1756_v5, %v1752_v4  ;;  %v1787_v1 = vld [vmem:[#allocation8 + $0x12b0] sm:$0xff]  ;;  %v1790_v3 = vld [vmem:[#allocation8 + $0x12c8] sm:$0xff] }
 0x38f   :  { %1532 = vmatmul.mubr.f32.gmra.mrb[10].mxu0 %v1102_v19  ;;  %1686 = vmatmul.mubr.f32.gmra.mrb[10].mxu1 %v1102_v19  ;;  %v1753_v16 = vld [vmem:[#allocation8 + $0x11a0] sm:$0xff]  ;;  %v1760_v19 = vld [vmem:[#allocation8 + $0x11d8] sm:$0xff]  ;;  %v1794_v4 = vld [vmem:[#allocation8 + $0x12e8] sm:$0xff] }
 0x390   :  { %v1792_v5 = vld [vmem:[#allocation8 + $0x12d8] sm:$0xff]  ;;  %v1817_v35 = vld [vmem:[#allocation8 + $0x13a0] sm:$0xff]  ;;  %v1815_v60 = vld [vmem:[#allocation8 + $0x1390] sm:$0xff] }
 0x391   :  { %4656 = vmatpush1.bf16.msra.mxu0 %v4655_v17  ;;  %4784 = vmatpush1.bf16.msra.mxu1 %v4783_v18  ;;  %v1764_v17 = vld [vmem:[#allocation8 + $0x11f8] sm:$0xff]  ;;  %v4675_v18 = vpack.c.bf16 %v1753_v16, %v1749_v8  ;;  %v4819_v8 = vpack.c.bf16 %v1787_v1, %v1783_v2  ;;  %v1789_v16 = vld [vmem:[#allocation8 + $0x12c0] sm:$0xff] }
 0x392   :  { %4658 = vmatprep.subr.bf16.mxu0 %v4657_v22  ;;  %4786 = vmatprep.subr.bf16.mxu1 %v4785_v23  ;;  %v1761_v22 = vld [vmem:[#allocation8 + $0x11e0] sm:$0xff]  ;;  %v4677_v23 = vpack.c.bf16 %v1762_v14, %v1758_v13  ;;  %v4805_v24 = vpack.c.bf16 %v1764_v17, %v1760_v19  ;;  %v1795_v13 = vld [vmem:[#allocation8 + $0x12f0] sm:$0xff]  ;;  %v1798_v14 = vld [vmem:[#allocation8 + $0x1308] sm:$0xff] }
 0x393   :  { %v1802_v19 = vld [vmem:[#allocation8 + $0x1328] sm:$0xff]  ;;  %v1800_v17 = vld [vmem:[#allocation8 + $0x1318] sm:$0xff] }
 0x395   :  { %4660 = vmatpush1.bf16.msra.mxu0 %v4659_v30  ;;  %4788 = vmatpush1.bf16.msra.mxu1 %v4787_v32  ;;  %v1772_v30 = vld [vmem:[#allocation8 + $0x1238] sm:$0xff]  ;;  %v4679_v32 = vpack.c.bf16 %v1761_v22, %v1757_v21  ;;  %v4823_v21 = vpack.c.bf16 %v1795_v13, %v1791_v12  ;;  %v1797_v22 = vld [vmem:[#allocation8 + $0x1300] sm:$0xff] }
 0x396   :  { %4662 = vmatprep.subr.bf16.mxu0 %v4661_v36  ;;  %4790 = vmatprep.subr.bf16.mxu1 %v4789_v37  ;;  %v1769_v36 = vld [vmem:[#allocation8 + $0x1220] sm:$0xff]  ;;  %v4681_v37 = vpack.c.bf16 %v1770_v28, %v1766_v27  ;;  %v4809_v48 = vpack.c.bf16 %v1772_v30, %v1768_v29  ;;  %v1803_v27 = vld [vmem:[#allocation8 + $0x1330] sm:$0xff]  ;;  %v1806_v28 = vld [vmem:[#allocation8 + $0x1348] sm:$0xff] }
 0x397   :  { %v1810_v29 = vld [vmem:[#allocation8 + $0x1368] sm:$0xff]  ;;  %v1808_v30 = vld [vmem:[#allocation8 + $0x1358] sm:$0xff] }
 0x399   :  { %4664 = vmatpush1.bf16.msra.mxu0 %v4663_v43  ;;  %4792 = vmatpush1.bf16.msra.mxu1 %v4791_v44  ;;  %v1780_v43 = vld [vmem:[#allocation8 + $0x1278] sm:$0xff]  ;;  %v4683_v44 = vpack.c.bf16 %v1769_v36, %v1765_v34  ;;  %v4827_v34 = vpack.c.bf16 %v1803_v27, %v1799_v26  ;;  %v1805_v36 = vld [vmem:[#allocation8 + $0x1340] sm:$0xff]  ;;  %v1842_v27 = vld [vmem:[#allocation8 + $0x1468] sm:$0xff] }
 0x39a   :  { %4666 = vmatprep.subr.bf16.mxu0 %v4665_v51  ;;  %4794 = vmatprep.subr.bf16.mxu1 %v4793_v52  ;;  %v1777_v51 = vld [vmem:[#allocation8 + $0x1260] sm:$0xff]  ;;  %v4685_v52 = vpack.c.bf16 %v1778_v41, %v1774_v40  ;;  %v4813_v31 = vpack.c.bf16 %v1780_v43, %v1776_v42  ;;  %v1811_v40 = vld [vmem:[#allocation8 + $0x1370] sm:$0xff]  ;;  %v1814_v41 = vld [vmem:[#allocation8 + $0x1388] sm:$0xff] }
 0x39b   :  { %v1818_v42 = vld [vmem:[#allocation8 + $0x13a8] sm:$0xff]  ;;  %v1816_v43 = vld [vmem:[#allocation8 + $0x1398] sm:$0xff] }
 0x39d   :  { %4668 = vmatpush1.bf16.msra.mxu0 %v4667_v56  ;;  %4796 = vmatpush1.bf16.msra.mxu1 %v4795_v57  ;;  %v1788_v56 = vld [vmem:[#allocation8 + $0x12b8] sm:$0xff]  ;;  %v4687_v57 = vpack.c.bf16 %v1777_v51, %v1773_v50  ;;  %v4831_v50 = vpack.c.bf16 %v1811_v40, %v1807_v39  ;;  %v1813_v51 = vld [vmem:[#allocation8 + $0x1380] sm:$0xff] }
 0x39e   :  { %4670 = vmatprep.subr.bf16.mxu0 %v4669_v62  ;;  %4798 = vmatprep.subr.bf16.mxu1 %v4797_v55  ;;  %v1785_v62 = vld [vmem:[#allocation8 + $0x12a0] sm:$0xff]  ;;  %v4689_v55 = vpack.c.bf16 %v1786_v53, %v1782_v61  ;;  %v4817_v63 = vpack.c.bf16 %v1788_v56, %v1784_v54  ;;  %v1819_v61 = vld [vmem:[#allocation8 + $0x13b0] sm:$0xff]  ;;  %v4707_v53 = vpack.c.bf16 %v1817_v35, %v1813_v51  ;;  %v1822_v56 = vld [vmem:[#allocation8 + $0x13c8] sm:$0xff] }
 0x39f   :  { %v4835_v54 = vpack.c.bf16 %v1819_v61, %v1815_v60  ;;  %v1850_v35 = vld [vmem:[#allocation8 + $0x14a8] sm:$0xff]  ;;  %v1848_v60 = vld [vmem:[#allocation8 + $0x1498] sm:$0xff] }
 0x3a0   :  { %v1852_v61 = vld [vmem:[#allocation8 + $0x14b8] sm:$0xff] }
 0x3a1   :  { %4672 = vmatpush1.bf16.msra.mxu0 %v4671_v6  ;;  %4800 = vmatpush1.bf16.msra.mxu1 %v4799_v7  ;;  %v1796_v6 = vld [vmem:[#allocation8 + $0x12f8] sm:$0xff]  ;;  %v4691_v7 = vpack.c.bf16 %v1785_v62, %v1781_v59 }
 0x3a2   :  { %4674 = vmatprep.subr.bf16.mxu0 %v4673_v25  ;;  %4802 = vmatprep.subr.bf16.mxu1 %v4801_v9  ;;  %v1793_v25 = vld [vmem:[#allocation8 + $0x12e0] sm:$0xff]  ;;  %v4693_v9 = vpack.c.bf16 %v1794_v4, %v1790_v3  ;;  %v4821_v11 = vpack.c.bf16 %v1796_v6, %v1792_v5  ;;  %v1828_v62 = vld [vmem:[#allocation8 + $0x13f8] sm:$0xff]  ;;  %v1823_v3 = vld [vmem:[#allocation8 + $0x13d0] sm:$0xff] }
 0x3a3   :  { %v1827_v4 = vld [vmem:[#allocation8 + $0x13f0] sm:$0xff]  ;;  %v1830_v6 = vld [vmem:[#allocation8 + $0x1408] sm:$0xff] }
 0x3a4   :  { %v4839_v5 = vpack.c.bf16 %v1827_v4, %v1823_v3  ;;  %v1858_v3 = vld [vmem:[#allocation8 + $0x14e8] sm:$0xff]  ;;  %v1856_v4 = vld [vmem:[#allocation8 + $0x14d8] sm:$0xff] }
 0x3a5   :  { %4676 = vmatpush1.bf16.msra.mxu0 %v4675_v18  ;;  %4804 = vmatpush1.bf16.msra.mxu1 %v4803_v20  ;;  %v1804_v18 = vld [vmem:[#allocation8 + $0x1338] sm:$0xff]  ;;  %v4695_v20 = vpack.c.bf16 %v1793_v25, %v1789_v16 }
 0x3a6   :  { %4678 = vmatprep.subr.bf16.mxu0 %v4677_v23  ;;  %4806 = vmatprep.subr.bf16.mxu1 %v4805_v24  ;;  %v1801_v23 = vld [vmem:[#allocation8 + $0x1320] sm:$0xff]  ;;  %v4697_v24 = vpack.c.bf16 %v1802_v19, %v1798_v14  ;;  %v4825_v46 = vpack.c.bf16 %v1804_v18, %v1800_v17  ;;  %v1836_v25 = vld [vmem:[#allocation8 + $0x1438] sm:$0xff] }
 0x3a7   :  { %v1829_v17 = vld [vmem:[#allocation8 + $0x1400] sm:$0xff] }
 0x3a8   :  { %v1833_v18 = vld [vmem:[#allocation8 + $0x1420] sm:$0xff] }
 0x3a9   :  { %4680 = vmatpush1.bf16.msra.mxu0 %v4679_v32  ;;  %4808 = vmatpush1.bf16.msra.mxu1 %v4807_v33  ;;  %v1812_v32 = vld [vmem:[#allocation8 + $0x1378] sm:$0xff]  ;;  %v4699_v33 = vpack.c.bf16 %v1801_v23, %v1797_v22  ;;  %v1831_v23 = vld [vmem:[#allocation8 + $0x1410] sm:$0xff] }
 0x3aa   :  { %4682 = vmatprep.subr.bf16.mxu0 %v4681_v37  ;;  %4810 = vmatprep.subr.bf16.mxu1 %v4809_v48  ;;  %v1809_v37 = vld [vmem:[#allocation8 + $0x1360] sm:$0xff]  ;;  %v4701_v48 = vpack.c.bf16 %v1810_v29, %v1806_v28  ;;  %v4829_v38 = vpack.c.bf16 %v1812_v32, %v1808_v30  ;;  %v1840_v28 = vld [vmem:[#allocation8 + $0x1458] sm:$0xff] }
 0x3ab   :  { %v1844_v29 = vld [vmem:[#allocation8 + $0x1478] sm:$0xff] }
 0x3ad   :  { %4684 = vmatpush1.bf16.msra.mxu0 %v4683_v44  ;;  %4812 = vmatpush1.bf16.msra.mxu1 %v4811_v45  ;;  %v1820_v44 = vld [vmem:[#allocation8 + $0x13b8] sm:$0xff]  ;;  %v4703_v45 = vpack.c.bf16 %v1809_v37, %v1805_v36  ;;  %v4715_v36 = vpack.c.bf16 %v1833_v18, %v1829_v17  ;;  %v1862_v17 = vld [vmem:[#allocation8 + $0x1508] sm:$0xff] }
 0x3ae   :  { %4686 = vmatprep.subr.bf16.mxu0 %v4685_v52  ;;  %4814 = vmatprep.subr.bf16.mxu1 %v4813_v31  ;;  %v4705_v52 = vpack.c.bf16 %v1818_v42, %v1814_v41  ;;  %v4833_v31 = vpack.c.bf16 %v1820_v44, %v1816_v43  ;;  %v4845_v43 = vpack.c.bf16 %v1844_v29, %v1840_v28  ;;  %v1841_v44 = vld [vmem:[#allocation8 + $0x1460] sm:$0xff]  ;;  %v1866_v18 = vld [vmem:[#allocation8 + $0x1528] sm:$0xff]  ;;  %v1863_v28 = vld [vmem:[#allocation8 + $0x1510] sm:$0xff] }
 0x3af   :  { %v1867_v29 = vld [vmem:[#allocation8 + $0x1530] sm:$0xff] }
 0x3b1   :  { %4688 = vmatpush1.bf16.msra.mxu0 %v4687_v57  ;;  %4816 = vmatpush1.bf16.msra.mxu1 %v4815_v58  ;;  %v1826_v57 = vld [vmem:[#allocation8 + $0x13e8] sm:$0xff]  ;;  %v1824_v58 = vld [vmem:[#allocation8 + $0x13d8] sm:$0xff] }
 0x3b2   :  { %4690 = vmatprep.subr.bf16.mxu0 %v4689_v55  ;;  %4818 = vmatprep.subr.bf16.mxu1 %v4817_v63  ;;  %v4709_v59 = vpack.c.bf16 %v1826_v57, %v1822_v56  ;;  %v1821_v55 = vld [vmem:[#allocation8 + $0x13c0] sm:$0xff]  ;;  %v4837_v2 = vpack.c.bf16 %v1828_v62, %v1824_v58  ;;  %v1847_v62 = vld [vmem:[#allocation8 + $0x1490] sm:$0xff] }
 0x3b3   :  { %v1825_v63 = vld [vmem:[#allocation8 + $0x13e0] sm:$0xff] }
 0x3b4   :  { %v4711_v1 = vpack.c.bf16 %v1825_v63, %v1821_v55  ;;  %v1845_v57 = vld [vmem:[#allocation8 + $0x1480] sm:$0xff]  ;;  %v1851_v55 = vld [vmem:[#allocation8 + $0x14b0] sm:$0xff]  ;;  %v1854_v63 = vld [vmem:[#allocation8 + $0x14c8] sm:$0xff] }
 0x3b5   :  { %4692 = vmatpush1.bf16.msra.mxu0 %v4691_v7  ;;  %4820 = vmatpush1.bf16.msra.mxu1 %v4819_v8  ;;  %v1834_v7 = vld [vmem:[#allocation8 + $0x1428] sm:$0xff]  ;;  %v1832_v8 = vld [vmem:[#allocation8 + $0x1418] sm:$0xff]  ;;  %v1849_v58 = vld [vmem:[#allocation8 + $0x14a0] sm:$0xff] }
 0x3b6   :  { %4694 = vmatprep.subr.bf16.mxu0 %v4693_v9  ;;  %4822 = vmatprep.subr.bf16.mxu1 %v4821_v11  ;;  %v4713_v16 = vpack.c.bf16 %v1834_v7, %v1830_v6  ;;  %v4841_v9 = vpack.c.bf16 %v1836_v25, %v1832_v8  ;;  %v5957_v11 = vld [vmem:[#allocation10 + $0x4] sm:$0xf]  ;;  %v4723_v7 = vpack.c.bf16 %v1849_v58, %v1845_v57  ;;  %v1879_v57 = vld [vmem:[#allocation8 + $0x1590] sm:$0xff] }
 0x3b7   :  { %v1367_v12 = vrot.slane %v5957_v11, %v5900_v47  ;;  %v1371_v13 = vrot.slane %v5957_v11, %v5905_v49  ;;  %v5967_v30 = vrot.slane %v5957_v11, %v5912_v15  ;;  %v4851_v8 = vpack.c.bf16 %v1851_v55, %v1847_v62  ;;  %v1857_v25 = vld [vmem:[#allocation8 + $0x14e0] sm:$0xff]  ;;  %v1883_v58 = vld [vmem:[#allocation8 + $0x15b0] sm:$0xff]  ;;  %v1890_v62 = vld [vmem:[#allocation8 + $0x15e8] sm:$0xff] }
 0x3b8   :  { %v1888_v55 = vld [vmem:[#allocation8 + $0x15d8] sm:$0xff] }
 0x3b9   :  { %4696 = vmatpush1.bf16.msra.mxu0 %v4695_v20  ;;  %4824 = vmatpush1.bf16.msra.mxu1 %v4823_v21 }
 0x3ba   :  { %4698 = vmatprep.subr.bf16.mxu0 %v4697_v24  ;;  %4826 = vmatprep.subr.bf16.mxu1 %v4825_v46  ;;  %v1835_v24 = vld [vmem:[#allocation8 + $0x1430] sm:$0xff]  ;;  %v1838_v46 = vld [vmem:[#allocation8 + $0x1448] sm:$0xff] }
 0x3bb   :  { %v4843_v37 = vpack.c.bf16 %v1835_v24, %v1831_v23  ;;  %v4717_v42 = vpack.c.bf16 %v1842_v27, %v1838_v46  ;;  %v1861_v24 = vld [vmem:[#allocation8 + $0x1500] sm:$0xff] }
 0x3bc   :  { %v1865_v46 = vld [vmem:[#allocation8 + $0x1520] sm:$0xff] }
 0x3bd   :  { %4700 = vmatpush1.bf16.msra.mxu0 %v4699_v33  ;;  %4828 = vmatpush1.bf16.msra.mxu1 %v4827_v34 }
 0x3be   :  { %4702 = vmatprep.subr.bf16.mxu0 %v4701_v48  ;;  %4830 = vmatprep.subr.bf16.mxu1 %v4829_v38  ;;  %v1837_v48 = vld [vmem:[#allocation8 + $0x1440] sm:$0xff] }
 0x3c1   :  { %4704 = vmatpush1.bf16.msra.mxu0 %v4703_v45  ;;  %4832 = vmatpush1.bf16.msra.mxu1 %v4831_v50  ;;  %v1839_v45 = vld [vmem:[#allocation8 + $0x1450] sm:$0xff] }
 0x3c2   :  { %4706 = vmatprep.subr.bf16.mxu0 %v4705_v52  ;;  %4834 = vmatprep.subr.bf16.mxu1 %v4833_v31  ;;  %v1843_v50 = vld [vmem:[#allocation8 + $0x1470] sm:$0xff]  ;;  %v1846_v52 = vld [vmem:[#allocation8 + $0x1488] sm:$0xff] }
 0x3c3   :  { %v4847_v56 = vpack.c.bf16 %v1843_v50, %v1839_v45  ;;  %v1875_v45 = vld [vmem:[#allocation8 + $0x1570] sm:$0xff]  ;;  %v1878_v50 = vld [vmem:[#allocation8 + $0x1588] sm:$0xff] }
 0x3c5   :  { %4708 = vmatpush1.bf16.msra.mxu0 %v4707_v53  ;;  %4836 = vmatpush1.bf16.msra.mxu1 %v4835_v54  ;;  %v4719_v54 = vpack.c.bf16 %v1841_v44, %v1837_v48  ;;  %v4731_v48 = vpack.c.bf16 %v1865_v46, %v1861_v24  ;;  %v1871_v44 = vld [vmem:[#allocation8 + $0x1550] sm:$0xff]  ;;  %v1902_v24 = vld [vmem:[#allocation8 + $0x1648] sm:$0xff] }
 0x3c6   :  { %4710 = vmatprep.subr.bf16.mxu0 %v4709_v59  ;;  %4838 = vmatprep.subr.bf16.mxu1 %v4837_v2  ;;  %v4721_v2 = vpack.c.bf16 %v1850_v35, %v1846_v52  ;;  %v1880_v52 = vld [vmem:[#allocation8 + $0x1598] sm:$0xff]  ;;  %v1906_v46 = vld [vmem:[#allocation8 + $0x1668] sm:$0xff] }
 0x3c9   :  { %4712 = vmatpush1.bf16.msra.mxu0 %v4711_v1  ;;  %4840 = vmatpush1.bf16.msra.mxu1 %v4839_v5  ;;  %v4849_v1 = vpack.c.bf16 %v1852_v61, %v1848_v60  ;;  %v1860_v5 = vld [vmem:[#allocation8 + $0x14f8] sm:$0xff]  ;;  %v4863_v60 = vpack.c.bf16 %v1875_v45, %v1871_v44  ;;  %v1877_v61 = vld [vmem:[#allocation8 + $0x1580] sm:$0xff] }
 0x3ca   :  { %4714 = vmatprep.subr.bf16.mxu0 %v4713_v16  ;;  %4842 = vmatprep.subr.bf16.mxu1 %v4841_v9  ;;  %v1853_v16 = vld [vmem:[#allocation8 + $0x14c0] sm:$0xff]  ;;  %v4725_v9 = vpack.c.bf16 %v1858_v3, %v1854_v63  ;;  %v1892_v63 = vld [vmem:[#allocation8 + $0x15f8] sm:$0xff] }
 0x3cb   :  { %v1885_v3 = vld [vmem:[#allocation8 + $0x15c0] sm:$0xff] }
 0x45e   :  { %v1527_v14 = vpop.f32.mrb[8].mxu0  ;;  %v5963_v19 = vpop.f32.mrb[8].mxu1 }
 0x45f   :  { %v5085_v20 = vadd.f32 %v1527_v14, %v1367_v12  ;;  %v1529_v21 = vpop.f32.mrb[9].mxu0  ;;  %v1683_v22 = vpop.f32.mrb[9].mxu1  ;;  %v1859_v14 = vld [vmem:[#allocation8 + $0x14f0] sm:$0xff] }
 0x460   :  { %v5086_v26 = vadd.f32 %v1529_v21, %v1371_v13  ;;  %v5090_v31 = vadd.f32 %v1683_v22, %v5967_v30  ;;  %v1868_v21 = vld [vmem:[#allocation8 + $0x1538] sm:$0xff]  ;;  %v4727_v22 = vpack.c.bf16 %v1857_v25, %v1853_v16  ;;  %v1894_v16 = vld [vmem:[#allocation8 + $0x1608] sm:$0xff] }
 0x461   :  { %v1692_v38 = vmax.f32 %v5085_v20, 0.0  ;;  %v1864_v20 = vld [vmem:[#allocation8 + $0x1518] sm:$0xff]  ;;  %v1898_v25 = vld [vmem:[#allocation8 + $0x1628] sm:$0xff] }
 0x462   :  { %v1693_v32 = vmax.f32 %v5086_v26, 0.0  ;;  %v1533_v33 = vpop.f32.mrb[10].mxu0  ;;  %v5969_v34 = vpop.f32.mrb[10].mxu1  ;;  %v1695_v6 = vmax.f32 %v5090_v31, 0.0  ;;  %v4729_v26 = vpack.c.bf16 %v1866_v18, %v1862_v17  ;;  %v4857_v27 = vpack.c.bf16 %v1868_v21, %v1864_v20  ;;  %v1884_v31 = vld [vmem:[#allocation8 + $0x15b8] sm:$0xff]  ;;  %v1893_v17 = vld [vmem:[#allocation8 + $0x1600] sm:$0xff] }
 0x463   :  { %v5087_v39 = vadd.f32 %v1533_v33, %v1367_v12  ;;  %v1535_v40 = vpop.f32.mrb[11].mxu0  ;;  %v5971_v41 = vpop.f32.mrb[11].mxu1  ;;  %v4853_v12 = vpack.c.bf16 %v1860_v5, %v1856_v4  ;;  %v1874_v33 = vld [vmem:[#allocation8 + $0x1568] sm:$0xff]  ;;  %v1889_v4 = vld [vmem:[#allocation8 + $0x15e0] sm:$0xff]  ;;  %v4745_v20 = vpack.c.bf16 %v1898_v25, %v1894_v16 }
 0x464   :  { %v5088_v51 = vadd.f32 %v1535_v40, %v1371_v13  ;;  %2044 = vmatprep.mubr.f32.mxu0 %v1693_v32  ;;  %2198 = vmatprep.mubr.f32.mxu1 %v1693_v32  ;;  %v1855_v13 = vld [vmem:[#allocation8 + $0x14d0] sm:$0xff]  ;;  %v1870_v32 = vld [vmem:[#allocation8 + $0x1548] sm:$0xff]  ;;  %v1873_v40 = vld [vmem:[#allocation8 + $0x1560] sm:$0xff] }
 0x465   :  { %2045 = vmatmul.mubr.f32.vlgmr.msra.gmra.mrb[12].mxu0 %v1692_v38  ;;  %2199 = vmatmul.mubr.f32.vlgmr.msra.gmra.mrb[12].mxu1 %v1692_v38  ;;  %v1696_v59 = vmax.f32 %v5087_v39, 0.0  ;;  %v4855_v23 = vpack.c.bf16 %v1859_v14, %v1855_v13  ;;  %v4859_v38 = vpack.c.bf16 %v1867_v29, %v1863_v28  ;;  %v1869_v39 = vld [vmem:[#allocation8 + $0x1540] sm:$0xff]  ;;  %v4743_v13 = vpack.c.bf16 %v1889_v4, %v1885_v3  ;;  %v1926_v3 = vld [vmem:[#allocation8 + $0x1708] sm:$0xff] }
 0x466   :  { %v1697_v53 = vmax.f32 %v5088_v51, 0.0  ;;  %4716 = vmatpush1.bf16.msra.mxu0 %v4715_v36  ;;  %4844 = vmatpush1.bf16.msra.mxu1 %v4843_v37  ;;  %v1872_v36 = vld [vmem:[#allocation8 + $0x1558] sm:$0xff]  ;;  %v1882_v51 = vld [vmem:[#allocation8 + $0x15a8] sm:$0xff]  ;;  %v4735_v35 = vpack.c.bf16 %v1873_v40, %v1869_v39  ;;  %v1897_v18 = vld [vmem:[#allocation8 + $0x1620] sm:$0xff] }
 0x467   :  { %4718 = vmatprep.subr.bf16.mxu0 %v4717_v42  ;;  %4846 = vmatprep.subr.bf16.mxu1 %v4845_v43  ;;  %v1876_v37 = vld [vmem:[#allocation8 + $0x1578] sm:$0xff]  ;;  %v4733_v42 = vpack.c.bf16 %v1874_v33, %v1870_v32  ;;  %v4747_v28 = vpack.c.bf16 %v1897_v18, %v1893_v17  ;;  %v1901_v32 = vld [vmem:[#allocation8 + $0x1640] sm:$0xff]  ;;  %v1910_v39 = vld [vmem:[#allocation8 + $0x1688] sm:$0xff] }
 0x468   :  { %2050 = vmatprep.mubr.f32.mxu0 %v1697_v53  ;;  %2204 = vmatprep.mubr.f32.mxu1 %v1697_v53  ;;  %v4861_v43 = vpack.c.bf16 %v1876_v37, %v1872_v36  ;;  %v1881_v53 = vld [vmem:[#allocation8 + $0x15a0] sm:$0xff]  ;;  %v4749_v36 = vpack.c.bf16 %v1906_v46, %v1902_v24  ;;  %v1914_v40 = vld [vmem:[#allocation8 + $0x16a8] sm:$0xff] }
 0x469   :  { %2051 = vmatmul.mubr.f32.gmra.mrb[14].mxu0 %v1696_v59  ;;  %2205 = vmatmul.mubr.f32.gmra.mrb[14].mxu1 %v1696_v59  ;;  %v1886_v59 = vld [vmem:[#allocation8 + $0x15c8] sm:$0xff]  ;;  %v1905_v33 = vld [vmem:[#allocation8 + $0x1660] sm:$0xff] }
 0x46a   :  { %4720 = vmatpush1.bf16.msra.mxu0 %v4719_v54  ;;  %4848 = vmatpush1.bf16.msra.mxu1 %v4847_v56  ;;  %v4737_v54 = vpack.c.bf16 %v1882_v51, %v1878_v50  ;;  %v4865_v56 = vpack.c.bf16 %v1884_v31, %v1880_v52  ;;  %v4741_v5 = vpack.c.bf16 %v1890_v62, %v1886_v59  ;;  %v1909_v50 = vld [vmem:[#allocation8 + $0x1680] sm:$0xff]  ;;  %v1930_v4 = vld [vmem:[#allocation8 + $0x1728] sm:$0xff] }
 0x46b   :  { %2121 = vmatprep.mubr.f32.mxu0 %v1695_v6  ;;  %2275 = vmatprep.mubr.f32.mxu1 %v1695_v6  ;;  %v4869_v6 = vpack.c.bf16 %v1892_v63, %v1888_v55  ;;  %v4751_v44 = vpack.c.bf16 %v1905_v33, %v1901_v32  ;;  %v1913_v51 = vld [vmem:[#allocation8 + $0x16a0] sm:$0xff]  ;;  %v4753_v52 = vpack.c.bf16 %v1914_v40, %v1910_v39  ;;  %v1934_v17 = vld [vmem:[#allocation8 + $0x1748] sm:$0xff] }
 0x46c   :  { %4722 = vmatprep.subr.bf16.mxu0 %v4721_v2  ;;  %4850 = vmatprep.subr.bf16.mxu1 %v4849_v1  ;;  %v4739_v2 = vpack.c.bf16 %v1881_v53, %v1877_v61  ;;  %v4867_v1 = vpack.c.bf16 %v1883_v58, %v1879_v57  ;;  %v1918_v61 = vld [vmem:[#allocation8 + $0x16c8] sm:$0xff]  ;;  %v4755_v57 = vpack.c.bf16 %v1913_v51, %v1909_v50  ;;  %v1917_v59 = vld [vmem:[#allocation8 + $0x16c0] sm:$0xff] }
 0x46d   :  { %v1922_v53 = vld [vmem:[#allocation8 + $0x16e8] sm:$0xff]  ;;  %v1921_v62 = vld [vmem:[#allocation8 + $0x16e0] sm:$0xff] }
 0x46e   :  { %4724 = vmatpush1.bf16.msra.mxu0 %v4723_v7  ;;  %4852 = vmatpush1.bf16.msra.mxu1 %v4851_v8  ;;  %v1887_v7 = vld [vmem:[#allocation8 + $0x15d0] sm:$0xff]  ;;  %v4757_v55 = vpack.c.bf16 %v1922_v53, %v1918_v61  ;;  %v1925_v16 = vld [vmem:[#allocation8 + $0x1700] sm:$0xff]  ;;  %v1938_v18 = vld [vmem:[#allocation8 + $0x1768] sm:$0xff] }
 0x46f   :  { %4726 = vmatprep.subr.bf16.mxu0 %v4725_v9  ;;  %4854 = vmatprep.subr.bf16.mxu1 %v4853_v12  ;;  %v1891_v8 = vld [vmem:[#allocation8 + $0x15f0] sm:$0xff]  ;;  %v1896_v9 = vld [vmem:[#allocation8 + $0x1618] sm:$0xff]  ;;  %v1929_v25 = vld [vmem:[#allocation8 + $0x1720] sm:$0xff] }
 0x470   :  { %v1900_v12 = vld [vmem:[#allocation8 + $0x1638] sm:$0xff]  ;;  %v4871_v14 = vpack.c.bf16 %v1891_v8, %v1887_v7  ;;  %v4759_v7 = vpack.c.bf16 %v1921_v62, %v1917_v59  ;;  %v1933_v24 = vld [vmem:[#allocation8 + $0x1740] sm:$0xff]  ;;  %v1942_v32 = vld [vmem:[#allocation8 + $0x1788] sm:$0xff] }
 0x471   :  { %v4873_v21 = vpack.c.bf16 %v1900_v12, %v1896_v9  ;;  %v4761_v9 = vpack.c.bf16 %v1930_v4, %v1926_v3  ;;  %v1937_v46 = vld [vmem:[#allocation8 + $0x1760] sm:$0xff]  ;;  %v1946_v33 = vld [vmem:[#allocation8 + $0x17a8] sm:$0xff]  ;;  %v1955_v59 = vld [vmem:[#allocation8 + $0x17f0] sm:$0xff] }
 0x472   :  { %4728 = vmatpush1.bf16.msra.mxu0 %v4727_v22  ;;  %4856 = vmatpush1.bf16.msra.mxu1 %v4855_v23  ;;  %v1895_v22 = vld [vmem:[#allocation8 + $0x1610] sm:$0xff]  ;;  %v1941_v39 = vld [vmem:[#allocation8 + $0x1780] sm:$0xff]  ;;  %v1950_v50 = vld [vmem:[#allocation8 + $0x17c8] sm:$0xff] }
 0x473   :  { %4730 = vmatprep.subr.bf16.mxu0 %v4729_v26  ;;  %4858 = vmatprep.subr.bf16.mxu1 %v4857_v27  ;;  %v1899_v23 = vld [vmem:[#allocation8 + $0x1630] sm:$0xff]  ;;  %v1904_v26 = vld [vmem:[#allocation8 + $0x1658] sm:$0xff]  ;;  %v1945_v40 = vld [vmem:[#allocation8 + $0x17a0] sm:$0xff] }
 0x474   :  { %v1908_v27 = vld [vmem:[#allocation8 + $0x1678] sm:$0xff]  ;;  %v4875_v29 = vpack.c.bf16 %v1899_v23, %v1895_v22  ;;  %v4763_v22 = vpack.c.bf16 %v1929_v25, %v1925_v16  ;;  %v1954_v51 = vld [vmem:[#allocation8 + $0x17e8] sm:$0xff]  ;;  %v1949_v61 = vld [vmem:[#allocation8 + $0x17c0] sm:$0xff] }
 0x475   :  { %v4877_v37 = vpack.c.bf16 %v1908_v27, %v1904_v26  ;;  %v4765_v26 = vpack.c.bf16 %v1938_v18, %v1934_v17  ;;  %v1953_v53 = vld [vmem:[#allocation8 + $0x17e0] sm:$0xff]  ;;  %v2312_v62 = vld [vmem:[#allocation11 + $0x80] sm:$0xff]  ;;  %v2329_v25 = vld [vmem:[#allocation11 + $0x108] sm:$0xff] }
 0x476   :  { %4732 = vmatpush1.bf16.msra.mxu0 %v4731_v48  ;;  %4860 = vmatpush1.bf16.msra.mxu1 %v4859_v38  ;;  %v1903_v48 = vld [vmem:[#allocation8 + $0x1650] sm:$0xff] }
 0x477   :  { %4734 = vmatprep.subr.bf16.mxu0 %v4733_v42  ;;  %4862 = vmatprep.subr.bf16.mxu1 %v4861_v43  ;;  %v1907_v38 = vld [vmem:[#allocation8 + $0x1670] sm:$0xff]  ;;  %v1912_v42 = vld [vmem:[#allocation8 + $0x1698] sm:$0xff] }
 0x478   :  { %v1916_v43 = vld [vmem:[#allocation8 + $0x16b8] sm:$0xff]  ;;  %v4879_v45 = vpack.c.bf16 %v1907_v38, %v1903_v48  ;;  %v4767_v48 = vpack.c.bf16 %v1937_v46, %v1933_v24  ;;  %v2328_v16 = vld [vmem:[#allocation11 + $0x100] sm:$0xff]  ;;  %v2331_v46 = vld [vmem:[#allocation11 + $0x118] sm:$0xff] }
 0x479   :  { %v4881_v31 = vpack.c.bf16 %v1916_v43, %v1912_v42  ;;  %v4769_v42 = vpack.c.bf16 %v1946_v33, %v1942_v32 }
 0x47a   :  { %4736 = vmatpush1.bf16.msra.mxu0 %v4735_v35  ;;  %4864 = vmatpush1.bf16.msra.mxu1 %v4863_v60  ;;  %v1911_v35 = vld [vmem:[#allocation8 + $0x1690] sm:$0xff] }
 0x47b   :  { %4738 = vmatprep.subr.bf16.mxu0 %v4737_v54  ;;  %4866 = vmatprep.subr.bf16.mxu1 %v4865_v56  ;;  %v1915_v60 = vld [vmem:[#allocation8 + $0x16b0] sm:$0xff]  ;;  %v1920_v54 = vld [vmem:[#allocation8 + $0x16d8] sm:$0xff] }
 0x47c   :  { %v1924_v56 = vld [vmem:[#allocation8 + $0x16f8] sm:$0xff]  ;;  %v4883_v58 = vpack.c.bf16 %v1915_v60, %v1911_v35  ;;  %v4771_v35 = vpack.c.bf16 %v1945_v40, %v1941_v39  ;;  %v2332_v39 = vld [vmem:[#allocation11 + $0x120] sm:$0xff] }
 0x47d   :  { %v4885_v63 = vpack.c.bf16 %v1924_v56, %v1920_v54  ;;  %v1375_v54 = vrot.slane %v5957_v11, %v5926_v10  ;;  %v4773_v56 = vpack.c.bf16 %v1954_v51, %v1950_v50  ;;  %v2296_v11 = vld [vmem:[#allocation11] sm:$0xff]  ;;  %v2333_v40 = vld [vmem:[#allocation11 + $0x128] sm:$0xff] }
 0x47e   :  { %4740 = vmatpush1.bf16.msra.mxu0 %v4739_v2  ;;  %4868 = vmatpush1.bf16.msra.mxu1 %v4867_v1  ;;  %v1919_v2 = vld [vmem:[#allocation8 + $0x16d0] sm:$0xff]  ;;  %v4947_v51 = vpack.c.bf16 %v2333_v40, %v2332_v39 }
 0x47f   :  { %4742 = vmatprep.subr.bf16.mxu0 %v4741_v5  ;;  %4870 = vmatprep.subr.bf16.mxu1 %v4869_v6  ;;  %v1923_v1 = vld [vmem:[#allocation8 + $0x16f0] sm:$0xff]  ;;  %v1928_v5 = vld [vmem:[#allocation8 + $0x1718] sm:$0xff]  ;;  %v5089_v4 = vadd.f32 %v5963_v19, %v1375_v54  ;;  %v5091_v19 = vadd.f32 %v5969_v34, %v1375_v54 }
 0x480   :  { %v1932_v6 = vld [vmem:[#allocation8 + $0x1738] sm:$0xff]  ;;  %v4887_v8 = vpack.c.bf16 %v1923_v1, %v1919_v2  ;;  %v4775_v1 = vpack.c.bf16 %v1953_v53, %v1949_v61  ;;  %v2335_v53 = vld [vmem:[#allocation11 + $0x138] sm:$0xff]  ;;  %v2320_v54 = vld [vmem:[#allocation11 + $0xc0] sm:$0xff] }
 0x481   :  { %v4889_v12 = vpack.c.bf16 %v1932_v6, %v1928_v5  ;;  %v2345_v2 = vld [vmem:[#allocation11 + $0x188] sm:$0xff]  ;;  %v1694_v17 = vmax.f32 %v5089_v4, 0.0  ;;  %v1698_v34 = vmax.f32 %v5091_v19, 0.0  ;;  %v2334_v61 = vld [vmem:[#allocation11 + $0x130] sm:$0xff]  ;;  %v2324_v19 = vld [vmem:[#allocation11 + $0xe0] sm:$0xff] }
 0x482   :  { %4744 = vmatpush1.bf16.msra.mxu0 %v4743_v13  ;;  %4872 = vmatpush1.bf16.msra.mxu1 %v4871_v14  ;;  %v1927_v13 = vld [vmem:[#allocation8 + $0x1710] sm:$0xff] }
 0x483   :  { %4746 = vmatprep.subr.bf16.mxu0 %v4745_v20  ;;  %4874 = vmatprep.subr.bf16.mxu1 %v4873_v21  ;;  %v1931_v14 = vld [vmem:[#allocation8 + $0x1730] sm:$0xff]  ;;  %v1936_v20 = vld [vmem:[#allocation8 + $0x1758] sm:$0xff] }
 0x484   :  { %v1940_v21 = vld [vmem:[#allocation8 + $0x1778] sm:$0xff]  ;;  %v4891_v23 = vpack.c.bf16 %v1931_v14, %v1927_v13  ;;  %v2347_v14 = vld [vmem:[#allocation11 + $0x198] sm:$0xff] }
 0x485   :  { %v4893_v27 = vpack.c.bf16 %v1940_v21, %v1936_v20  ;;  %v2297_v6 = vld [vmem:[#allocation11 + $0x8] sm:$0xff]  ;;  %v2346_v13 = vld [vmem:[#allocation11 + $0x190] sm:$0xff]  ;;  %v4939_v20 = vpack.c.bf16 %v2329_v25, %v2328_v16 }
 0x486   :  { %4748 = vmatpush1.bf16.msra.mxu0 %v4747_v28  ;;  %4876 = vmatpush1.bf16.msra.mxu1 %v4875_v29  ;;  %v1935_v28 = vld [vmem:[#allocation8 + $0x1750] sm:$0xff]  ;;  %v4907_v18 = vpack.c.bf16 %v2297_v6, %v2296_v11  ;;  %v2298_v21 = vld [vmem:[#allocation11 + $0x10] sm:$0xff]  ;;  %v2323_v11 = vld [vmem:[#allocation11 + $0xd8] sm:$0xff] }
 0x487   :  { %4750 = vmatprep.subr.bf16.mxu0 %v4749_v36  ;;  %4878 = vmatprep.subr.bf16.mxu1 %v4877_v37  ;;  %v1939_v29 = vld [vmem:[#allocation8 + $0x1770] sm:$0xff]  ;;  %v1944_v36 = vld [vmem:[#allocation8 + $0x1798] sm:$0xff] }
 0x488   :  { %v1948_v37 = vld [vmem:[#allocation8 + $0x17b8] sm:$0xff]  ;;  %v4895_v38 = vpack.c.bf16 %v1939_v29, %v1935_v28  ;;  %v2348_v28 = vld [vmem:[#allocation11 + $0x1a0] sm:$0xff] }
 0x489   :  { %v4897_v43 = vpack.c.bf16 %v1948_v37, %v1944_v36  ;;  %v2349_v29 = vld [vmem:[#allocation11 + $0x1a8] sm:$0xff]  ;;  %v2300_v36 = vld [vmem:[#allocation11 + $0x20] sm:$0xff]  ;;  %v2354_v6 = vld [vmem:[#allocation11 + $0x1d0] sm:$0xff] }
 0x48a   :  { %4752 = vmatpush1.bf16.msra.mxu0 %v4751_v44  ;;  %4880 = vmatpush1.bf16.msra.mxu1 %v4879_v45  ;;  %v1943_v44 = vld [vmem:[#allocation8 + $0x1790] sm:$0xff]  ;;  %v2306_v25 = vld [vmem:[#allocation11 + $0x50] sm:$0xff] }
 0x48b   :  { %4754 = vmatprep.subr.bf16.mxu0 %v4753_v52  ;;  %4882 = vmatprep.subr.bf16.mxu1 %v4881_v31  ;;  %v1947_v45 = vld [vmem:[#allocation8 + $0x17b0] sm:$0xff]  ;;  %v1952_v52 = vld [vmem:[#allocation8 + $0x17d8] sm:$0xff] }
 0x48c   :  { %v1956_v31 = vld [vmem:[#allocation8 + $0x17f8] sm:$0xff]  ;;  %v4899_v60 = vpack.c.bf16 %v1947_v45, %v1943_v44  ;;  %v2351_v45 = vld [vmem:[#allocation11 + $0x1b8] sm:$0xff] }
 0x48d   :  { %v2301_v37 = vld [vmem:[#allocation11 + $0x28] sm:$0xff]  ;;  %v2350_v44 = vld [vmem:[#allocation11 + $0x1b0] sm:$0xff] }
 0x48e   :  { %4756 = vmatpush1.bf16.msra.mxu0 %v4755_v57  ;;  %4884 = vmatpush1.bf16.msra.mxu1 %v4883_v58  ;;  %v4901_v57 = vpack.c.bf16 %v1956_v31, %v1952_v52  ;;  %v1951_v58 = vld [vmem:[#allocation8 + $0x17d0] sm:$0xff]  ;;  %v4915_v50 = vpack.c.bf16 %v2301_v37, %v2300_v36  ;;  %v2302_v52 = vld [vmem:[#allocation11 + $0x30] sm:$0xff]  ;;  %v2303_v31 = vld [vmem:[#allocation11 + $0x38] sm:$0xff] }
 0x48f   :  { %4758 = vmatprep.subr.bf16.mxu0 %v4757_v55  ;;  %4886 = vmatprep.subr.bf16.mxu1 %v4885_v63  ;;  %v2313_v55 = vld [vmem:[#allocation11 + $0x88] sm:$0xff]  ;;  %v2344_v63 = vld [vmem:[#allocation11 + $0x180] sm:$0xff]  ;;  %v4903_v3 = vpack.c.bf16 %v1955_v59, %v1951_v58  ;;  %v4919_v59 = vpack.c.bf16 %v2303_v31, %v2302_v52  ;;  %v2310_v37 = vld [vmem:[#allocation11 + $0x70] sm:$0xff] }
 0x490   :  { %v4905_v5 = vpack.c.bf16 %v2313_v55, %v2312_v62  ;;  %v2353_v58 = vld [vmem:[#allocation11 + $0x1c8] sm:$0xff]  ;;  %v4951_v62 = vpack.c.bf16 %v2335_v53, %v2334_v61  ;;  %v2304_v55 = vld [vmem:[#allocation11 + $0x40] sm:$0xff] }
 0x491   :  { %v2337_v4 = vld [vmem:[#allocation11 + $0x148] sm:$0xff] }
 0x492   :  { %4760 = vmatpush1.bf16.msra.mxu0 %v4759_v7  ;;  %4888 = vmatpush1.bf16.msra.mxu1 %v4887_v8  ;;  %v4937_v7 = vpack.c.bf16 %v2345_v2, %v2344_v63  ;;  %v5092_v8 = vadd.f32 %v5971_v41, %v5967_v30  ;;  %v4941_v30 = vpack.c.bf16 %v2347_v14, %v2346_v13  ;;  %v2330_v41 = vld [vmem:[#allocation11 + $0x110] sm:$0xff]  ;;  %v2305_v63 = vld [vmem:[#allocation11 + $0x48] sm:$0xff] }
 0x493   :  { %4762 = vmatprep.subr.bf16.mxu0 %v4761_v9  ;;  %4890 = vmatprep.subr.bf16.mxu1 %v4889_v12  ;;  %v2314_v9 = vld [vmem:[#allocation11 + $0x90] sm:$0xff]  ;;  %v2315_v12 = vld [vmem:[#allocation11 + $0x98] sm:$0xff]  ;;  %v4943_v33 = vpack.c.bf16 %v2331_v46, %v2330_v41  ;;  %v2309_v41 = vld [vmem:[#allocation11 + $0x68] sm:$0xff] }
 0x494   :  { %v4909_v24 = vpack.c.bf16 %v2315_v12, %v2314_v9  ;;  %v2307_v9 = vld [vmem:[#allocation11 + $0x58] sm:$0xff]  ;;  %v2338_v14 = vld [vmem:[#allocation11 + $0x150] sm:$0xff] }
 0x496   :  { %4764 = vmatpush1.bf16.msra.mxu0 %v4763_v22  ;;  %4892 = vmatpush1.bf16.msra.mxu1 %v4891_v23  ;;  %v2299_v22 = vld [vmem:[#allocation11 + $0x18] sm:$0xff]  ;;  %v1699_v23 = vmax.f32 %v5092_v8, 0.0  ;;  %v4923_v8 = vpack.c.bf16 %v2305_v63, %v2304_v55 }
 0x497   :  { %4766 = vmatprep.subr.bf16.mxu0 %v4765_v26  ;;  %4894 = vmatprep.subr.bf16.mxu1 %v4893_v27  ;;  %v2316_v26 = vld [vmem:[#allocation11 + $0xa0] sm:$0xff]  ;;  %v2317_v27 = vld [vmem:[#allocation11 + $0xa8] sm:$0xff]  ;;  %v4911_v32 = vpack.c.bf16 %v2299_v22, %v2298_v21  ;;  %v4927_v22 = vpack.c.bf16 %v2307_v9, %v2306_v25 }
 0x498   :  { %v2357_v21 = vld [vmem:[#allocation11 + $0x1e8] sm:$0xff] }
 0x49a   :  { %4768 = vmatpush1.bf16.msra.mxu0 %v4767_v48  ;;  %4896 = vmatpush1.bf16.msra.mxu1 %v4895_v38  ;;  %v4913_v48 = vpack.c.bf16 %v2317_v27, %v2316_v26  ;;  %v4945_v38 = vpack.c.bf16 %v2349_v29, %v2348_v28  ;;  %v2340_v27 = vld [vmem:[#allocation11 + $0x160] sm:$0xff]  ;;  %v2341_v28 = vld [vmem:[#allocation11 + $0x168] sm:$0xff] }
 0x49b   :  { %4770 = vmatprep.subr.bf16.mxu0 %v4769_v42  ;;  %4898 = vmatprep.subr.bf16.mxu1 %v4897_v43  ;;  %v2318_v42 = vld [vmem:[#allocation11 + $0xb0] sm:$0xff]  ;;  %v2319_v43 = vld [vmem:[#allocation11 + $0xb8] sm:$0xff]  ;;  %v4963_v29 = vpack.c.bf16 %v2341_v28, %v2340_v27 }
 0x49e   :  { %4772 = vmatpush1.bf16.msra.mxu0 %v4771_v35  ;;  %4900 = vmatpush1.bf16.msra.mxu1 %v4899_v60  ;;  %v4917_v35 = vpack.c.bf16 %v2319_v43, %v2318_v42  ;;  %v4949_v60 = vpack.c.bf16 %v2351_v45, %v2350_v44  ;;  %v2342_v42 = vld [vmem:[#allocation11 + $0x170] sm:$0xff]  ;;  %v2343_v43 = vld [vmem:[#allocation11 + $0x178] sm:$0xff]  ;;  %v5580_v45 = vmov 0.0|0.0  }
 0x49f   :  { %4774 = vmatprep.subr.bf16.mxu0 %v4773_v56  ;;  %4902 = vmatprep.subr.bf16.mxu1 %v4901_v57  ;;  %v2321_v56 = vld [vmem:[#allocation11 + $0xc8] sm:$0xff]  ;;  %v2352_v57 = vld [vmem:[#allocation11 + $0x1c0] sm:$0xff]  ;;  %v4967_v44 = vpack.c.bf16 %v2343_v43, %v2342_v42 }
 0x4a0   :  { %v4921_v2 = vpack.c.bf16 %v2321_v56, %v2320_v54  ;;  %v3672_v42 = vld [vmem:[#allocation16] ss:$0 sm:$0xff] }
 0x4a2   :  { %4776 = vmatpush1.bf16.msra.mxu0 %v4775_v1  ;;  %4904 = vmatpush1.bf16.msra.mxu1 %v4903_v3  ;;  %v4953_v1 = vpack.c.bf16 %v2353_v58, %v2352_v57  ;;  %v2336_v3 = vld [vmem:[#allocation11 + $0x140] sm:$0xff] }
 0x4a3   :  { %4906 = vmatprep.subr.bf16.mxu0 %v4905_v5  ;;  %4938 = vmatprep.subr.bf16.mxu1 %v4937_v7  ;;  %v2322_v5 = vld [vmem:[#allocation11 + $0xd0] sm:$0xff]  ;;  %v2355_v7 = vld [vmem:[#allocation11 + $0x1d8] sm:$0xff]  ;;  %v4955_v16 = vpack.c.bf16 %v2337_v4, %v2336_v3  ;;  %v2608_v58 = vld [vmem:[%s6159_s9] sm:$0xff] }
 0x4a4   :  { %v4925_v12 = vpack.c.bf16 %v2323_v11, %v2322_v5  ;;  %v4957_v13 = vpack.c.bf16 %v2355_v7, %v2354_v6  ;;  %v2521_v7 = vld [vmem:[#allocation14] sm:$0x1f] }
 0x4a5   :  { %2122 = vmatmul.mubr.f32.vlgmr.msra.gmra.mrb[12].mxu0 %v1694_v17  ;;  %2276 = vmatmul.mubr.f32.vlgmr.msra.gmra.mrb[12].mxu1 %v1694_v17  ;;  %v2339_v17 = vld [vmem:[#allocation11 + $0x158] sm:$0xff] }
 0x4a6   :  { %2127 = vmatprep.mubr.f32.mxu0 %v1699_v23  ;;  %2281 = vmatprep.mubr.f32.mxu1 %v1699_v23  ;;  %v4959_v23 = vpack.c.bf16 %v2339_v17, %v2338_v14  ;;  %v5582_v14 = vmov 1.0   ;;  %v2610_v17 = vld [vmem:[%s6159_s9 + $0x10] sm:$0xff] }
 0x4a7   :  { %4908 = vmatpush3.bf16.msra.mxu0 %v4907_v18  ;;  %4940 = vmatpush3.bf16.msra.mxu1 %v4939_v20  ;;  %v2325_v18 = vld [vmem:[#allocation11 + $0xe8] sm:$0xff]  ;;  %v2356_v20 = vld [vmem:[#allocation11 + $0x1e0] sm:$0xff] }
 0x4a8   :  { %4910 = vmatprep.subr.bf16.mxu0 %v4909_v24  ;;  %4942 = vmatprep.subr.bf16.mxu1 %v4941_v30  ;;  %v4929_v24 = vpack.c.bf16 %v2325_v18, %v2324_v19  ;;  %v2308_v30 = vld [vmem:[#allocation11 + $0x60] sm:$0xff]  ;;  %v4961_v46 = vpack.c.bf16 %v2357_v21, %v2356_v20  ;;  %v2611_v19 = vld [vmem:[%s6159_s9 + $0x18] sm:$0xff]  ;;  %v2613_v21 = vld [vmem:[%s6159_s9 + $0x28] sm:$0xff] }
 0x4a9   :  { %2128 = vmatmul.mubr.f32.gmra.mrb[14].mxu0 %v1698_v34  ;;  %2282 = vmatmul.mubr.f32.gmra.mrb[14].mxu1 %v1698_v34  ;;  %v4931_v26 = vpack.c.bf16 %v2309_v41, %v2308_v30  ;;  %v2326_v34 = vld [vmem:[#allocation11 + $0xf0] sm:$0xff]  ;;  %v4973_v18 = vpack.c.bf16 %v2611_v19, %v2610_v17  ;;  %v2612_v20 = vld [vmem:[%s6159_s9 + $0x20] sm:$0xff]  ;;  %v5584_v30 = vmov 1   ;;  %v3700_v19 = vld [vmem:[%s6159_s9 + $0xb8] sm:$0xff] }
 0x4aa   :  { %5157 = vset.pattern.permute.xlu0 %v5584_v30  ;;  %v3699_v17 = vld [vmem:[%s6159_s9 + $0xb0] sm:$0xff] }
 0x4ab   :  { %4912 = vmatpush3.bf16.msra.mxu0 %v4911_v32  ;;  %4944 = vmatpush3.bf16.msra.mxu1 %v4943_v33  ;;  %v2327_v32 = vld [vmem:[#allocation11 + $0xf8] sm:$0xff]  ;;  %v2358_v33 = vld [vmem:[#allocation11 + $0x1f0] sm:$0xff] }
 0x4ac   :  { %4914 = vmatprep.subr.bf16.mxu0 %v4913_v48  ;;  %4946 = vmatprep.subr.bf16.mxu1 %v4945_v38  ;;  %v4933_v36 = vpack.c.bf16 %v2327_v32, %v2326_v34  ;;  %v2311_v48 = vld [vmem:[#allocation11 + $0x78] sm:$0xff] }
 0x4ad   :  { %v2359_v38 = vld [vmem:[#allocation11 + $0x1f8] sm:$0xff]  ;;  %v4935_v39 = vpack.c.bf16 %v2311_v48, %v2310_v37 }
 0x4ae   :  { %v4965_v40 = vpack.c.bf16 %v2359_v38, %v2358_v33 }
 0x4af   :  { %4916 = vmatpush3.bf16.msra.mxu0 %v4915_v50  ;;  %4948 = vmatpush3.bf16.msra.mxu1 %v4947_v51  ;;  %v1958_v50 = vld [vmem:[#allocation10 + $0x8] sm:$0xf] }
 0x4b0   :  { %4918 = vmatprep.subr.bf16.mxu0 %v4917_v35  ;;  %4950 = vmatprep.subr.bf16.mxu1 %v4949_v60  ;;  %v1963_v51 = vrot.slane %v1958_v50, %v5900_v47  ;;  %v1971_v52 = vrot.slane %v1958_v50, %v5926_v10  ;;  %v1967_v31 = vrot.slane %v1958_v50, %v5905_v49 }
 0x4b1   :  { %v1975_v35 = vrot.slane %v1958_v50, %v5912_v15 }
 0x4b3   :  { %4920 = vmatpush3.bf16.msra.mxu0 %v4919_v59  ;;  %4952 = vmatpush3.bf16.msra.mxu1 %v4951_v62  ;;  %v2609_v59 = vld [vmem:[%s6159_s9 + $0x8] sm:$0xff] }
 0x4b4   :  { %4922 = vmatprep.subr.bf16.mxu0 %v4921_v2  ;;  %4954 = vmatprep.subr.bf16.mxu1 %v4953_v1  ;;  %v4970_v2 = vpack.c.bf16 %v2609_v59, %v2608_v58  ;;  %v3681_v59 = vld [vmem:[%s6159_s9 + $0x50] sm:$0xff] }
 0x4b7   :  { %4924 = vmatpush3.bf16.msra.mxu0 %v4923_v8  ;;  %4956 = vmatpush3.bf16.msra.mxu1 %v4955_v16 }
 0x4b8   :  { %4926 = vmatprep.subr.bf16.mxu0 %v4925_v12  ;;  %4958 = vmatprep.subr.bf16.mxu1 %v4957_v13 }
 0x4bb   :  { %4928 = vmatpush3.bf16.msra.mxu0 %v4927_v22  ;;  %4960 = vmatpush3.bf16.msra.mxu1 %v4959_v23  ;;  %v4976_v22 = vpack.c.bf16 %v2613_v21, %v2612_v20  ;;  %v5583_v23 = vmov 0   ;;  %v3701_v20 = vld [vmem:[%s6159_s9 + $0xc0] sm:$0xff] }
 0x4bc   :  { %4930 = vmatprep.subr.bf16.mxu0 %v4929_v24  ;;  %4962 = vmatprep.subr.bf16.mxu1 %v4961_v46  ;;  %v2614_v24 = vld [vmem:[%s6159_s9 + $0x30] sm:$0x3]  ;;  %v5000_v21 = vpack.c.bf16 %v3701_v20, %v3700_v19 }
 0x4bd   :  { %5156 = vset.pattern.permute.xlu1 %v5583_v23  ;;  %v3143_v19 = vld [vmem:[#allocation22 + $0x58] sm:$0xff] }
 0x4bf   :  { %4932 = vmatpush3.bf16.msra.mxu0 %v4931_v26  ;;  %4964 = vmatpush3.bf16.msra.mxu1 %v4963_v29  ;;  %v3671_v26 = vld [vmem:[#allocation13] ss:$0 sm:$0xff] }
 0x4c0   :  { %4934 = vmatprep.subr.bf16.mxu0 %v4933_v36  ;;  %4966 = vmatprep.subr.bf16.mxu1 %v4965_v40 }
 0x4c3   :  { %4936 = vmatpush3.bf16.msra.mxu0 %v4935_v39  ;;  %4968 = vmatpush3.bf16.msra.mxu1 %v4967_v44 }
 0x4c4   :  { %3898 = vmatprep.subr.mxu0 %v5579_v0  ;;  %4969 = vmatprep.subr.bf16.mxu1 %v5580_v45 }
 0x578   :  { %v2123_v60 = vpop.f32.mrb[12].mxu0  ;;  %v2277_v61 = vpop.f32.mrb[12].mxu1 }
 0x579   :  { %v5093_v53 = vadd.f32 %v2123_v60, %v1963_v51  ;;  %v5097_v54 = vadd.f32 %v2277_v61, %v1971_v52  ;;  %v2125_v56 = vpop.f32.mrb[13].mxu0  ;;  %v2279_v57 = vpop.f32.mrb[13].mxu1 }
 0x57a   :  { %v5094_v62 = vadd.f32 %v2125_v56, %v1967_v31  ;;  %v5098_v10 = vadd.f32 %v2279_v57, %v1975_v35  ;;  %v3679_v56 = vld [vmem:[%s6159_s9 + $0x40] sm:$0xff]  ;;  %v3680_v57 = vld [vmem:[%s6159_s9 + $0x48] sm:$0xff] }
 0x57b   :  { %v2288_v1 = vmax.f32 %v5093_v53, 0.0  ;;  %v2290_v3 = vmax.f32 %v5097_v54, 0.0  ;;  %v3678_v54 = vld [vmem:[%s6159_s9 + $0x38] sm:$0xff] }
 0x57c   :  { %v2289_v55 = vmax.f32 %v5094_v62, 0.0  ;;  %v2291_v49 = vmax.f32 %v5098_v10, 0.0  ;;  %v2129_v63 = vpop.f32.mrb[14].mxu0  ;;  %v2283_v15 = vpop.f32.mrb[14].mxu1  ;;  %v4979_v58 = vpack.c.bf16 %v3679_v56, %v3678_v54  ;;  %v4982_v62 = vpack.c.bf16 %v3681_v59, %v3680_v57  ;;  %v3682_v10 = vld [vmem:[%s6159_s9 + $0x58] sm:$0xff] }
 0x57d   :  { %v5095_v4 = vadd.f32 %v2129_v63, %v1963_v51  ;;  %v5099_v5 = vadd.f32 %v2283_v15, %v1971_v52  ;;  %v2131_v11 = vpop.f32.mrb[15].mxu0  ;;  %v2285_v6 = vpop.f32.mrb[15].mxu1  ;;  %v3684_v63 = vld [vmem:[%s6159_s9 + $0x68] sm:$0x3]  ;;  %v3688_v15 = vld [vmem:[%s6159_s9 + $0x70] sm:$0xff]  ;;  %v3043_v56 = vld [vmem:[#allocation22 + $0x28] sm:$0xff] }
 0x57e   :  { %v5096_v8 = vadd.f32 %v2131_v11, %v1967_v31  ;;  %v5100_v16 = vadd.f32 %v2285_v6, %v1975_v35  ;;  %2431 = vmatprep.mubr.f32.mxu0 %v2289_v55  ;;  %2506 = vmatprep.mubr.f32.mxu1 %v2291_v49  ;;  %v3683_v55 = vld [vmem:[%s6159_s9 + $0x60] sm:$0xff]  ;;  %v3675_v11 = vld [vmem:[#allocation17] ss:$0 sm:$0xff]  ;;  %v3042_v54 = vld [vmem:[#allocation22 + $0x20] sm:$0xff] }
 0x57f   :  { %2432 = vmatmul.mubr.f32.vlgmr.msra.gmra.mrb[16].mxu0 %v2288_v1  ;;  %2507 = vmatmul.mubr.f32.vlgmr.msra.gmra.mrb[16].mxu1 %v2290_v3  ;;  %v2292_v12 = vmax.f32 %v5095_v4, 0.0  ;;  %v2294_v13 = vmax.f32 %v5099_v5, 0.0  ;;  %v4985_v49 = vpack.c.bf16 %v3683_v55, %v3682_v10  ;;  %v3690_v1 = vld [vmem:[%s6159_s9 + $0x80] sm:$0xff]  ;;  %v3691_v4 = vld [vmem:[%s6159_s9 + $0x88] sm:$0xff]  ;;  %v5013_v57 = vpack.c.bf16 %v3043_v56, %v3042_v54  ;;  %v3140_v59 = vld [vmem:[#allocation22 + $0x40] sm:$0xff] }
 0x580   :  { %v2293_v25 = vmax.f32 %v5096_v8, 0.0  ;;  %v2295_v9 = vmax.f32 %v5100_v16, 0.0  ;;  %3899 = vmatpush3.msk.msra.mxu0 %vm2533_vm0, %v2521_v7  ;;  %4971 = vmatpush3.bf16.msra.mxu1 %v4970_v2  ;;  %v3689_v2 = vld [vmem:[%s6159_s9 + $0x78] sm:$0xff]  ;;  %v4991_v5 = vpack.c.bf16 %v3691_v4, %v3690_v1  ;;  %v3142_v55 = vld [vmem:[#allocation22 + $0x50] sm:$0xff]  ;;  %v3708_v4 = vld [vmem:[#allocation19] ss:$0 sm:$0xff] }
 0x581   :  { %4972 = vmatprep.subr.bf16.mxu1 %v5580_v45  ;;  %4978 = vmatprep.subr.bf16.mxu0 %v5580_v45  ;;  %v4988_v3 = vpack.c.bf16 %v3689_v2, %v3688_v15  ;;  %v3349_v56 = vld [vmem:[#allocation22 + $0xd8] sm:$0x3] }
 0x582   :  { %2436 = vmatprep.mubr.f32.mxu0 %v2293_v25  ;;  %2511 = vmatprep.mubr.f32.mxu1 %v2295_v9  ;;  %v3692_v25 = vld [vmem:[%s6159_s9 + $0x90] sm:$0xff]  ;;  %v3693_v9 = vld [vmem:[%s6159_s9 + $0x98] sm:$0xff] }
 0x583   :  { %2437 = vmatmul.mubr.f32.gmra.mrb[18].mxu0 %v2292_v12  ;;  %2512 = vmatmul.mubr.f32.gmra.mrb[18].mxu1 %v2294_v13  ;;  %v4994_v12 = vpack.c.bf16 %v3693_v9, %v3692_v25  ;;  %v3694_v13 = vld [vmem:[%s6159_s9 + $0xa0] sm:$0x3] }
 0x584   :  { %3900 = vmatprep.mubr.msk.f32.mxu0 %vm5581_vm1, %v5579_v0  ;;  %3917 = vmatprep.mubr.msk.f32.mxu1 %vm5581_vm1, %v5579_v0 }
 0x585   :  { %4974 = vmatpush3.bf16.msra.mxu1 %v4973_v18 }
 0x586   :  { %4975 = vmatprep.subr.bf16.mxu1 %v5580_v45 }
 0x587   :  { %3901 = vmatmul.mubr.msk.f32.vlgmr.msra.gmra.mrb[20].mxu0 %vm2529_vm2, %v5582_v14  ;;  %v3698_v14 = vld [vmem:[%s6159_s9 + $0xa8] sm:$0xff] }
 0x588   :  { %3934 = vmatprep.mubr.msk.f32.mxu0 %vm5581_vm1, %v5579_v0  ;;  %4980 = vmatpush3.bf16.msra.mxu0 %v4979_v58  ;;  %v4997_v18 = vpack.c.bf16 %v3699_v17, %v3698_v14  ;;  %v3044_v58 = vld [vmem:[#allocation22 + $0x30] sm:$0x3] }
 0x589   :  { %4977 = vmatpush3.bf16.msra.mxu1 %v4976_v22  ;;  %4981 = vmatprep.subr.bf16.mxu0 %v5580_v45  ;;  %v3685_v22 = vld [vmem:[#allocation17 + $0x1] ss:$0 sm:$0xff] }
 0x58a   :  { %3915 = vmatprep.subr.mxu1 %v5579_v0 }
 0x58c   :  { %4983 = vmatpush3.bf16.msra.mxu0 %v4982_v62  ;;  %v3141_v62 = vld [vmem:[#allocation22 + $0x48] sm:$0xff] }
 0x58d   :  { %3916 = vmatpush3.msk.msra.mxu1 %vm2626_vm3, %v2614_v24  ;;  %4984 = vmatprep.subr.bf16.mxu0 %v5580_v45 }
 0x58e   :  { %4987 = vmatprep.subr.bf16.mxu1 %v5580_v45 }
 0x590   :  { %4986 = vmatpush3.bf16.msra.mxu0 %v4985_v49  ;;  %v5021_v49 = vpack.c.bf16 %v3142_v55, %v3141_v62  ;;  %v3448_v62 = vld [vmem:[#allocation22 + $0xf8] sm:$0xff] }
 0x591   :  { %3932 = vmatprep.subr.mxu0 %v5579_v0  ;;  %v3718_v55 = vld [vmem:[#allocation23 + $0x2] ss:$0 sm:$0xff] }
 0x594   :  { %3933 = vmatpush3.msk.msra.mxu0 %vm2626_vm3, %v3684_v63 }
 0x595   :  { %4996 = vmatprep.subr.bf16.mxu0 %v5580_v45 }
 0x652   :  { %v3766_v41 = vpop.f32.mrb[16].mxu0  ;;  %v3804_v46 = vpop.f32.mrb[16].mxu1 }
 0x653   :  { %v3767_v27 = vpop.f32.mrb[17].mxu0  ;;  %v3805_v28 = vpop.f32.mrb[17].mxu1 }
 0x654   :  { %v3768_v29 = vadd.f32 %v3767_v27, %v3766_v41  ;;  %v3806_v34 = vadd.f32 %v3805_v28, %v3804_v46  ;;  %v3702_v46 = vld [vmem:[%s6159_s9 + $0xc8] sm:$0xff] }
 0x655   :  { %v3695_v28 = vld [vmem:[#allocation17 + $0x2] ss:$0 sm:$0xff] }
 0x656   :  { %v2434_v32 = vadd.f32 %v3768_v29, %v3671_v26  ;;  %v3769_v33 = vpop.f32.mrb[18].mxu0  ;;  %v3807_v36 = vpop.f32.mrb[18].mxu1 }
 0x657   :  { %v3770_v37 = vpop.f32.mrb[19].mxu0  ;;  %v3808_v48 = vpop.f32.mrb[19].mxu1 }
 0x658   :  { %v6020_v38 = vadd.f32 %v3806_v34, %v2434_v32  ;;  %v3771_v39 = vadd.f32 %v3770_v37, %v3769_v33  ;;  %v3809_v40 = vadd.f32 %v3808_v48, %v3807_v36  ;;  %v3705_v36 = vld [vmem:[#allocation17 + $0x3] ss:$0 sm:$0xff] }
 0x65a   :  { %v2439_v43 = vadd.f32 %v3771_v39, %v3671_v26  ;;  %v2603_v44 = vpop.f32.mrb[20].mxu0  ;;  %v2517_v50 = vadd.f32 1.0, %v6020_v38  ;;  %v3703_v26 = vld [vmem:[%s6159_s9 + $0xd0] sm:$0xff] }
 0x65b   :  { %v2604_v51 = vadd.f32 %v3672_v42, %v2603_v44  ;;  %v3902_v52 = vpop.f32.mrb[21].mxu0  ;;  %v5003_v27 = vpack.c.bf16 %v3703_v26, %v3702_v46  ;;  %v3710_v46 = vld [vmem:[#allocation23] ss:$0 sm:$0xff] }
 0x65c   :  { %v2514_v31 = vadd.f32 %v3809_v40, %v2439_v43  ;;  %v2519_v35 = vmax.f32 %v2517_v50, 0.0  ;;  %v3038_v52 = vld [vmem:[#allocation22] sm:$0xff] }
 0x65d   :  { %v2607_v60 = vmax.f32 %v2604_v51, 0.0 }
 0x65e   :  { %3012 = vperm.xlu1 %5156, %v2519_v35   ;;  %v2518_v61 = vadd.f32 1.0, %v2514_v31 }
 0x65f   :  { %3918 = vmatmul.mubr.msk.f32.vlgmr.msra.gmra.mrb[20].mxu1 %vm2622_vm4, %v2607_v60  ;;  %v3040_v60 = vld [vmem:[#allocation22 + $0x10] sm:$0xff] }
 0x660   :  { %v2520_v53 = vmax.f32 %v2518_v61, 0.0  ;;  %3951 = vmatprep.mubr.msk.f32.mxu1 %vm5581_vm1, %v5579_v0  ;;  %4989 = vmatpush3.bf16.msra.mxu1 %v4988_v3  ;;  %v3041_v61 = vld [vmem:[#allocation22 + $0x18] sm:$0xff] }
 0x661   :  { %4990 = vmatprep.subr.bf16.mxu1 %v5580_v45 }
 0x662   :  { %3017 = vperm.xlu1 %5156, %v2520_v53   ;;  %v5009_v53 = vpack.c.bf16 %v3041_v61, %v3040_v60  ;;  %v3347_v61 = vld [vmem:[#allocation22 + $0xc8] sm:$0xff] }
 0x664   :  { %4992 = vmatpush3.bf16.msra.mxu1 %v4991_v5 }
 0x665   :  { %4993 = vmatprep.subr.bf16.mxu1 %v5580_v45 }
 0x666   :  { %5158 = vset.pattern.permute.xlu1 %v5584_v30 }
 0x667   :  { %3033 = vperm.xlu1 %5158, %v2514_v31   ;;  %v3039_v31 = vld [vmem:[#allocation22 + $0x8] sm:$0xff] }
 0x668   :  { %4995 = vmatpush3.bf16.msra.mxu1 %v4994_v12  ;;  %v5005_v35 = vpack.c.bf16 %v3039_v31, %v3038_v52 }
 0x669   :  { %3949 = vmatprep.subr.mxu1 %v5579_v0 }
 0x66c   :  { %3950 = vmatpush3.msk.msra.mxu1 %vm2626_vm3, %v3694_v13 }
 0x66d   :  { %5006 = vmatprep.subr.bf16.mxu1 %v5005_v35 }
 0x6dd   :  { %v3013_v1 = vpop.permute.xlu1 %3012 }
 0x732   :  { %v2696_v6 = vpop.f32.mrb[20].mxu1 }
 0x733   :  { %v2697_v7 = vadd.f32 %v3675_v11, %v2696_v6  ;;  %v3919_v8 = vpop.f32.mrb[21].mxu1  ;;  %v3709_v11 = vld [vmem:[#allocation20] ss:$0 sm:$0xff] }
 0x735   :  { %v2700_v16 = vmax.f32 %v2697_v7, 0.0  ;;  %v3018_v7 = vpop.permute.xlu1 %3017 }
 0x737   :  { %3935 = vmatmul.mubr.msk.f32.vlgmr.msra.gmra.mrb[22].mxu0 %vm2622_vm4, %v2700_v16 }
 0x738   :  { %3968 = vmatprep.mubr.msk.f32.mxu0 %vm5581_vm1, %v5579_v0  ;;  %4998 = vmatpush3.bf16.msra.mxu0 %v4997_v18  ;;  %v3144_v18 = vld [vmem:[#allocation22 + $0x60] sm:$0xff] }
 0x739   :  { %4999 = vmatprep.subr.bf16.mxu0 %v5580_v45  ;;  %v3034_v12 = vpop.permute.xlu1 %3033  ;;  %v5025_v20 = vpack.c.bf16 %v3144_v18, %v3143_v19 }
 0x73c   :  { %5001 = vmatpush3.bf16.msra.mxu0 %v5000_v21  ;;  %v3145_v21 = vld [vmem:[#allocation22 + $0x68] sm:$0x3] }
 0x73d   :  { %5002 = vmatprep.subr.bf16.mxu0 %v5580_v45  ;;  %v3704_v45 = vld [vmem:[%s6159_s9 + $0xd8] sm:$0x3]  ;;  %s5585_s9 = smov [#allocation28]  }
 0x73e   :  { %s3651_s16 = sshll.u32 %s5585_s9, 4  ;;  %s3652_s16 = int_to_ptr.vmem [resolvable:$true] %s3651_s16 }
 0x73f   :  { %s5513_s11 = scalar_lea.vmem %s3652_s16, 256  ;;  %p5518_p3 = scmp.lt.s32.totalorder %s3652_s16, %s3652_s16 }
 0x740   :  { %5004 = vmatpush3.bf16.msra.mxu0 %v5003_v27  ;;  %p5514_p2 = scmp.ne.s32.totalorder %s3652_s16, %s5513_s11  ;;  %p5519_p4 = scmp.lt.s32.totalorder %s5513_s11, %s5513_s11 }
 0x741   :  { %3966 = vmatprep.subr.mxu0 %v5579_v0 }
 0x742   :  { %p5520_p5 = por %p5519_p4, %p5518_p3 }
 0x744   :  { %3967 = vmatpush3.msk.msra.mxu0 %vm2626_vm3, %v3704_v45  ;;  %p5521_p6 = pnand %p5520_p5, %p5514_p2 }
 0x80a   :  { %v2789_v23 = vpop.f32.mrb[22].mxu0 }
 0x80b   :  { %v2790_v24 = vadd.f32 %v3685_v22, %v2789_v23  ;;  %v3936_v30 = vpop.f32.mrb[23].mxu0  ;;  %v3242_v22 = vld [vmem:[#allocation22 + $0x78] sm:$0xff]  ;;  %v3243_v23 = vld [vmem:[#allocation22 + $0x80] sm:$0xff] }
 0x80c   :  { %v3244_v30 = vld [vmem:[#allocation22 + $0x88] sm:$0xff] }
 0x80d   :  { %v2793_v41 = vmax.f32 %v2790_v24, 0.0 }
 0x80f   :  { %3952 = vmatmul.mubr.msk.f32.vlgmr.msra.gmra.mrb[22].mxu1 %vm2622_vm4, %v2793_v41  ;;  %v5033_v41 = vpack.c.bf16 %v3244_v30, %v3243_v23  ;;  %v3726_v30 = vld [vmem:[#allocation23 + $0x4] ss:$0 sm:$0xff] }
 0x810   :  { %5008 = vmatpush3.bf16.msra.mxu1 %v5005_v35 }
 0x811   :  { %5010 = vmatprep.subr.bf16.mxu1 %v5009_v53 }
 0x814   :  { %5012 = vmatpush3.bf16.msra.mxu1 %v5009_v53  ;;  %v3348_v53 = vld [vmem:[#allocation22 + $0xd0] sm:$0xff] }
 0x815   :  { %5014 = vmatprep.subr.bf16.mxu1 %v5013_v57  ;;  %v5049_v54 = vpack.c.bf16 %v3348_v53, %v3347_v61 }
 0x818   :  { %5016 = vmatpush3.bf16.msra.mxu1 %v5013_v57  ;;  %v3445_v57 = vld [vmem:[#allocation22 + $0xe0] sm:$0xff] }
 0x819   :  { %3983 = vmatprep.subr.msk.mxu1 %vm2626_vm3, %v3044_v58 }
 0x81c   :  { %3984 = vmatpush3.msk.msra.mxu1 %vm2626_vm3, %v3044_v58  ;;  %v3446_v58 = vld [vmem:[#allocation22 + $0xe8] sm:$0xff] }
 0x8e2   :  { %v2882_v29 = vpop.f32.mrb[22].mxu1 }
 0x8e3   :  { %v2883_v34 = vadd.f32 %v3695_v28, %v2882_v29  ;;  %v3953_v32 = vpop.f32.mrb[23].mxu1 }
 0x8e4   :  { %v3245_v32 = vld [vmem:[#allocation22 + $0x90] sm:$0xff] }
 0x8e5   :  { %v2886_v33 = vmax.f32 %v2883_v34, 0.0 }
 0x8e7   :  { %3969 = vmatmul.mubr.msk.f32.vlgmr.msra.gmra.mrb[24].mxu0 %vm2622_vm4, %v2886_v33  ;;  %v3246_v33 = vld [vmem:[#allocation22 + $0x98] sm:$0xff] }
 0x9ba   :  { %v2975_v37 = vpop.f32.mrb[24].mxu0 }
 0x9bb   :  { %v2976_v48 = vadd.f32 %v3705_v36, %v2975_v37  ;;  %v3970_v39 = vpop.f32.mrb[25].mxu0  ;;  %v5037_v36 = vpack.c.bf16 %v3246_v33, %v3245_v32  ;;  %v3247_v37 = vld [vmem:[#allocation22 + $0xa0] sm:$0x3] }
 0x9bc   :  { %v3344_v39 = vld [vmem:[#allocation22 + $0xb0] sm:$0xff] }
 0x9bd   :  { %v2979_v40 = vmax.f32 %v2976_v48, 0.0  ;;  %v3343_v48 = vld [vmem:[#allocation22 + $0xa8] sm:$0xff] }
 0x9bf   :  { %v2980_v0 = vsel %vm2622_vm4, %v2979_v40, 0.0 }
 0x9c0   :  { %2981 = vadd.xlane.f32.xlu0 %v2980_v0  ;;  %v5041_v0 = vpack.c.bf16 %v3344_v39, %v3343_v48 }
 0xa4d   :  { %v2982_v42 = vpop.xlane.xlu0 %2981 }
 0xa4e   :  { %v2984_v43 = vmul.f32 0.02, %v2982_v42  ;;  %v3346_v42 = vld [vmem:[#allocation22 + $0xc0] sm:$0xff] }
 0xa50   :  { %v2985_v44 = vsub.f32 %v2979_v40, %v2984_v43  ;;  %v3345_v40 = vld [vmem:[#allocation22 + $0xb8] sm:$0xff] }
 0xa51   :  { %v5045_v43 = vpack.c.bf16 %v3346_v42, %v3345_v40 }
 0xa52   :  { %v2986_v50 = vmul.f32 %v2985_v44, %v2985_v44 }
 0xa54   :  { %v2987_v51 = vsel %vm2622_vm4, %v2986_v50, 0.0 }
 0xa55   :  { %2988 = vadd.xlane.f32.xlu0 %v2987_v51 }
 0xa6b   :  { %3028 = vperm.xlu0 %5157, %v6020_v38   ;;  %v3139_v38 = vld [vmem:[#allocation22 + $0x38] sm:$0xff] }
 0xa6c   :  { %v5017_v10 = vpack.c.bf16 %v3140_v59, %v3139_v38  ;;  %v3447_v38 = vld [vmem:[#allocation22 + $0xf0] sm:$0xff]  ;;  %v5053_v59 = vpack.c.bf16 %v3446_v58, %v3445_v57 }
 0xa6e   :  { %5018 = vmatprep.subr.bf16.mxu0 %v5017_v10 }
 0xa6f   :  { %5020 = vmatpush3.bf16.msra.mxu0 %v5017_v10  ;;  %v5057_v10 = vpack.c.bf16 %v3448_v62, %v3447_v38 }
 0xa70   :  { %5022 = vmatprep.subr.bf16.mxu0 %v5021_v49 }
 0xa73   :  { %5024 = vmatpush3.bf16.msra.mxu0 %v5021_v49 }
 0xa74   :  { %5026 = vmatprep.subr.bf16.mxu0 %v5025_v20 }
 0xa77   :  { %5028 = vmatpush3.bf16.msra.mxu0 %v5025_v20 }
 0xa78   :  { %4000 = vmatprep.subr.msk.mxu0 %vm2626_vm3, %v3145_v21 }
 0xa7b   :  { %4001 = vmatpush3.msk.msra.mxu0 %vm2626_vm3, %v3145_v21 }
 0xa7c   :  { %5042 = vmatprep.subr.bf16.mxu0 %v5041_v0 }
 0xae2   :  { %v2989_v63 = vpop.xlane.xlu0 %2988 }
 0xae3   :  { %v2990_v15 = vmul.f32 0.02, %v2989_v63 }
 0xae5   :  { %v2991_v2 = vadd.f32 1e-05, %v2990_v15 }
 0xae7   :  { %5159 = vrsqrt.f32 %v2991_v2 }
 0xaea   :  { %v3029_v13 = vpop.permute.xlu0 %3028 }
 0xaf1   :  { %v5160_v3 = vpop.eup %5159 }
 0xaf2   :  { %v2993_v5 = vmul.f32 %v5160_v3, %v2985_v44  ;;  %v3714_v44 = vld [vmem:[#allocation23 + $0x1] ss:$0 sm:$0xff] }
 0xaf4   :  { %v3001_v6 = vmul.f32 %v3708_v4, %v2993_v5  ;;  %v3449_v4 = vld [vmem:[#allocation22 + $0x100] sm:$0xff]  ;;  %v3450_v5 = vld [vmem:[#allocation22 + $0x108] sm:$0xff] }
 0xaf6   :  { %v3009_v8 = vadd.f32 %v3709_v11, %v3001_v6  ;;  %v5061_v11 = vpack.c.bf16 %v3450_v5, %v3449_v4  ;;  %v3451_v6 = vld [vmem:[#allocation22 + $0x110] sm:$0x3] }
 0xaf8   :  { %v3023_v16 = vrot.slane %v3009_v8, %v5900_v47  ;;  %v3241_v47 = vld [vmem:[#allocation22 + $0x70] sm:$0xff]  ;;  %v3547_v8 = vld [vmem:[#allocation25 + $0x8] sm:$0xff] }
 0xaf9   :  { %v5029_v24 = vpack.c.bf16 %v3242_v22, %v3241_v47  ;;  %v3550_v47 = vld [vmem:[#allocation25 + $0x20] sm:$0xff]  ;;  %v3551_v22 = vld [vmem:[#allocation25 + $0x28] sm:$0xff] }
 0xafa   :  { %v3024_v25 = vmul.f32 %v3023_v16, %v3013_v1  ;;  %v3025_v9 = vmul.f32 %v3023_v16, %v3018_v7  ;;  %v3546_v7 = vld [vmem:[#allocation25] sm:$0xff]  ;;  %v3548_v16 = vld [vmem:[#allocation25 + $0x10] sm:$0xff]  ;;  %v5073_v23 = vpack.c.bf16 %v3551_v22, %v3550_v47 }
 0xafb   :  { %5030 = vmatprep.subr.bf16.mxu1 %v5029_v24 }
 0xafc   :  { %v3036_v14 = vadd.f32 %v3029_v13, %v3024_v25  ;;  %v3037_v17 = vadd.f32 %v3034_v12, %v3025_v9  ;;  %v5065_v25 = vpack.c.bf16 %v3547_v8, %v3546_v7  ;;  %v3549_v9 = vld [vmem:[#allocation25 + $0x18] sm:$0xff] }
 0xafd   :  { %v5069_v12 = vpack.c.bf16 %v3549_v9, %v3548_v16  ;;  %v3722_v13 = vld [vmem:[#allocation23 + $0x3] ss:$0 sm:$0xff] }
 0xafe   :  { %3985 = vmatprep.mubr.msk.f32.mxu1 %vm2622_vm4, %v3036_v14 }
 0xaff   :  { %3986 = vmatmul.mubr.msk.f32.vlgmr.msra.gmra.mrb[24].mxu1 %vm2622_vm4, %v3037_v17 }
 0xb00   :  { %5032 = vmatpush3.bf16.msra.mxu1 %v5029_v24  ;;  %v3552_v24 = vld [vmem:[#allocation25 + $0x30] sm:$0x3] }
 0xb01   :  { %5034 = vmatprep.subr.bf16.mxu1 %v5033_v41 }
 0xb04   :  { %5036 = vmatpush3.bf16.msra.mxu1 %v5033_v41 }
 0xb05   :  { %5038 = vmatprep.subr.bf16.mxu1 %v5037_v36 }
 0xb08   :  { %5040 = vmatpush3.bf16.msra.mxu1 %v5037_v36 }
 0xb09   :  { %4017 = vmatprep.subr.msk.mxu1 %vm2626_vm3, %v3247_v37 }
 0xb0c   :  { %4018 = vmatpush3.msk.msra.mxu1 %vm2626_vm3, %v3247_v37 }
 0xb0d   :  { %5054 = vmatprep.subr.bf16.mxu1 %v5053_v59 }
 0xbd2   :  { %v3987_v26 = vpop.f32.mrb[24].mxu1 }
 0xbd3   :  { %v3133_v27 = vadd.f32 %v3987_v26, %v3710_v46  ;;  %v3127_v45 = vpop.f32.mrb[25].mxu1 }
 0xbd4   :  { %v3128_v28 = vadd.f32 %v3710_v46, %v3127_v45 }
 0xbd5   :  { %v3137_v34 = vmax.f32 %v3133_v27, 0.0 }
 0xbd6   :  { %v3136_v29 = vmax.f32 %v3128_v28, 0.0 }
 0xbd8   :  { %4002 = vmatprep.mubr.msk.f32.mxu0 %vm2622_vm4, %v3136_v29  ;;  %v3730_v29 = vld [vmem:[#allocation26] ss:$0 sm:$0xff] }
 0xbd9   :  { %4003 = vmatmul.mubr.msk.f32.vlgmr.msra.gmra.mrb[26].mxu0 %vm2622_vm4, %v3137_v34 }
 0xbda   :  { %5044 = vmatpush3.bf16.msra.mxu0 %v5041_v0 }
 0xbdb   :  { %5046 = vmatprep.subr.bf16.mxu0 %v5045_v43 }
 0xbde   :  { %5048 = vmatpush3.bf16.msra.mxu0 %v5045_v43 }
 0xbdf   :  { %5050 = vmatprep.subr.bf16.mxu0 %v5049_v54 }
 0xbe2   :  { %5052 = vmatpush3.bf16.msra.mxu0 %v5049_v54 }
 0xbe3   :  { %4034 = vmatprep.subr.msk.mxu0 %vm2626_vm3, %v3349_v56 }
 0xbe6   :  { %4035 = vmatpush3.msk.msra.mxu0 %vm2626_vm3, %v3349_v56 }
 0xbe7   :  { %5066 = vmatprep.subr.bf16.mxu0 %v5065_v25 }
 0xcac   :  { %v4004_v50 = vpop.f32.mrb[26].mxu0 }
 0xcad   :  { %v3235_v51 = vadd.f32 %v4004_v50, %v3714_v44  ;;  %v3229_v52 = vpop.f32.mrb[27].mxu0 }
 0xcae   :  { %v3230_v31 = vadd.f32 %v3714_v44, %v3229_v52 }
 0xcaf   :  { %v3239_v60 = vmax.f32 %v3235_v51, 0.0 }
 0xcb0   :  { %v3238_v35 = vmax.f32 %v3230_v31, 0.0 }
 0xcb2   :  { %4019 = vmatprep.mubr.msk.f32.mxu1 %vm2622_vm4, %v3238_v35 }
 0xcb3   :  { %4020 = vmatmul.mubr.msk.f32.vlgmr.msra.gmra.mrb[26].mxu1 %vm2622_vm4, %v3239_v60 }
 0xcb4   :  { %5056 = vmatpush3.bf16.msra.mxu1 %v5053_v59 }
 0xcb5   :  { %5058 = vmatprep.subr.bf16.mxu1 %v5057_v10 }
 0xcb8   :  { %5060 = vmatpush3.bf16.msra.mxu1 %v5057_v10 }
 0xcb9   :  { %5062 = vmatprep.subr.bf16.mxu1 %v5061_v11 }
 0xcbc   :  { %5064 = vmatpush3.bf16.msra.mxu1 %v5061_v11 }
 0xcbd   :  { %4051 = vmatprep.subr.msk.mxu1 %vm2626_vm3, %v3451_v6 }
 0xcc0   :  { %4052 = vmatpush3.msk.msra.mxu1 %vm2626_vm3, %v3451_v6 }
 0xd86   :  { %v4021_v49 = vpop.f32.mrb[26].mxu1 }
 0xd87   :  { %v3337_v63 = vadd.f32 %v4021_v49, %v3718_v55  ;;  %v3331_v15 = vpop.f32.mrb[27].mxu1 }
 0xd88   :  { %v3332_v2 = vadd.f32 %v3718_v55, %v3331_v15 }
 0xd89   :  { %v3341_v3 = vmax.f32 %v3337_v63, 0.0 }
 0xd8a   :  { %v3340_v1 = vmax.f32 %v3332_v2, 0.0 }
 0xd8c   :  { %4036 = vmatprep.mubr.msk.f32.mxu0 %vm2622_vm4, %v3340_v1 }
 0xd8d   :  { %4037 = vmatmul.mubr.msk.f32.vlgmr.msra.gmra.mrb[28].mxu0 %vm2622_vm4, %v3341_v3 }
 0xd8e   :  { %5068 = vmatpush3.bf16.msra.mxu0 %v5065_v25 }
 0xd8f   :  { %5070 = vmatprep.subr.bf16.mxu0 %v5069_v12 }
 0xd92   :  { %5072 = vmatpush3.bf16.msra.mxu0 %v5069_v12 }
 0xd93   :  { %5074 = vmatprep.subr.bf16.mxu0 %v5073_v23 }
 0xd96   :  { %5076 = vmatpush3.bf16.msra.mxu0 %v5073_v23 }
 0xd97   :  { %4068 = vmatprep.subr.msk.mxu0 %vm2626_vm3, %v3552_v24 }
 0xd9a   :  { %4069 = vmatpush3.msk.msra.mxu0 %vm2626_vm3, %v3552_v24 }
 0xe60   :  { %v4038_v14 = vpop.f32.mrb[28].mxu0 }
 0xe61   :  { %v3439_v17 = vadd.f32 %v4038_v14, %v3722_v13  ;;  %v3433_v19 = vpop.f32.mrb[29].mxu0 }
 0xe62   :  { %v3434_v18 = vadd.f32 %v3722_v13, %v3433_v19 }
 0xe63   :  { %v3443_v21 = vmax.f32 %v3439_v17, 0.0 }
 0xe64   :  { %v3442_v20 = vmax.f32 %v3434_v18, 0.0 }
 0xe66   :  { %4053 = vmatprep.mubr.msk.f32.mxu1 %vm2622_vm4, %v3442_v20 }
 0xe67   :  { %4054 = vmatmul.mubr.msk.f32.vlgmr.msra.gmra.mrb[28].mxu1 %vm2622_vm4, %v3443_v21 }
 0xf3a   :  { %v4055_v41 = vpop.f32.mrb[28].mxu1 }
 0xf3b   :  { %v3541_v46 = vadd.f32 %v4055_v41, %v3726_v30  ;;  %v3535_v26 = vpop.f32.mrb[29].mxu1 }
 0xf3c   :  { %v3536_v27 = vadd.f32 %v3726_v30, %v3535_v26 }
 0xf3d   :  { %v3545_v28 = vmax.f32 %v3541_v46, 0.0 }
 0xf3e   :  { %v3544_v45 = vmax.f32 %v3536_v27, 0.0 }
 0xf40   :  { %4070 = vmatprep.mubr.msk.f32.mxu0 %vm2622_vm4, %v3544_v45 }
 0xf41   :  { %4071 = vmatmul.mubr.msk.f32.vlgmr.msra.gmra.mrb[30].mxu0 %vm2622_vm4, %v3545_v28 }
0x1014   :  { %v4072_v34 = vpop.f32.mrb[30].mxu0 }
0x1015   :  { %v3641_v32 = vadd.f32 %v4072_v34, %v3730_v29  ;;  %v3635_v33 = vpop.f32.mrb[31].mxu0 }
0x1016   :  { %v3636_v36 = vadd.f32 %v3730_v29, %v3635_v33 }
0x1017   :  { %3645 = vst [vmem:[#allocation28 + $0x8] sm:$0xff] %v3641_v32 }
0x1018   :  { %3644 = vst [vmem:[#allocation28] sm:$0xff] %v3636_v36 }
0x1019   :  { %5524 = shalt.err (!%p5521_p6)
}
0x101a   :  { %s6176_s10 = sld [smem:[#allocation41_spill]] }
0x1020   :  { %s5525_s18 = scalar_lea.hbm %s6176_s10, 256 }
0x1021   :  { %p5526_p7 = scmp.ne.s32.totalorder %s6176_s10, %s5525_s18  ;;  %p5529_p8 = scmp.lt.u32.totalorder %s5525_s18, %s6176_s10 }
0x1023   :  { %p5531_p9 = pnand %p5529_p8, %p5526_p7 }
0x1025   :  { %5534 = shalt.err (!%p5531_p9)
}
0x1026   :  { %3657 = dma.vmem_to_hbm [thread:$0]  %s3652_s16, 256, %s6176_s10, [#allocation4], %s5561_s20, %s5561_s20, %s5562_s21  }
0x1027   :  { %5553 = dma.done.wait [#allocation4], 256  }
0x1028   :  { %5554 = vsyncadd [#allocation4], 4294967040 }
0x1029   :  { %3661 = vsyncpa [#allocation3], 1 }
0x102a   :  { %3662 = vsyncpa [#allocation6], 1 }
0x102b   :  { %3663 = vsyncpa [#allocation9], 1 }
0x102c   :  { %3664 = vsyncpa [#allocation12], 1 }
0x102d   :  { %3665 = vsyncpa [#allocation15], 1 }
0x102e   :  { %3666 = vsyncpa [#allocation18], 1 }
0x102f   :  { %3667 = vsyncpa [#allocation21], 1 }
0x1030   :  { %3668 = vsyncpa [#allocation24], 1 }
0x1031   :  { %3669 = vsyncpa [#allocation27], 1 }
0x1032   :  { %3670 = vsyncpa [#allocation4], 1 }

</bundles_post_ra>
